<compile_context>
chip_gen: v7x
topology: tpu7x:2x2x1
jax: 0.10.0
libtpu: 0.0.40
codegen_flags: <defaults>
</compile_context>

<pallas_src>
import functools

import jax
import jax.numpy as jnp
from jax.experimental import pallas as pl
from jax.experimental.pallas import tpu as pltpu


def _round_up(v, m):
    return (v + m - 1) // m * m


def _cdiv(a, b):
    return (a + b - 1) // b


def _choose_block_m(M, block_m):
    """Balanced M tiling.

    Returns (bm, Mp): bm is a multiple of 8, at most block_m, chosen so the
    grid has >= 2 steps whenever M allows (v7x megacore), and padding is at
    most bm - 1 rows (instead of up to block_m - 1 with naive round-up).
    """
    m8 = _round_up(M, 8)
    n_blocks = max(_cdiv(m8, block_m), 2 if m8 >= 16 else 1)
    bm = _round_up(_cdiv(m8, n_blocks), 8)
    mp = _round_up(M, bm)
    return bm, mp


# ----------------------------------------------------------------------------
# Kernel 1: M-tiled fused GEMM  ->  relu_opt( x @ W + shift )
#   x block : (bm, K) bf16   w : (K, N) bf16 (BN scale pre-folded)
#   shift   : (1, N)  f32    o : (bm, N) bf16 (relu) / f32 (no relu)
# ----------------------------------------------------------------------------
def _gemm_bias_relu_kernel(x_ref, w_ref, s_ref, o_ref, *, relu):
    acc = jnp.dot(x_ref[...], w_ref[...], preferred_element_type=jnp.float32)
    acc = acc + s_ref[...]
    if relu:
        acc = jnp.maximum(acc, 0.0)
    o_ref[...] = acc.astype(o_ref.dtype)


def gemm_bias_relu(x, w, shift, *, relu, block_m=512):
    """x: (M, K), w: (K, N) bf16, shift: (N,) f32 -> (M, N)."""
    M, K = x.shape
    K2, N = w.shape
    assert K == K2
    x = x.astype(jnp.bfloat16)
    w = w.astype(jnp.bfloat16)
    shift = shift.reshape(1, N).astype(jnp.float32)
    # Activations are consumed in bf16 by the next GEMM anyway -> store bf16.
    out_dtype = jnp.bfloat16 if relu else jnp.float32

    bm, Mp = _choose_block_m(M, block_m)
    if Mp != M:
        x = jnp.pad(x, ((0, Mp - M), (0, 0)))

    cost = pl.CostEstimate(
        flops=2 * Mp * K * N,
        transcendentals=0,
        bytes_accessed=(Mp * K * 2 + K * N * 2 + N * 4
                        + Mp * N * jnp.dtype(out_dtype).itemsize),
    )
    out = pl.pallas_call(
        functools.partial(_gemm_bias_relu_kernel, relu=relu),
        out_shape=jax.ShapeDtypeStruct((Mp, N), out_dtype),
        grid_spec=pltpu.PrefetchScalarGridSpec(
            num_scalar_prefetch=0,
            grid=(Mp // bm,),
            in_specs=[
                pl.BlockSpec((bm, K), lambda i: (i, 0)),
                pl.BlockSpec((K, N), lambda i: (0, 0)),
                pl.BlockSpec((1, N), lambda i: (0, 0)),
            ],
            out_specs=pl.BlockSpec((bm, N), lambda i: (i, 0)),
        ),
        compiler_params=pltpu.CompilerParams(
            dimension_semantics=("parallel",)),
        cost_estimate=cost,
    )(x, w, shift)
    return out[:M] if Mp != M else out


# ----------------------------------------------------------------------------
# Kernel 2: fused, M-tiled network tail
#   conv4 (4x4 valid -> 1x1 spatial) + ReLU          -> z   (the latent)
#   fc_pred: 1x1 conv + BN + ReLU, 1x1 conv + BN + ReLU  (nnSqueeze == reshape)
#   last_layer: Linear, no activation                 -> y
# Intermediates (bm x 8, bm x 256) stay in VMEM; only z and y are written.
# ----------------------------------------------------------------------------
def _tail_kernel(x3_ref, w4_ref, s4_ref, w5_ref, s5_ref, w6_ref, s6_ref,
                 w7_ref, s7_ref, z_ref, y_ref):
    # conv4 + ReLU.  The module's self.conv Sequential ends with ReLU(True),
    # so the returned latent z IS post-ReLU (matches PyTorch).
    z = jnp.maximum(
        jnp.dot(x3_ref[...], w4_ref[...], preferred_element_type=jnp.float32)
        + s4_ref[...], 0.0)
    z_ref[...] = z.astype(z_ref.dtype)
    # fc_pred[0]: 1x1 conv + folded BN + ReLU
    h = jnp.maximum(
        jnp.dot(z.astype(jnp.bfloat16), w5_ref[...],
                preferred_element_type=jnp.float32) + s5_ref[...], 0.0)
    # fc_pred[1]: 1x1 conv + folded BN + ReLU
    h = jnp.maximum(
        jnp.dot(h.astype(jnp.bfloat16), w6_ref[...],
                preferred_element_type=jnp.float32) + s6_ref[...], 0.0)
    # last_layer
    y_ref[...] = (jnp.dot(h.astype(jnp.bfloat16), w7_ref[...],
                          preferred_element_type=jnp.float32)
                  + s7_ref[...]).astype(y_ref.dtype)


def tail_forward(x3_flat, w4, s4, w5, s5, w6, s6, w7, s7, *, block_m=512):
    M, K = x3_flat.shape
    nz, nh, n_out = w4.shape[1], w6.shape[1], w7.shape[1]
    bm, Mp = _choose_block_m(M, block_m)
    x3_flat = x3_flat.astype(jnp.bfloat16)
    if Mp != M:
        x3_flat = jnp.pad(x3_flat, ((0, Mp - M), (0, 0)))

    z, y = pl.pallas_call(
        _tail_kernel,
        out_shape=(jax.ShapeDtypeStruct((Mp, nz), jnp.float32),
                   jax.ShapeDtypeStruct((Mp, n_out), jnp.float32)),
        grid_spec=pltpu.PrefetchScalarGridSpec(
            num_scalar_prefetch=0,
            grid=(Mp // bm,),
            in_specs=[
                pl.BlockSpec((bm, K), lambda i: (i, 0)),
                pl.BlockSpec((K, nz), lambda i: (0, 0)),
                pl.BlockSpec((1, nz), lambda i: (0, 0)),
                pl.BlockSpec((nz, nh), lambda i: (0, 0)),
                pl.BlockSpec((1, nh), lambda i: (0, 0)),
                pl.BlockSpec((nh, nh), lambda i: (0, 0)),
                pl.BlockSpec((1, nh), lambda i: (0, 0)),
                pl.BlockSpec((nh, n_out), lambda i: (0, 0)),
                pl.BlockSpec((1, n_out), lambda i: (0, 0)),
            ],
            out_specs=(pl.BlockSpec((bm, nz), lambda i: (i, 0)),
                       pl.BlockSpec((bm, n_out), lambda i: (i, 0))),
        ),
        compiler_params=pltpu.CompilerParams(
            dimension_semantics=("parallel",)),
    )(x3_flat,
      w4.astype(jnp.bfloat16), s4.reshape(1, -1).astype(jnp.float32),
      w5.astype(jnp.bfloat16), s5.reshape(1, -1).astype(jnp.float32),
      w6.astype(jnp.bfloat16), s6.reshape(1, -1).astype(jnp.float32),
      w7.astype(jnp.bfloat16), s7.reshape(1, -1).astype(jnp.float32))
    return z[:M], y[:M]


# ----------------------------------------------------------------------------
# Plain-JAX glue
# ----------------------------------------------------------------------------
def im2col(x, kh, kw, stride, pad):
    """x: (B, H, W, C) -> patches (B*OH*OW, kh*kw*C), plus (B, OH, OW)."""
    B, H, W, C = x.shape
    xp = jnp.pad(x, ((0, 0), (pad, pad), (pad, pad), (0, 0)))
    OH = (H + 2 * pad - kh) // stride + 1
    OW = (W + 2 * pad - kw) // stride + 1
    cols = []
    for i in range(kh):
        for j in range(kw):
            cols.append(xp[:, i:i + stride * OH:stride, j:j + stride * OW:stride, :])
    p = jnp.stack(cols, axis=3)                   # (B, OH, OW, kh*kw, C)
    return p.reshape(B * OH * OW, kh * kw * C), (B, OH, OW)


def conv_w_to_gemm(w):
    """PyTorch conv weight (Cout, Cin, KH, KW) -> GEMM weight (KH*KW*Cin, Cout)."""
    Cout, Cin, KH, KW = w.shape
    return jnp.transpose(w, (2, 3, 1, 0)).reshape(KH * KW * Cin, Cout)


# ----------------------------------------------------------------------------
# Parameter construction (deterministic, synthetic).  Weights are stored ONCE
# in GEMM layout, BN-folded (eval-mode running stats), bf16; shifts in f32.
# ----------------------------------------------------------------------------
def init_params(key, nh=256, nz=8, domain_num=2):
    ks = iter(jax.random.split(key, 64))

    def conv_raw(cout, cin, kh, kw):
        w = 0.05 * jax.random.normal(next(ks), (cout, cin, kh, kw), jnp.float32)
        b = 0.01 * jax.random.normal(next(ks), (cout,), jnp.float32)
        return w, b

    def bn_raw(c):
        gamma = 1.0 + 0.1 * jax.random.normal(next(ks), (c,), jnp.float32)
        beta = 0.1 * jax.random.normal(next(ks), (c,), jnp.float32)
        mean = 0.1 * jax.random.normal(next(ks), (c,), jnp.float32)
        var = jnp.abs(1.0 + 0.1 * jax.random.normal(next(ks), (c,), jnp.float32))
        return gamma, beta, mean, var

    def fold(w, b, bn=None, eps=1e-5):
        wg = conv_w_to_gemm(w)
        if bn is None:
            scale = jnp.ones_like(b)
            shift = b
        else:
            gamma, beta, mean, var = bn
            scale = gamma / jnp.sqrt(var + eps)
            shift = (b - mean) * scale + beta
        return (wg * scale[None, :]).astype(jnp.bfloat16), shift.astype(jnp.float32)

    p = {}
    p["c1_w"], p["c1_s"] = fold(*conv_raw(nh, 1, 3, 3), bn_raw(nh))
    p["c2_w"], p["c2_s"] = fold(*conv_raw(nh, nh, 3, 3), bn_raw(nh))
    p["c3_w"], p["c3_s"] = fold(*conv_raw(nh, nh, 3, 3), bn_raw(nh))
    p["c4_w"], p["c4_s"] = fold(*conv_raw(nz, nh, 4, 4))          # no BN on conv4
    p["f1_w"], p["f1_s"] = fold(*conv_raw(nh, nz, 1, 1), bn_raw(nh))
    p["f2_w"], p["f2_s"] = fold(*conv_raw(nh, nh, 1, 1), bn_raw(nh))
    n_out = 10 * (domain_num + 1)
    lw = 0.05 * jax.random.normal(next(ks), (nh, n_out), jnp.float32)
    lb = 0.01 * jax.random.normal(next(ks), (n_out,), jnp.float32)
    p["l_w"], p["l_s"] = lw.astype(jnp.bfloat16), lb.astype(jnp.float32)
    return p


# ----------------------------------------------------------------------------
# Forward pass (matches MNIST_Encoder.forward; eval-mode BN, dropout=identity)
# ----------------------------------------------------------------------------
def mnist_encoder_forward(p, x_nchw, domain_index):
    # NOTE: domain_index is unused in the PyTorch forward as well.
    nh = p["f2_w"].shape[1]
    nz = p["c4_w"].shape[1]

    x = jnp.transpose(x_nchw, (0, 2, 3, 1)).astype(jnp.bfloat16)  # NHWC bf16

    # conv1: 3x3 s2 p1 + BN + ReLU      28 -> 14
    pat, (B, OH, OW) = im2col(x, 3, 3, 2, 1)
    x = gemm_bias_relu(pat, p["c1_w"], p["c1_s"], relu=True).reshape(B, OH, OW, nh)

    # conv2: 3x3 s2 p1 + BN + ReLU      14 -> 7
    pat, (B, OH, OW) = im2col(x, 3, 3, 2, 1)
    x = gemm_bias_relu(pat, p["c2_w"], p["c2_s"], relu=True).reshape(B, OH, OW, nh)

    # conv3: 3x3 s2 p1 + BN + ReLU      7 -> 4
    pat, (B, OH, OW) = im2col(x, 3, 3, 2, 1)
    x = gemm_bias_relu(pat, p["c3_w"], p["c3_s"], relu=True).reshape(B, OH, OW, nh)

    # conv4 is a 4x4 valid conv on a 4x4 map -> its im2col is exactly a
    # flatten in (kh, kw, cin) order (same order as the GEMM weight rows).
    assert x.shape[1] == 4 and x.shape[2] == 4, x.shape
    x3_flat = x.reshape(B, 4 * 4 * nh)

    # Fused M-tiled tail: conv4 + ReLU, fc_pred (two 1x1 conv + BN + ReLU,
    # nnSqueeze == reshape), last_layer Linear(nh, 10*(domain_num+1)).
    z_flat, y_out = tail_forward(x3_flat, p["c4_w"], p["c4_s"],
                                 p["f1_w"], p["f1_s"],
                                 p["f2_w"], p["f2_s"],
                                 p["l_w"], p["l_s"])
    z = jnp.transpose(z_flat.reshape(B, 1, 1, nz), (0, 3, 1, 2))  # B x nz x 1 x 1
    return y_out, z


# ----------------------------------------------------------------------------
if __name__ == "__main__":
    key = jax.random.PRNGKey(0)
    k_param, k_x, k_d = jax.random.split(key, 3)

    B, domain_num, nz = 2, 2, 8
    # Spatial size must be 28x28 for the conv arithmetic (28->14->7->4->1).
    x = jax.random.normal(k_x, (B, 1, 28, 28), jnp.float32)
    domain_index = jax.random.randint(k_d, (B, 1), 0, domain_num)

    params = init_params(k_param, nh=256, nz=nz, domain_num=domain_num)

    fwd = jax.jit(mnist_encoder_forward)
    y, z = fwd(params, x, domain_index)
    jax.block_until_ready((y, z))

    assert y.shape == (B, 10 * (domain_num + 1)), y.shape
    assert z.shape == (B, nz, 1, 1), z.shape
    assert bool(jnp.all(jnp.isfinite(y))) and bool(jnp.all(jnp.isfinite(z)))
    print("KERNEL_OK")
</pallas_src>

<mosaic_0001>
module attributes {stable_mosaic.version = 11 : i64} {
  func.func @_gemm_bias_relu_kernel(%arg0: i32, %arg1: memref<200x9xbf16, #tpu.memory_space<vmem>>, %arg2: memref<9x256xbf16, #tpu.memory_space<vmem>>, %arg3: memref<1x256xf32, #tpu.memory_space<vmem>>, %arg4: memref<200x256xbf16, #tpu.memory_space<vmem>>) attributes {dimension_semantics = [#tpu.dimension_semantics<parallel>], iteration_bounds = array<i64: 2>, scalar_prefetch = 0 : i64, scratch_operands = 0 : i64, tpu.core_type = #tpu.core_type<tc>, window_params = [{transform_indices = @transform_0, window_bounds = array<i64: 200, 9>}, {pipeline_mode = #tpu.pipeline_mode<synchronous>, transform_indices = @transform_1, window_bounds = array<i64: 9, 256>}, {pipeline_mode = #tpu.pipeline_mode<synchronous>, transform_indices = @transform_2, window_bounds = array<i64: 1, 256>}, {transform_indices = @transform_3, window_bounds = array<i64: 200, 256>}]} {
    %c0 = arith.constant 0 : index
    %c0_0 = arith.constant 0 : index
    %0 = vector.load %arg1[%c0, %c0_0] : memref<200x9xbf16, #tpu.memory_space<vmem>>, vector<200x9xbf16>
    %c0_1 = arith.constant 0 : index
    %c0_2 = arith.constant 0 : index
    %1 = vector.load %arg2[%c0_1, %c0_2] : memref<9x256xbf16, #tpu.memory_space<vmem>>, vector<9x256xbf16>
    %cst = arith.constant dense<0.000000e+00> : vector<200x256xf32>
    %2 = tpu.matmul %0, %1, %cst {dimension_numbers = #tpu.dot_dimension_numbers<[1], [0], [0], [1], [0, 0, 1, 1], [], []>} : vector<200x9xbf16>, vector<9x256xbf16>, vector<200x256xf32> -> vector<200x256xf32>
    %c0_3 = arith.constant 0 : index
    %c0_4 = arith.constant 0 : index
    %3 = vector.load %arg3[%c0_3, %c0_4] : memref<1x256xf32, #tpu.memory_space<vmem>>, vector<1x256xf32>
    %4 = vector.broadcast %3 : vector<1x256xf32> to vector<200x256xf32>
    %5 = arith.addf %2, %4 : vector<200x256xf32>
    %cst_5 = arith.constant 0.000000e+00 : f32
    %6 = vector.broadcast %cst_5 : f32 to vector<200x256xf32>
    %7 = arith.maximumf %5, %6 : vector<200x256xf32>
    %8 = arith.truncf %7 : vector<200x256xf32> to vector<200x256xbf16>
    %c0_6 = arith.constant 0 : index
    %c0_7 = arith.constant 0 : index
    %9 = vector.load %arg4[%c0_6, %c0_7] : memref<200x256xbf16, #tpu.memory_space<vmem>>, vector<200x256xbf16>
    tpu.vector_store %arg4[%c0_6, %c0_7], %8 {strides = array<i32>} : memref<200x256xbf16, #tpu.memory_space<vmem>>, vector<200x256xbf16>,
    return
  }
  func.func @transform_0(%arg0: i32) -> (i32, i32) {
    %c0_i32 = arith.constant 0 : i32
    %c0_i32_0 = arith.constant 0 : i32
    return %arg0, %c0_i32 : i32, i32
  }
  func.func @transform_1(%arg0: i32) -> (i32, i32) {
    %c0_i32 = arith.constant 0 : i32
    %c0_i32_0 = arith.constant 0 : i32
    %c0_i32_1 = arith.constant 0 : i32
    return %c0_i32, %c0_i32_0 : i32, i32
  }
  func.func @transform_2(%arg0: i32) -> (i32, i32) {
    %c0_i32 = arith.constant 0 : i32
    %c0_i32_0 = arith.constant 0 : i32
    %c0_i32_1 = arith.constant 0 : i32
    return %c0_i32, %c0_i32_0 : i32, i32
  }
  func.func @transform_3(%arg0: i32) -> (i32, i32) {
    %c0_i32 = arith.constant 0 : i32
    %c0_i32_0 = arith.constant 0 : i32
    return %arg0, %c0_i32 : i32, i32
  }
}

module attributes {stable_mosaic.version = 11 : i64} {
  func.func @_gemm_bias_relu_kernel(%arg0: i32, %arg1: memref<56x2304xbf16, #tpu.memory_space<vmem>>, %arg2: memref<2304x256xbf16, #tpu.memory_space<vmem>>, %arg3: memref<1x256xf32, #tpu.memory_space<vmem>>, %arg4: memref<56x256xbf16, #tpu.memory_space<vmem>>) attributes {dimension_semantics = [#tpu.dimension_semantics<parallel>], iteration_bounds = array<i64: 2>, scalar_prefetch = 0 : i64, scratch_operands = 0 : i64, tpu.core_type = #tpu.core_type<tc>, window_params = [{transform_indices = @transform_0, window_bounds = array<i64: 56, 2304>}, {pipeline_mode = #tpu.pipeline_mode<synchronous>, transform_indices = @transform_1, window_bounds = array<i64: 2304, 256>}, {pipeline_mode = #tpu.pipeline_mode<synchronous>, transform_indices = @transform_2, window_bounds = array<i64: 1, 256>}, {transform_indices = @transform_3, window_bounds = array<i64: 56, 256>}]} {
    %c0 = arith.constant 0 : index
    %c0_0 = arith.constant 0 : index
    %0 = vector.load %arg1[%c0, %c0_0] : memref<56x2304xbf16, #tpu.memory_space<vmem>>, vector<56x2304xbf16>
    %c0_1 = arith.constant 0 : index
    %c0_2 = arith.constant 0 : index
    %1 = vector.load %arg2[%c0_1, %c0_2] : memref<2304x256xbf16, #tpu.memory_space<vmem>>, vector<2304x256xbf16>
    %cst = arith.constant dense<0.000000e+00> : vector<56x256xf32>
    %2 = tpu.matmul %0, %1, %cst {dimension_numbers = #tpu.dot_dimension_numbers<[1], [0], [0], [1], [0, 0, 1, 1], [], []>} : vector<56x2304xbf16>, vector<2304x256xbf16>, vector<56x256xf32> -> vector<56x256xf32>
    %c0_3 = arith.constant 0 : index
    %c0_4 = arith.constant 0 : index
    %3 = vector.load %arg3[%c0_3, %c0_4] : memref<1x256xf32, #tpu.memory_space<vmem>>, vector<1x256xf32>
    %4 = vector.broadcast %3 : vector<1x256xf32> to vector<56x256xf32>
    %5 = arith.addf %2, %4 : vector<56x256xf32>
    %cst_5 = arith.constant 0.000000e+00 : f32
    %6 = vector.broadcast %cst_5 : f32 to vector<56x256xf32>
    %7 = arith.maximumf %5, %6 : vector<56x256xf32>
    %8 = arith.truncf %7 : vector<56x256xf32> to vector<56x256xbf16>
    %c0_6 = arith.constant 0 : index
    %c0_7 = arith.constant 0 : index
    %9 = vector.load %arg4[%c0_6, %c0_7] : memref<56x256xbf16, #tpu.memory_space<vmem>>, vector<56x256xbf16>
    tpu.vector_store %arg4[%c0_6, %c0_7], %8 {strides = array<i32>} : memref<56x256xbf16, #tpu.memory_space<vmem>>, vector<56x256xbf16>,
    return
  }
  func.func @transform_0(%arg0: i32) -> (i32, i32) {
    %c0_i32 = arith.constant 0 : i32
    %c0_i32_0 = arith.constant 0 : i32
    return %arg0, %c0_i32 : i32, i32
  }
  func.func @transform_1(%arg0: i32) -> (i32, i32) {
    %c0_i32 = arith.constant 0 : i32
    %c0_i32_0 = arith.constant 0 : i32
    %c0_i32_1 = arith.constant 0 : i32
    return %c0_i32, %c0_i32_0 : i32, i32
  }
  func.func @transform_2(%arg0: i32) -> (i32, i32) {
    %c0_i32 = arith.constant 0 : i32
    %c0_i32_0 = arith.constant 0 : i32
    %c0_i32_1 = arith.constant 0 : i32
    return %c0_i32, %c0_i32_0 : i32, i32
  }
  func.func @transform_3(%arg0: i32) -> (i32, i32) {
    %c0_i32 = arith.constant 0 : i32
    %c0_i32_0 = arith.constant 0 : i32
    return %arg0, %c0_i32 : i32, i32
  }
}

module attributes {stable_mosaic.version = 11 : i64} {
  func.func @_gemm_bias_relu_kernel(%arg0: i32, %arg1: memref<16x2304xbf16, #tpu.memory_space<vmem>>, %arg2: memref<2304x256xbf16, #tpu.memory_space<vmem>>, %arg3: memref<1x256xf32, #tpu.memory_space<vmem>>, %arg4: memref<16x256xbf16, #tpu.memory_space<vmem>>) attributes {dimension_semantics = [#tpu.dimension_semantics<parallel>], iteration_bounds = array<i64: 2>, scalar_prefetch = 0 : i64, scratch_operands = 0 : i64, tpu.core_type = #tpu.core_type<tc>, window_params = [{transform_indices = @transform_0, window_bounds = array<i64: 16, 2304>}, {pipeline_mode = #tpu.pipeline_mode<synchronous>, transform_indices = @transform_1, window_bounds = array<i64: 2304, 256>}, {pipeline_mode = #tpu.pipeline_mode<synchronous>, transform_indices = @transform_2, window_bounds = array<i64: 1, 256>}, {transform_indices = @transform_3, window_bounds = array<i64: 16, 256>}]} {
    %c0 = arith.constant 0 : index
    %c0_0 = arith.constant 0 : index
    %0 = vector.load %arg1[%c0, %c0_0] : memref<16x2304xbf16, #tpu.memory_space<vmem>>, vector<16x2304xbf16>
    %c0_1 = arith.constant 0 : index
    %c0_2 = arith.constant 0 : index
    %1 = vector.load %arg2[%c0_1, %c0_2] : memref<2304x256xbf16, #tpu.memory_space<vmem>>, vector<2304x256xbf16>
    %cst = arith.constant dense<0.000000e+00> : vector<16x256xf32>
    %2 = tpu.matmul %0, %1, %cst {dimension_numbers = #tpu.dot_dimension_numbers<[1], [0], [0], [1], [0, 0, 1, 1], [], []>} : vector<16x2304xbf16>, vector<2304x256xbf16>, vector<16x256xf32> -> vector<16x256xf32>
    %c0_3 = arith.constant 0 : index
    %c0_4 = arith.constant 0 : index
    %3 = vector.load %arg3[%c0_3, %c0_4] : memref<1x256xf32, #tpu.memory_space<vmem>>, vector<1x256xf32>
    %4 = vector.broadcast %3 : vector<1x256xf32> to vector<16x256xf32>
    %5 = arith.addf %2, %4 : vector<16x256xf32>
    %cst_5 = arith.constant 0.000000e+00 : f32
    %6 = vector.broadcast %cst_5 : f32 to vector<16x256xf32>
    %7 = arith.maximumf %5, %6 : vector<16x256xf32>
    %8 = arith.truncf %7 : vector<16x256xf32> to vector<16x256xbf16>
    %c0_6 = arith.constant 0 : index
    %c0_7 = arith.constant 0 : index
    %9 = vector.load %arg4[%c0_6, %c0_7] : memref<16x256xbf16, #tpu.memory_space<vmem>>, vector<16x256xbf16>
    tpu.vector_store %arg4[%c0_6, %c0_7], %8 {strides = array<i32>} : memref<16x256xbf16, #tpu.memory_space<vmem>>, vector<16x256xbf16>,
    return
  }
  func.func @transform_0(%arg0: i32) -> (i32, i32) {
    %c0_i32 = arith.constant 0 : i32
    %c0_i32_0 = arith.constant 0 : i32
    return %arg0, %c0_i32 : i32, i32
  }
  func.func @transform_1(%arg0: i32) -> (i32, i32) {
    %c0_i32 = arith.constant 0 : i32
    %c0_i32_0 = arith.constant 0 : i32
    %c0_i32_1 = arith.constant 0 : i32
    return %c0_i32, %c0_i32_0 : i32, i32
  }
  func.func @transform_2(%arg0: i32) -> (i32, i32) {
    %c0_i32 = arith.constant 0 : i32
    %c0_i32_0 = arith.constant 0 : i32
    %c0_i32_1 = arith.constant 0 : i32
    return %c0_i32, %c0_i32_0 : i32, i32
  }
  func.func @transform_3(%arg0: i32) -> (i32, i32) {
    %c0_i32 = arith.constant 0 : i32
    %c0_i32_0 = arith.constant 0 : i32
    return %arg0, %c0_i32 : i32, i32
  }
}

module attributes {stable_mosaic.version = 11 : i64} {
  func.func @_tail_kernel(%arg0: i32, %arg1: memref<8x4096xbf16, #tpu.memory_space<vmem>>, %arg2: memref<4096x8xbf16, #tpu.memory_space<vmem>>, %arg3: memref<1x8xf32, #tpu.memory_space<vmem>>, %arg4: memref<8x256xbf16, #tpu.memory_space<vmem>>, %arg5: memref<1x256xf32, #tpu.memory_space<vmem>>, %arg6: memref<256x256xbf16, #tpu.memory_space<vmem>>, %arg7: memref<1x256xf32, #tpu.memory_space<vmem>>, %arg8: memref<256x30xbf16, #tpu.memory_space<vmem>>, %arg9: memref<1x30xf32, #tpu.memory_space<vmem>>, %arg10: memref<8x8xf32, #tpu.memory_space<vmem>>, %arg11: memref<8x30xf32, #tpu.memory_space<vmem>>) attributes {dimension_semantics = [#tpu.dimension_semantics<parallel>], iteration_bounds = array<i64: 1>, scalar_prefetch = 0 : i64, scratch_operands = 0 : i64, tpu.core_type = #tpu.core_type<tc>, window_params = [{transform_indices = @transform_0, window_bounds = array<i64: 8, 4096>}, {pipeline_mode = #tpu.pipeline_mode<synchronous>, transform_indices = @transform_1, window_bounds = array<i64: 4096, 8>}, {pipeline_mode = #tpu.pipeline_mode<synchronous>, transform_indices = @transform_2, window_bounds = array<i64: 1, 8>}, {pipeline_mode = #tpu.pipeline_mode<synchronous>, transform_indices = @transform_3, window_bounds = array<i64: 8, 256>}, {pipeline_mode = #tpu.pipeline_mode<synchronous>, transform_indices = @transform_4, window_bounds = array<i64: 1, 256>}, {pipeline_mode = #tpu.pipeline_mode<synchronous>, transform_indices = @transform_5, window_bounds = array<i64: 256, 256>}, {pipeline_mode = #tpu.pipeline_mode<synchronous>, transform_indices = @transform_6, window_bounds = array<i64: 1, 256>}, {pipeline_mode = #tpu.pipeline_mode<synchronous>, transform_indices = @transform_7, window_bounds = array<i64: 256, 30>}, {pipeline_mode = #tpu.pipeline_mode<synchronous>, transform_indices = @transform_8, window_bounds = array<i64: 1, 30>}, {transform_indices = @transform_9, window_bounds = array<i64: 8, 8>}, {transform_indices = @transform_10, window_bounds = array<i64: 8, 30>}]} {
    %c0 = arith.constant 0 : index
    %c0_0 = arith.constant 0 : index
    %0 = vector.load %arg1[%c0, %c0_0] : memref<8x4096xbf16, #tpu.memory_space<vmem>>, vector<8x4096xbf16>
    %c0_1 = arith.constant 0 : index
    %c0_2 = arith.constant 0 : index
    %1 = vector.load %arg2[%c0_1, %c0_2] : memref<4096x8xbf16, #tpu.memory_space<vmem>>, vector<4096x8xbf16>
    %cst = arith.constant dense<0.000000e+00> : vector<8x8xf32>
    %2 = tpu.matmul %0, %1, %cst {dimension_numbers = #tpu.dot_dimension_numbers<[1], [0], [0], [1], [0, 0, 1, 1], [], []>} : vector<8x4096xbf16>, vector<4096x8xbf16>, vector<8x8xf32> -> vector<8x8xf32>
    %c0_3 = arith.constant 0 : index
    %c0_4 = arith.constant 0 : index
    %3 = vector.load %arg3[%c0_3, %c0_4] : memref<1x8xf32, #tpu.memory_space<vmem>>, vector<1x8xf32>
    %4 = vector.broadcast %3 : vector<1x8xf32> to vector<8x8xf32>
    %5 = arith.addf %2, %4 : vector<8x8xf32>
    %cst_5 = arith.constant 0.000000e+00 : f32
    %6 = vector.broadcast %cst_5 : f32 to vector<8x8xf32>
    %7 = arith.maximumf %5, %6 : vector<8x8xf32>
    %c0_6 = arith.constant 0 : index
    %c0_7 = arith.constant 0 : index
    %8 = vector.load %arg10[%c0_6, %c0_7] : memref<8x8xf32, #tpu.memory_space<vmem>>, vector<8x8xf32>
    tpu.vector_store %arg10[%c0_6, %c0_7], %7 {strides = array<i32>} : memref<8x8xf32, #tpu.memory_space<vmem>>, vector<8x8xf32>,
    %9 = arith.truncf %7 : vector<8x8xf32> to vector<8x8xbf16>
    %c0_8 = arith.constant 0 : index
    %c0_9 = arith.constant 0 : index
    %10 = vector.load %arg4[%c0_8, %c0_9] : memref<8x256xbf16, #tpu.memory_space<vmem>>, vector<8x256xbf16>
    %cst_10 = arith.constant dense<0.000000e+00> : vector<8x256xf32>
    %11 = tpu.matmul %9, %10, %cst_10 {dimension_numbers = #tpu.dot_dimension_numbers<[1], [0], [0], [1], [0, 0, 1, 1], [], []>} : vector<8x8xbf16>, vector<8x256xbf16>, vector<8x256xf32> -> vector<8x256xf32>
    %c0_11 = arith.constant 0 : index
    %c0_12 = arith.constant 0 : index
    %12 = vector.load %arg5[%c0_11, %c0_12] : memref<1x256xf32, #tpu.memory_space<vmem>>, vector<1x256xf32>
    %13 = vector.broadcast %12 : vector<1x256xf32> to vector<8x256xf32>
    %14 = arith.addf %11, %13 : vector<8x256xf32>
    %cst_13 = arith.constant 0.000000e+00 : f32
    %15 = vector.broadcast %cst_13 : f32 to vector<8x256xf32>
    %16 = arith.maximumf %14, %15 : vector<8x256xf32>
    %17 = arith.truncf %16 : vector<8x256xf32> to vector<8x256xbf16>
    %c0_14 = arith.constant 0 : index
    %c0_15 = arith.constant 0 : index
    %18 = vector.load %arg6[%c0_14, %c0_15] : memref<256x256xbf16, #tpu.memory_space<vmem>>, vector<256x256xbf16>
    %cst_16 = arith.constant dense<0.000000e+00> : vector<8x256xf32>
    %19 = tpu.matmul %17, %18, %cst_16 {dimension_numbers = #tpu.dot_dimension_numbers<[1], [0], [0], [1], [0, 0, 1, 1], [], []>} : vector<8x256xbf16>, vector<256x256xbf16>, vector<8x256xf32> -> vector<8x256xf32>
    %c0_17 = arith.constant 0 : index
    %c0_18 = arith.constant 0 : index
    %20 = vector.load %arg7[%c0_17, %c0_18] : memref<1x256xf32, #tpu.memory_space<vmem>>, vector<1x256xf32>
    %21 = vector.broadcast %20 : vector<1x256xf32> to vector<8x256xf32>
    %22 = arith.addf %19, %21 : vector<8x256xf32>
    %cst_19 = arith.constant 0.000000e+00 : f32
    %23 = vector.broadcast %cst_19 : f32 to vector<8x256xf32>
    %24 = arith.maximumf %22, %23 : vector<8x256xf32>
    %25 = arith.truncf %24 : vector<8x256xf32> to vector<8x256xbf16>
    %c0_20 = arith.constant 0 : index
    %c0_21 = arith.constant 0 : index
    %26 = vector.load %arg8[%c0_20, %c0_21] : memref<256x30xbf16, #tpu.memory_space<vmem>>, vector<256x30xbf16>
    %cst_22 = arith.constant dense<0.000000e+00> : vector<8x30xf32>
    %27 = tpu.matmul %25, %26, %cst_22 {dimension_numbers = #tpu.dot_dimension_numbers<[1], [0], [0], [1], [0, 0, 1, 1], [], []>} : vector<8x256xbf16>, vector<256x30xbf16>, vector<8x30xf32> -> vector<8x30xf32>
    %c0_23 = arith.constant 0 : index
    %c0_24 = arith.constant 0 : index
    %28 = vector.load %arg9[%c0_23, %c0_24] : memref<1x30xf32, #tpu.memory_space<vmem>>, vector<1x30xf32>
    %29 = vector.broadcast %28 : vector<1x30xf32> to vector<8x30xf32>
    %30 = arith.addf %27, %29 : vector<8x30xf32>
    %c0_25 = arith.constant 0 : index
    %c0_26 = arith.constant 0 : index
    %31 = vector.load %arg11[%c0_25, %c0_26] : memref<8x30xf32, #tpu.memory_space<vmem>>, vector<8x30xf32>
    tpu.vector_store %arg11[%c0_25, %c0_26], %30 {strides = array<i32>} : memref<8x30xf32, #tpu.memory_space<vmem>>, vector<8x30xf32>,
    return
  }
  func.func @transform_0(%arg0: i32) -> (i32, i32) {
    %c0_i32 = arith.constant 0 : i32
    %c0_i32_0 = arith.constant 0 : i32
    return %arg0, %c0_i32 : i32, i32
  }
  func.func @transform_1(%arg0: i32) -> (i32, i32) {
    %c0_i32 = arith.constant 0 : i32
    %c0_i32_0 = arith.constant 0 : i32
    %c0_i32_1 = arith.constant 0 : i32
    return %c0_i32, %c0_i32_0 : i32, i32
  }
  func.func @transform_2(%arg0: i32) -> (i32, i32) {
    %c0_i32 = arith.constant 0 : i32
    %c0_i32_0 = arith.constant 0 : i32
    %c0_i32_1 = arith.constant 0 : i32
    return %c0_i32, %c0_i32_0 : i32, i32
  }
  func.func @transform_3(%arg0: i32) -> (i32, i32) {
    %c0_i32 = arith.constant 0 : i32
    %c0_i32_0 = arith.constant 0 : i32
    %c0_i32_1 = arith.constant 0 : i32
    return %c0_i32, %c0_i32_0 : i32, i32
  }
  func.func @transform_4(%arg0: i32) -> (i32, i32) {
    %c0_i32 = arith.constant 0 : i32
    %c0_i32_0 = arith.constant 0 : i32
    %c0_i32_1 = arith.constant 0 : i32
    return %c0_i32, %c0_i32_0 : i32, i32
  }
  func.func @transform_5(%arg0: i32) -> (i32, i32) {
    %c0_i32 = arith.constant 0 : i32
    %c0_i32_0 = arith.constant 0 : i32
    %c0_i32_1 = arith.constant 0 : i32
    return %c0_i32, %c0_i32_0 : i32, i32
  }
  func.func @transform_6(%arg0: i32) -> (i32, i32) {
    %c0_i32 = arith.constant 0 : i32
    %c0_i32_0 = arith.constant 0 : i32
    %c0_i32_1 = arith.constant 0 : i32
    return %c0_i32, %c0_i32_0 : i32, i32
  }
  func.func @transform_7(%arg0: i32) -> (i32, i32) {
    %c0_i32 = arith.constant 0 : i32
    %c0_i32_0 = arith.constant 0 : i32
    %c0_i32_1 = arith.constant 0 : i32
    return %c0_i32, %c0_i32_0 : i32, i32
  }
  func.func @transform_8(%arg0: i32) -> (i32, i32) {
    %c0_i32 = arith.constant 0 : i32
    %c0_i32_0 = arith.constant 0 : i32
    %c0_i32_1 = arith.constant 0 : i32
    return %c0_i32, %c0_i32_0 : i32, i32
  }
  func.func @transform_9(%arg0: i32) -> (i32, i32) {
    %c0_i32 = arith.constant 0 : i32
    %c0_i32_0 = arith.constant 0 : i32
    return %arg0, %c0_i32 : i32, i32
  }
  func.func @transform_10(%arg0: i32) -> (i32, i32) {
    %c0_i32 = arith.constant 0 : i32
    %c0_i32_0 = arith.constant 0 : i32
    return %arg0, %c0_i32 : i32, i32
  }
}

</mosaic_0001>

<bundles_post_ra>
// kernel: mnist_encoder_forward.4
= control target key start
LH: loop header
LB: loop body
LE: loop exit
PB: predicated region body
PF: predicated region fallthrough
CT: control target
= control target key end

     0   :  { %8 = vsyncpa [#allocation3], 0  ;;  %s1284_s0 = inlined_call_operand.vmem [shape: bf16[400,9], index: 0, kind: input, shape index: {}]   ;;  %s1285_s1 = inlined_call_operand.hbm [shape: bf16[9,256], index: 1, kind: input, shape index: {}]   ;;  %s1286_s2 = inlined_call_operand.hbm [shape: f32[1,256], index: 2, kind: input, shape index: {}]   ;;  %s1287_s3 = inlined_call_operand.vmem [shape: bf16[400,256], index: 3, kind: output, shape index: {}]  }
   0x1   :  { %9 = vsyncpa [#allocation5], 0  ;;  %s1075_s12 = smov 0  }
   0x2 LB: > { %s833_s13 = sadd.s32 4294967295, %s1047_s12   ;;  %p835_p0 = scmp.ge.s32.totalorder %s1047_s12, 1  ;;  %s1047_s12 = sphi %s1075_s12, %s15_s12  }
   0x3   : > { %p114_p1 = scmp.lt.s32.totalorder %s1047_s12, 3  ;;  %s1049_s14 = smov [#allocation2]  }
   0x4   : > { %s126_s15 = sshll.u32 %s1049_s14, 4  ;;  %p1089_p3 = scmp.eq.s32.totalorder %s833_s13, 0  ;;  %s127_s15 = int_to_ptr.vmem [resolvable:$true] %s126_s15 }
   0x5   : > { %p1083_p2 = pnand %p835_p0, %p114_p1  ;;  %s1050_s18 = smov [#allocation4]  }
   0x6   : > { %s1292_s17 = scalar_select %p1089_p3, 1, 0 }
   0x7   : > { %s1291_s16 = scalar_select %p1083_p2, 1, 0 }
   0x8   : > { %p936_p4 = pneg %p1083_p2  ;;  %s140_s19 = sshll.u32 %s1050_s18, 4  ;;  %s1101_s19 = int_to_ptr.vmem [resolvable:$true] %s140_s19 }
   0x9   : > { %s977_s23 = scalar_lea.hbm %s1285_s1, 256 }
   0xa   : > { %p1097_p5 = pnand %p1089_p3, %p936_p4  ;;  %p978_p6 = scmp.ne.s32.totalorder %s1285_s1, %s977_s23 }
   0xb   : > { %p984_p10 = scmp.lt.u32.totalorder %s977_s23, %s1285_s1 }
   0xc   : > { %p979_p7 = pneg %p1097_p5 }
   0xe   : > { %p980_p8 = pnand %p979_p7, %p978_p6 }
  0x10   : > { %p981_p9 = pneg %p980_p8 }
  0x12   : > { %p986_p11 = pnand %p984_p10, %p981_p9 }
  0x14   : > { %989 = shalt.err (!%p986_p11)
}
  0x15   : > { %s990_s28 = scalar_lea.vmem %s127_s15, 256  ;;  %p998_p1 = scmp.lt.s32.totalorder %s127_s15, %s127_s15 }
  0x16   : > { %p991_p12 = scmp.ne.s32.totalorder %s127_s15, %s990_s28  ;;  %p999_p4 = scmp.lt.s32.totalorder %s990_s28, %s990_s28 }
  0x18   : > { %p993_p13 = pnand %p991_p12, %p979_p7  ;;  %p1000_p3 = por %p999_p4, %p998_p1 }
  0x1a   : > { %p994_p0 = pneg %p993_p13 }
  0x1c   : > { %p1001_p2 = pnand %p1000_p3, %p994_p0 }
  0x1e   : > { %1004 = shalt.err (!%p1001_p2)
}
  0x1f   : > { %s1051_s29 = smov 128   ;;  %s1052_s30 = smov 8  }
  0x20   : > { %939 = dma.hbm_to_vmem [thread:$0]  (!%p1097_p5), %s1285_s1, 256, %s127_s15, [#allocation3], %s1051_s29, %s1051_s29, %s1052_s30  }
  0x21   : > { %s1005_s8 = scalar_lea.hbm %s1286_s2, 32 }
  0x22   : > { %p1006_p6 = scmp.ne.s32.totalorder %s1286_s2, %s1005_s8  ;;  %p1012_p8 = scmp.lt.u32.totalorder %s1005_s8, %s1286_s2 }
  0x24   : > { %p1008_p2 = pnand %p1006_p6, %p979_p7 }
  0x26   : > { %p1009_p3 = pneg %p1008_p2 }
  0x28   : > { %p1014_p9 = pnand %p1012_p8, %p1009_p3 }
  0x2a   : > { %1017 = shalt.err (!%p1014_p9)
}
  0x2b   : > { %s1018_s15 = scalar_lea.vmem %s1101_s19, 32  ;;  %p1026_p13 = scmp.lt.s32.totalorder %s1101_s19, %s1101_s19 }
  0x2c   : > { %p1019_p10 = scmp.ne.s32.totalorder %s1101_s19, %s1018_s15  ;;  %p1027_p0 = scmp.lt.s32.totalorder %s1018_s15, %s1018_s15 }
  0x2e   : > { %p1021_p11 = pnand %p1019_p10, %p979_p7  ;;  %p1028_p1 = por %p1027_p0, %p1026_p13 }
  0x30   : > { %p1022_p12 = pneg %p1021_p11 }
  0x32   : > { %p1029_p4 = pnand %p1028_p1, %p1022_p12 }
  0x34   : > { %1032 = shalt.err (!%p1029_p4)
}
  0x35   : > { %942 = dma.hbm_to_vmem [thread:$0]  (!%p1097_p5), %s1286_s2, 32, %s1101_s19, [#allocation5]  }
  0x36   : > { %p1294_p6 = scmp.ne.s32.totalorder %s1291_s16, 0 }
  0x37   : > { %p1295_p2 = scmp.ne.s32.totalorder (!%p1294_p6), %s1292_s17, 0 }
  0x38   : > { %162 = sbr.rel (%p1294_p6) target bundleno = 346 (0x15a), region = 32 }
  0x3f   : > { %1038 = dma.done.wait (%p1295_p2), [#allocation3], 256  }
  0x40   : > { %1040 = vsyncadd (%p1295_p2), [#allocation3], 4294967040 }
  0x41   : > { %1042 = dma.done.wait (%p1295_p2), [#allocation5], 32  }
  0x42   : > { %1044 = vsyncadd (%p1295_p2), [#allocation5], 4294967264  ;;  %vm355_vm0 = vcmask 1043456   ;;  %v1053_v0 = vmov 0   ;;  %s191_s19 = smul.u32 25, %s833_s13  ;;  %vm356_vm1 = vcmask 1044480   ;;  %v234_v21 = vlaneseq }
  0x43   : > { %397 = vmatprep.mubr.bf16.mxu0 %v1053_v0  ;;  %467 = vmatprep.mubr.bf16.mxu1 %v1053_v0  ;;  %v1054_v1 = vmov 65535   ;;  %v961_v4 = vld [vmem:[#allocation2 + $0x4] ss:$8 sps:$4 sm:$0x1f]   ;;  %vm315_vm2 = vcmask 72704  }
  0x44   : > { %v357_v2 = vsel %vm355_vm0, 4294967295, %v1054_v1  ;;  %p192_p5 = scmp.lt.s32.totalorder %s191_s19, 49  ;;  %v963_v5 = vld [vmem:[#allocation2] ss:$8 sps:$4 sm:$0x1f]   ;;  %v235_v22 = vshrl.u32 %v234_v21, 7 }
  0x45   : > { %v358_v3 = vsel %vm356_vm1, %v357_v2, 0  ;;  %v232_v24 = vld [vmem:[#allocation4] sm:$0x3] }
  0x46   : > { %s1297_s19 = smov (!%p192_p5, %s191_s19), 49  ;;  %v363_v6 = vand.u32 %v961_v4, %v358_v3  ;;  %v360_v7 = vand.u32 %v963_v5, %v358_v3  ;;  %v236_v23 = vsub.s32 0, %v235_v22  ;;  %v240_v25 = vsub.s32 1, %v235_v22 }
  0x47   : > { %s842_s16 = sshll.u32 %s1297_s19, 2  ;;  %s900_s13 = sshll.u32 %s1297_s19, 3 }
  0x48   : > { %s1168_s22 = scalar_lea.vmem %s1284_s0, %s842_s16  ;;  %365 = vmatprep.subr.bf16.mxu0 %v363_v6  ;;  %926 = vmatprep.subr.bf16.mxu1 %v363_v6  ;;  %v1196_v26 = vrot.slane %v232_v24, %v236_v23  ;;  %v1198_v27 = vrot.slane %v232_v24, %v240_v25  ;;  %s1212_s25 = scalar_lea.vmem %s1287_s3, %s900_s13 }
  0x49   : > { %v964_v8 = vld [vmem:[%s1168_s22] sm:$0xff]   ;;  %v965_v9 = vld [vmem:[%s1168_s22 + $0x38] sm:$0xff]   ;;  %366 = vmatpush1.bf16.msra.mxu0 %v360_v7  ;;  %927 = vmatpush1.bf16.msra.mxu1 %v360_v7  ;;  %v966_v10 = vld [vmem:[%s1168_s22 + $0x8] sm:$0xff]  }
  0x4a   : > { %v967_v11 = vld [vmem:[%s1168_s22 + $0x40] sm:$0xff]   ;;  %v968_v12 = vld [vmem:[%s1168_s22 + $0x10] sm:$0xff]   ;;  %v969_v13 = vld [vmem:[%s1168_s22 + $0x48] sm:$0xff]  }
  0x4b   : > { %v970_v14 = vld [vmem:[%s1168_s22 + $0x18] sm:$0xff]   ;;  %v971_v15 = vld [vmem:[%s1168_s22 + $0x50] sm:$0xff]   ;;  %v972_v16 = vld [vmem:[%s1168_s22 + $0x20] sm:$0xff]  }
  0x4c   : > { %860 = vmatmul.mubr.msk.bf16.vlgmr.msra.gmra.mrb[0].mxu0 %vm315_vm2, %v964_v8  ;;  %867 = vmatmul.mubr.msk.bf16.vlgmr.msra.gmra.mrb[0].mxu1 %vm315_vm2, %v965_v9  ;;  %v973_v17 = vld [vmem:[%s1168_s22 + $0x58] sm:$0xff]   ;;  %v974_v18 = vld [vmem:[%s1168_s22 + $0x28] sm:$0xff]   ;;  %v975_v19 = vld [vmem:[%s1168_s22 + $0x60] ss:$0 sps:$4 sm:$0xff]  }
  0x4d   : > { %407 = vmatprep.mubr.bf16.mxu0 %v1053_v0  ;;  %477 = vmatprep.mubr.bf16.mxu1 %v1053_v0  ;;  %v976_v20 = vld [vmem:[%s1168_s22 + $0x30] sm:$0xff]  }
  0x54   : > { %861 = vmatmul.mubr.msk.bf16.gmra.mrb[4].mxu0 %vm315_vm2, %v966_v10  ;;  %868 = vmatmul.mubr.msk.bf16.gmra.mrb[4].mxu1 %vm315_vm2, %v967_v11 }
  0x55   : > { %417 = vmatprep.mubr.bf16.mxu0 %v1053_v0  ;;  %487 = vmatprep.mubr.bf16.mxu1 %v1053_v0 }
  0x5c   : > { %862 = vmatmul.mubr.msk.bf16.gmra.mrb[8].mxu0 %vm315_vm2, %v968_v12  ;;  %869 = vmatmul.mubr.msk.bf16.gmra.mrb[8].mxu1 %vm315_vm2, %v969_v13 }
  0x5d   : > { %427 = vmatprep.mubr.bf16.mxu0 %v1053_v0  ;;  %497 = vmatprep.mubr.bf16.mxu1 %v1053_v0 }
  0x64   : > { %863 = vmatmul.mubr.msk.bf16.gmra.mrb[12].mxu0 %vm315_vm2, %v970_v14  ;;  %870 = vmatmul.mubr.msk.bf16.gmra.mrb[12].mxu1 %vm315_vm2, %v971_v15 }
  0x65   : > { %437 = vmatprep.mubr.bf16.mxu0 %v1053_v0  ;;  %507 = vmatprep.mubr.bf16.mxu1 %v1053_v0 }
  0x6c   : > { %864 = vmatmul.mubr.msk.bf16.gmra.mrb[16].mxu0 %vm315_vm2, %v972_v16  ;;  %871 = vmatmul.mubr.msk.bf16.gmra.mrb[16].mxu1 %vm315_vm2, %v973_v17 }
  0x6d   : > { %447 = vmatprep.mubr.bf16.mxu0 %v1053_v0  ;;  %517 = vmatprep.mubr.bf16.mxu1 %v1053_v0 }
  0x74   : > { %865 = vmatmul.mubr.msk.bf16.gmra.mrb[20].mxu0 %vm315_vm2, %v974_v18  ;;  %872 = vmatmul.mubr.msk.bf16.gmra.mrb[20].mxu1 %vm315_vm2, %v975_v19 }
  0x75   : > { %457 = vmatprep.mubr.bf16.mxu0 %v1053_v0 }
  0x7c   : > { %866 = vmatmul.mubr.msk.bf16.gmra.mrb[24].mxu0 %vm315_vm2, %v976_v20 }
 0x11f   : > { %v399_v28 = vpop.f32.mrb[0].mxu0  ;;  %v469_v29 = vpop.f32.mrb[0].mxu1 }
 0x120   : > { %v400_v30 = vadd.f32 %v399_v28, %v1196_v26  ;;  %v401_v31 = vpop.f32.mrb[1].mxu0  ;;  %v470_v32 = vadd.f32 %v469_v29, %v1196_v26  ;;  %v471_v33 = vpop.f32.mrb[1].mxu1 }
 0x121   : > { %v402_v34 = vadd.f32 %v401_v31, %v1198_v27  ;;  %v403_v35 = vpop.f32.mrb[2].mxu0  ;;  %v472_v36 = vadd.f32 %v471_v33, %v1198_v27  ;;  %v473_v37 = vpop.f32.mrb[2].mxu1 }
 0x122   : > { %v526_v38 = vmax.f32 %v400_v30, 0.0  ;;  %v404_v39 = vadd.f32 %v403_v35, %v1196_v26  ;;  %v405_v40 = vpop.f32.mrb[3].mxu0  ;;  %v554_v41 = vmax.f32 %v470_v32, 0.0  ;;  %v474_v42 = vadd.f32 %v473_v37, %v1196_v26  ;;  %v475_v43 = vpop.f32.mrb[3].mxu1 }
 0x123   : > { %v527_v44 = vmax.f32 %v402_v34, 0.0  ;;  %v406_v45 = vadd.f32 %v405_v40, %v1198_v27  ;;  %v555_v46 = vmax.f32 %v472_v36, 0.0  ;;  %v476_v47 = vadd.f32 %v475_v43, %v1198_v27 }
 0x124   : > { %v528_v48 = vmax.f32 %v404_v39, 0.0  ;;  %v556_v49 = vmax.f32 %v474_v42, 0.0 }
 0x125   : > { %v901_v50 = vpack.c.bf16 %v527_v44, %v526_v38  ;;  %v529_v51 = vmax.f32 %v406_v45, 0.0  ;;  %v915_v52 = vpack.c.bf16 %v555_v46, %v554_v41  ;;  %v557_v53 = vmax.f32 %v476_v47, 0.0 }
 0x127   : > { %728 = vst [vmem:[%s1212_s25] sm:$0xff] %v901_v50  ;;  %v902_v54 = vpack.c.bf16 %v529_v51, %v528_v48  ;;  %v409_v55 = vpop.f32.mrb[4].mxu0  ;;  %742 = vst [vmem:[%s1212_s25 + $0x70] sm:$0xff] %v915_v52  ;;  %v916_v56 = vpack.c.bf16 %v557_v53, %v556_v49  ;;  %v479_v57 = vpop.f32.mrb[4].mxu1 }
 0x128   : > { %v410_v58 = vadd.f32 %v409_v55, %v1196_v26  ;;  %v411_v59 = vpop.f32.mrb[5].mxu0  ;;  %v480_v60 = vadd.f32 %v479_v57, %v1196_v26  ;;  %v481_v61 = vpop.f32.mrb[5].mxu1 }
 0x129   : > { %729 = vst [vmem:[%s1212_s25 + $0x8] sm:$0xff] %v902_v54  ;;  %v412_v62 = vadd.f32 %v411_v59, %v1198_v27  ;;  %v413_v63 = vpop.f32.mrb[6].mxu0  ;;  %743 = vst [vmem:[%s1212_s25 + $0x78] sm:$0xff] %v916_v56  ;;  %v482_v0 = vadd.f32 %v481_v61, %v1198_v27  ;;  %v483_v1 = vpop.f32.mrb[6].mxu1 }
 0x12a   : > { %v530_v2 = vmax.f32 %v410_v58, 0.0  ;;  %v414_v3 = vadd.f32 %v413_v63, %v1196_v26  ;;  %v415_v4 = vpop.f32.mrb[7].mxu0  ;;  %v558_v5 = vmax.f32 %v480_v60, 0.0  ;;  %v484_v6 = vadd.f32 %v483_v1, %v1196_v26  ;;  %v485_v7 = vpop.f32.mrb[7].mxu1 }
 0x12b   : > { %v531_v8 = vmax.f32 %v412_v62, 0.0  ;;  %v416_v9 = vadd.f32 %v415_v4, %v1198_v27  ;;  %v559_v10 = vmax.f32 %v482_v0, 0.0  ;;  %v486_v11 = vadd.f32 %v485_v7, %v1198_v27 }
 0x12c   : > { %v532_v12 = vmax.f32 %v414_v3, 0.0  ;;  %v560_v13 = vmax.f32 %v484_v6, 0.0 }
 0x12d   : > { %v903_v14 = vpack.c.bf16 %v531_v8, %v530_v2  ;;  %v533_v15 = vmax.f32 %v416_v9, 0.0  ;;  %v917_v16 = vpack.c.bf16 %v559_v10, %v558_v5  ;;  %v561_v17 = vmax.f32 %v486_v11, 0.0 }
 0x12f   : > { %730 = vst [vmem:[%s1212_s25 + $0x10] sm:$0xff] %v903_v14  ;;  %v904_v18 = vpack.c.bf16 %v533_v15, %v532_v12  ;;  %v419_v19 = vpop.f32.mrb[8].mxu0  ;;  %744 = vst [vmem:[%s1212_s25 + $0x80] sm:$0xff] %v917_v16  ;;  %v918_v20 = vpack.c.bf16 %v561_v17, %v560_v13  ;;  %v489_v21 = vpop.f32.mrb[8].mxu1 }
 0x130   : > { %v420_v22 = vadd.f32 %v419_v19, %v1196_v26  ;;  %v421_v23 = vpop.f32.mrb[9].mxu0  ;;  %v490_v24 = vadd.f32 %v489_v21, %v1196_v26  ;;  %v491_v25 = vpop.f32.mrb[9].mxu1 }
 0x131   : > { %731 = vst [vmem:[%s1212_s25 + $0x18] sm:$0xff] %v904_v18  ;;  %v422_v28 = vadd.f32 %v421_v23, %v1198_v27  ;;  %v423_v29 = vpop.f32.mrb[10].mxu0  ;;  %745 = vst [vmem:[%s1212_s25 + $0x88] sm:$0xff] %v918_v20  ;;  %v492_v30 = vadd.f32 %v491_v25, %v1198_v27  ;;  %v493_v31 = vpop.f32.mrb[10].mxu1 }
 0x132   : > { %v534_v32 = vmax.f32 %v420_v22, 0.0  ;;  %v424_v33 = vadd.f32 %v423_v29, %v1196_v26  ;;  %v425_v34 = vpop.f32.mrb[11].mxu0  ;;  %v562_v35 = vmax.f32 %v490_v24, 0.0  ;;  %v494_v36 = vadd.f32 %v493_v31, %v1196_v26  ;;  %v495_v37 = vpop.f32.mrb[11].mxu1 }
 0x133   : > { %v535_v38 = vmax.f32 %v422_v28, 0.0  ;;  %v426_v39 = vadd.f32 %v425_v34, %v1198_v27  ;;  %v563_v40 = vmax.f32 %v492_v30, 0.0  ;;  %v496_v41 = vadd.f32 %v495_v37, %v1198_v27 }
 0x134   : > { %v536_v42 = vmax.f32 %v424_v33, 0.0  ;;  %v564_v43 = vmax.f32 %v494_v36, 0.0 }
 0x135   : > { %v905_v44 = vpack.c.bf16 %v535_v38, %v534_v32  ;;  %v537_v45 = vmax.f32 %v426_v39, 0.0  ;;  %v919_v46 = vpack.c.bf16 %v563_v40, %v562_v35  ;;  %v565_v47 = vmax.f32 %v496_v41, 0.0 }
 0x137   : > { %732 = vst [vmem:[%s1212_s25 + $0x20] sm:$0xff] %v905_v44  ;;  %v906_v48 = vpack.c.bf16 %v537_v45, %v536_v42  ;;  %v429_v49 = vpop.f32.mrb[12].mxu0  ;;  %746 = vst [vmem:[%s1212_s25 + $0x90] sm:$0xff] %v919_v46  ;;  %v920_v50 = vpack.c.bf16 %v565_v47, %v564_v43  ;;  %v499_v51 = vpop.f32.mrb[12].mxu1 }
 0x138   : > { %v430_v52 = vadd.f32 %v429_v49, %v1196_v26  ;;  %v431_v53 = vpop.f32.mrb[13].mxu0  ;;  %v500_v54 = vadd.f32 %v499_v51, %v1196_v26  ;;  %v501_v55 = vpop.f32.mrb[13].mxu1 }
 0x139   : > { %733 = vst [vmem:[%s1212_s25 + $0x28] sm:$0xff] %v906_v48  ;;  %v432_v56 = vadd.f32 %v431_v53, %v1198_v27  ;;  %v433_v57 = vpop.f32.mrb[14].mxu0  ;;  %747 = vst [vmem:[%s1212_s25 + $0x98] sm:$0xff] %v920_v50  ;;  %v502_v58 = vadd.f32 %v501_v55, %v1198_v27  ;;  %v503_v59 = vpop.f32.mrb[14].mxu1 }
 0x13a   : > { %v538_v60 = vmax.f32 %v430_v52, 0.0  ;;  %v434_v61 = vadd.f32 %v433_v57, %v1196_v26  ;;  %v435_v62 = vpop.f32.mrb[15].mxu0  ;;  %v566_v63 = vmax.f32 %v500_v54, 0.0  ;;  %v504_v0 = vadd.f32 %v503_v59, %v1196_v26  ;;  %v505_v1 = vpop.f32.mrb[15].mxu1 }
 0x13b   : > { %v539_v2 = vmax.f32 %v432_v56, 0.0  ;;  %v436_v3 = vadd.f32 %v435_v62, %v1198_v27  ;;  %v567_v4 = vmax.f32 %v502_v58, 0.0  ;;  %v506_v5 = vadd.f32 %v505_v1, %v1198_v27 }
 0x13c   : > { %v540_v6 = vmax.f32 %v434_v61, 0.0  ;;  %v568_v7 = vmax.f32 %v504_v0, 0.0 }
 0x13d   : > { %v907_v8 = vpack.c.bf16 %v539_v2, %v538_v60  ;;  %v541_v9 = vmax.f32 %v436_v3, 0.0  ;;  %v921_v10 = vpack.c.bf16 %v567_v4, %v566_v63  ;;  %v569_v11 = vmax.f32 %v506_v5, 0.0 }
 0x13f   : > { %734 = vst [vmem:[%s1212_s25 + $0x30] sm:$0xff] %v907_v8  ;;  %v908_v12 = vpack.c.bf16 %v541_v9, %v540_v6  ;;  %v439_v13 = vpop.f32.mrb[16].mxu0  ;;  %748 = vst [vmem:[%s1212_s25 + $0xa0] sm:$0xff] %v921_v10  ;;  %v922_v14 = vpack.c.bf16 %v569_v11, %v568_v7  ;;  %v509_v15 = vpop.f32.mrb[16].mxu1 }
 0x140   : > { %v440_v16 = vadd.f32 %v439_v13, %v1196_v26  ;;  %v441_v17 = vpop.f32.mrb[17].mxu0  ;;  %v510_v18 = vadd.f32 %v509_v15, %v1196_v26  ;;  %v511_v19 = vpop.f32.mrb[17].mxu1 }
 0x141   : > { %735 = vst [vmem:[%s1212_s25 + $0x38] sm:$0xff] %v908_v12  ;;  %v442_v20 = vadd.f32 %v441_v17, %v1198_v27  ;;  %v443_v21 = vpop.f32.mrb[18].mxu0  ;;  %749 = vst [vmem:[%s1212_s25 + $0xa8] sm:$0xff] %v922_v14  ;;  %v512_v22 = vadd.f32 %v511_v19, %v1198_v27  ;;  %v513_v23 = vpop.f32.mrb[18].mxu1 }
 0x142   : > { %v542_v24 = vmax.f32 %v440_v16, 0.0  ;;  %v444_v25 = vadd.f32 %v443_v21, %v1196_v26  ;;  %v445_v28 = vpop.f32.mrb[19].mxu0  ;;  %v570_v29 = vmax.f32 %v510_v18, 0.0  ;;  %v514_v30 = vadd.f32 %v513_v23, %v1196_v26  ;;  %v515_v31 = vpop.f32.mrb[19].mxu1 }
 0x143   : > { %v543_v32 = vmax.f32 %v442_v20, 0.0  ;;  %v446_v33 = vadd.f32 %v445_v28, %v1198_v27  ;;  %v571_v34 = vmax.f32 %v512_v22, 0.0  ;;  %v516_v35 = vadd.f32 %v515_v31, %v1198_v27 }
 0x144   : > { %v544_v36 = vmax.f32 %v444_v25, 0.0  ;;  %v572_v37 = vmax.f32 %v514_v30, 0.0 }
 0x145   : > { %v909_v38 = vpack.c.bf16 %v543_v32, %v542_v24  ;;  %v545_v39 = vmax.f32 %v446_v33, 0.0  ;;  %v923_v40 = vpack.c.bf16 %v571_v34, %v570_v29  ;;  %v573_v41 = vmax.f32 %v516_v35, 0.0 }
 0x147   : > { %736 = vst [vmem:[%s1212_s25 + $0x40] sm:$0xff] %v909_v38  ;;  %v910_v42 = vpack.c.bf16 %v545_v39, %v544_v36  ;;  %v449_v43 = vpop.f32.mrb[20].mxu0  ;;  %750 = vst [vmem:[%s1212_s25 + $0xb0] sm:$0xff] %v923_v40  ;;  %v924_v44 = vpack.c.bf16 %v573_v41, %v572_v37  ;;  %v519_v45 = vpop.f32.mrb[20].mxu1 }
 0x148   : > { %v450_v46 = vadd.f32 %v449_v43, %v1196_v26  ;;  %v451_v47 = vpop.f32.mrb[21].mxu0  ;;  %v520_v48 = vadd.f32 %v519_v45, %v1196_v26  ;;  %v521_v49 = vpop.f32.mrb[21].mxu1 }
 0x149   : > { %737 = vst [vmem:[%s1212_s25 + $0x48] sm:$0xff] %v910_v42  ;;  %v452_v50 = vadd.f32 %v451_v47, %v1198_v27  ;;  %v453_v51 = vpop.f32.mrb[22].mxu0  ;;  %751 = vst [vmem:[%s1212_s25 + $0xb8] sm:$0xff] %v924_v44  ;;  %v522_v52 = vadd.f32 %v521_v49, %v1198_v27  ;;  %v523_v53 = vpop.f32.mrb[22].mxu1 }
 0x14a   : > { %v546_v54 = vmax.f32 %v450_v46, 0.0  ;;  %v454_v55 = vadd.f32 %v453_v51, %v1196_v26  ;;  %v455_v56 = vpop.f32.mrb[23].mxu0  ;;  %v574_v57 = vmax.f32 %v520_v48, 0.0  ;;  %v524_v58 = vpop.f32.mrb[23].mxu1 }
 0x14b   : > { %v547_v59 = vmax.f32 %v452_v50, 0.0  ;;  %v456_v60 = vadd.f32 %v455_v56, %v1198_v27  ;;  %v575_v61 = vmax.f32 %v522_v52, 0.0 }
 0x14c   : > { %v548_v62 = vmax.f32 %v454_v55, 0.0 }
 0x14d   : > { %v911_v63 = vpack.c.bf16 %v547_v59, %v546_v54  ;;  %v549_v0 = vmax.f32 %v456_v60, 0.0  ;;  %v925_v1 = vpack.c.bf16 %v575_v61, %v574_v57 }
 0x14f   : > { %738 = vst [vmem:[%s1212_s25 + $0x50] sm:$0xff] %v911_v63  ;;  %v912_v2 = vpack.c.bf16 %v549_v0, %v548_v62  ;;  %v459_v3 = vpop.f32.mrb[24].mxu0  ;;  %752 = vst [vmem:[%s1212_s25 + $0xc0] sm:$0xff] %v925_v1 }
 0x150   : > { %v460_v4 = vadd.f32 %v459_v3, %v1196_v26  ;;  %v461_v5 = vpop.f32.mrb[25].mxu0 }
 0x151   : > { %739 = vst [vmem:[%s1212_s25 + $0x58] sm:$0xff] %v912_v2  ;;  %v462_v6 = vadd.f32 %v461_v5, %v1198_v27  ;;  %v463_v7 = vpop.f32.mrb[26].mxu0 }
 0x152   : > { %v550_v8 = vmax.f32 %v460_v4, 0.0  ;;  %v464_v9 = vadd.f32 %v463_v7, %v1196_v26  ;;  %v465_v10 = vpop.f32.mrb[27].mxu0 }
 0x153   : > { %v551_v11 = vmax.f32 %v462_v6, 0.0  ;;  %v466_v12 = vadd.f32 %v465_v10, %v1198_v27 }
 0x154   : > { %v552_v13 = vmax.f32 %v464_v9, 0.0 }
 0x155   : > { %v913_v14 = vpack.c.bf16 %v551_v11, %v550_v8  ;;  %v553_v15 = vmax.f32 %v466_v12, 0.0 }
 0x157   : > { %740 = vst [vmem:[%s1212_s25 + $0x60] sm:$0xff] %v913_v14  ;;  %v914_v16 = vpack.c.bf16 %v553_v15, %v552_v13 }
 0x159   : > { %741 = vst [vmem:[%s1212_s25 + $0x68] sm:$0xff] %v914_v16 }
 0x15a PF: > { %s15_s12 = sadd.s32 1, %s1047_s12  }
 0x15b   : > { %p12_p7 = scmp.ge.s32.totalorder %s15_s12, 4  }
 0x15d   :  { %14 = sbr.rel (!%p12_p7) target bundleno = 2 (0x2), region = 71 }
 0x164   :  { %777 = vsyncpa [#allocation3], 1 }
 0x165   :  { %779 = vsyncpa [#allocation3 + $0x1], 1 }
 0x166   :  { %780 = vsyncpa [#allocation5], 1 }

// kernel: mnist_encoder_forward.5
= control target key start
LH: loop header
LB: loop body
LE: loop exit
PB: predicated region body
PF: predicated region fallthrough
CT: control target
= control target key end

     0   :  { %s4200_s12 = smov 0   ;;  %s5194_s0 = inlined_call_operand.vmem [shape: bf16[112,2304], index: 0, kind: input, shape index: {}]   ;;  %s5195_s1 = inlined_call_operand.vmem [shape: bf16[2304,256], index: 1, kind: input, shape index: {}]   ;;  %s5196_s2 = inlined_call_operand.vmem [shape: f32[1,256], index: 2, kind: input, shape index: {}]   ;;  %s5197_s3 = inlined_call_operand.vmem [shape: bf16[112,256], index: 3, kind: output, shape index: {}]  }
   0x1 LB: > { %s3077_s13 = sadd.s32 4294967295, %s4178_s12   ;;  %p3081_p0 = scmp.ge.s32.totalorder %s4178_s12, 1  ;;  %s4178_s12 = sphi %s4200_s12, %s13_s12  }
   0x2   : > { %p139_p1 = scmp.lt.s32.totalorder %s4178_s12, 3 }
   0x4   : > { %p140_p2 = pnand %p3081_p0, %p139_p1 }
   0x5   : > { %v3641_v0 = vld [vmem:[%s5195_s1 + $0x4] ss:$8 sps:$4 sm:$0xff] (!%p140_p2)   ;;  %v3645_v2 = vld [vmem:[%s5195_s1] ss:$8 sps:$4 sm:$0xff] (!%p140_p2)   ;;  %v3647_v4 = vld [vmem:[%s5195_s1 + $0x14] ss:$8 sps:$4 sm:$0xff] (!%p140_p2)  }
   0x6   : > { %143 = sbr.rel (%p140_p2) target bundleno = 557 (0x22d), region = 32  ;;  %v3643_v1 = vld [vmem:[%s5195_s1 + $0x404] ss:$8 sps:$4 sm:$0xff] (!%p140_p2)   ;;  %2315 = vmatprep.subr.bf16.mxu1 (!%p140_p2), %v3641_v0  ;;  %v3646_v3 = vld [vmem:[%s5195_s1 + $0x400] ss:$8 sps:$4 sm:$0xff] (!%p140_p2)  }
   0x7   : > { %2599 = vmatprep.subr.bf16.mxu0 (!%p140_p2), %v3643_v1  ;;  %2316 = vmatpush1.bf16.msra.mxu1 (!%p140_p2), %v3645_v2  ;;  %v3649_v5 = vld [vmem:[%s5195_s1 + $0x414] ss:$8 sps:$4 sm:$0xff] (!%p140_p2)   ;;  %v3651_v6 = vld [vmem:[%s5195_s1 + $0x10] ss:$8 sps:$4 sm:$0xff] (!%p140_p2)   ;;  %v3653_v8 = vld [vmem:[%s5195_s1 + $0x24] ss:$8 sps:$4 sm:$0xff] (!%p140_p2)  }
   0x8   : > { %2600 = vmatpush1.bf16.msra.mxu0 (!%p140_p2), %v3646_v3  ;;  %2317 = vmatprep.subr.bf16.mxu1 (!%p140_p2), %v3647_v4  ;;  %v3652_v7 = vld [vmem:[%s5195_s1 + $0x410] ss:$8 sps:$4 sm:$0xff] (!%p140_p2)   ;;  %v3655_v9 = vld [vmem:[%s5195_s1 + $0x424] ss:$8 sps:$4 sm:$0xff] (!%p140_p2)   ;;  %v3657_v10 = vld [vmem:[%s5195_s1 + $0x20] ss:$8 sps:$4 sm:$0xff] (!%p140_p2)  }
   0x9   : > { %2601 = vmatprep.subr.bf16.mxu0 (!%p140_p2), %v3649_v5  ;;  %v3658_v11 = vld [vmem:[%s5195_s1 + $0x420] ss:$8 sps:$4 sm:$0xff] (!%p140_p2)   ;;  %v3659_v12 = vld [vmem:[%s5195_s1 + $0x34] ss:$8 sps:$4 sm:$0xff] (!%p140_p2)   ;;  %v3663_v14 = vld [vmem:[%s5195_s1 + $0x30] ss:$8 sps:$4 sm:$0xff] (!%p140_p2)  }
   0xa   : > { %v3661_v13 = vld [vmem:[%s5195_s1 + $0x434] ss:$8 sps:$4 sm:$0xff] (!%p140_p2)   ;;  %v3664_v15 = vld [vmem:[%s5195_s1 + $0x430] ss:$8 sps:$4 sm:$0xff] (!%p140_p2)   ;;  %v3665_v16 = vld [vmem:[%s5195_s1 + $0x44] ss:$8 sps:$4 sm:$0xff] (!%p140_p2)  }
   0xb   : > { %2318 = vmatpush1.bf16.msra.mxu1 (!%p140_p2), %v3651_v6  ;;  %v3667_v17 = vld [vmem:[%s5195_s1 + $0x444] ss:$8 sps:$4 sm:$0xff] (!%p140_p2)   ;;  %v3669_v18 = vld [vmem:[%s5195_s1 + $0x40] ss:$8 sps:$4 sm:$0xff] (!%p140_p2)   ;;  %v3671_v20 = vld [vmem:[%s5195_s1 + $0x54] ss:$8 sps:$4 sm:$0xff] (!%p140_p2)  }
   0xc   : > { %2602 = vmatpush1.bf16.msra.mxu0 (!%p140_p2), %v3652_v7  ;;  %2319 = vmatprep.subr.bf16.mxu1 (!%p140_p2), %v3653_v8  ;;  %v3670_v19 = vld [vmem:[%s5195_s1 + $0x440] ss:$8 sps:$4 sm:$0xff] (!%p140_p2)   ;;  %v3673_v21 = vld [vmem:[%s5195_s1 + $0x454] ss:$8 sps:$4 sm:$0xff] (!%p140_p2)   ;;  %v3675_v22 = vld [vmem:[%s5195_s1 + $0x50] ss:$8 sps:$4 sm:$0xff] (!%p140_p2)  }
   0xd   : > { %2603 = vmatprep.subr.bf16.mxu0 %v3655_v9  ;;  %v3676_v23 = vld [vmem:[%s5195_s1 + $0x450] ss:$8 sps:$4 sm:$0xff]   ;;  %v3677_v24 = vld [vmem:[%s5195_s1 + $0x64] ss:$8 sps:$4 sm:$0xff]   ;;  %v3681_v26 = vld [vmem:[%s5195_s1 + $0x60] ss:$8 sps:$4 sm:$0xff]  }
   0xe   : > { %v3679_v25 = vld [vmem:[%s5195_s1 + $0x464] ss:$8 sps:$4 sm:$0xff]   ;;  %v3682_v27 = vld [vmem:[%s5195_s1 + $0x460] ss:$8 sps:$4 sm:$0xff]   ;;  %v3683_v28 = vld [vmem:[%s5195_s1 + $0x74] ss:$8 sps:$4 sm:$0xff]  }
   0xf   : > { %2320 = vmatpush1.bf16.msra.mxu1 %v3657_v10  ;;  %s165_s22 = smul.u32 7, %s3077_s13  ;;  %v3685_v29 = vld [vmem:[%s5195_s1 + $0x474] ss:$8 sps:$4 sm:$0xff]   ;;  %v3687_v30 = vld [vmem:[%s5195_s1 + $0x70] ss:$8 sps:$4 sm:$0xff]  }
  0x10   : > { %2604 = vmatpush1.bf16.msra.mxu0 %v3658_v11  ;;  %2321 = vmatprep.subr.bf16.mxu1 %v3659_v12  ;;  %v3688_v31 = vld [vmem:[%s5195_s1 + $0x470] ss:$8 sps:$4 sm:$0xff]   ;;  %v3689_v32 = vld [vmem:[%s5195_s1 + $0x84] ss:$8 sps:$4 sm:$0xff]   ;;  %v3693_v34 = vld [vmem:[%s5195_s1 + $0x80] ss:$8 sps:$4 sm:$0xff]  }
  0x11   : > { %2605 = vmatprep.subr.bf16.mxu0 %v3661_v13  ;;  %p166_p3 = scmp.lt.s32.totalorder %s165_s22, 13  ;;  %v3691_v33 = vld [vmem:[%s5195_s1 + $0x484] ss:$8 sps:$4 sm:$0xff]   ;;  %v3694_v35 = vld [vmem:[%s5195_s1 + $0x480] ss:$8 sps:$4 sm:$0xff]  }
  0x12   : > { %v3695_v36 = vld [vmem:[%s5195_s1 + $0x94] ss:$8 sps:$4 sm:$0xff]   ;;  %v3699_v38 = vld [vmem:[%s5195_s1 + $0x90] ss:$8 sps:$4 sm:$0xff]   ;;  %v3701_v40 = vld [vmem:[%s5195_s1 + $0xa4] ss:$8 sps:$4 sm:$0xff]  }
  0x13   : > { %2322 = vmatpush1.bf16.msra.mxu1 %v3663_v14  ;;  %s5199_s22 = smov (!%p166_p3, %s165_s22), 13  ;;  %v3697_v37 = vld [vmem:[%s5195_s1 + $0x494] ss:$8 sps:$4 sm:$0xff]   ;;  %v3700_v39 = vld [vmem:[%s5195_s1 + $0x490] ss:$8 sps:$4 sm:$0xff]  }
  0x14   : > { %2606 = vmatpush1.bf16.msra.mxu0 %v3664_v15  ;;  %2323 = vmatprep.subr.bf16.mxu1 %v3665_v16  ;;  %s3632_s21 = smul.u32 72, %s5199_s22  ;;  %v3703_v41 = vld [vmem:[%s5195_s1 + $0x4a4] ss:$8 sps:$4 sm:$0xff]   ;;  %v3705_v42 = vld [vmem:[%s5195_s1 + $0xa0] ss:$8 sps:$4 sm:$0xff]   ;;  %s3454_s15 = sshll.u32 %s5199_s22, 3 }
  0x15   : > { %2607 = vmatprep.subr.bf16.mxu0 %v3667_v17  ;;  %v3706_v43 = vld [vmem:[%s5195_s1 + $0x4a0] ss:$8 sps:$4 sm:$0xff]   ;;  %v3707_v44 = vld [vmem:[%s5195_s1 + $0xb4] ss:$8 sps:$4 sm:$0xff]   ;;  %v3711_v46 = vld [vmem:[%s5195_s1 + $0xb0] ss:$8 sps:$4 sm:$0xff]   ;;  %s5174_s18 = scalar_lea.vmem %s5197_s3, %s3454_s15 }
  0x16   : > { %s4351_s5 = scalar_lea.vmem %s5194_s0, %s3632_s21  ;;  %v3709_v45 = vld [vmem:[%s5195_s1 + $0x4b4] ss:$8 sps:$4 sm:$0xff]   ;;  %v3712_v47 = vld [vmem:[%s5195_s1 + $0x4b0] ss:$8 sps:$4 sm:$0xff]   ;;  %v3713_v49 = vld [vmem:[%s5195_s1 + $0xc4] ss:$8 sps:$4 sm:$0xff]  }
  0x17   : > { %2324 = vmatpush1.bf16.msra.mxu1 %v3669_v18  ;;  %v3739_v48 = vld [vmem:[%s4351_s5 + $0x4] ss:$72 sps:$4 sm:$0xff]   ;;  %v3717_v52 = vld [vmem:[%s5195_s1 + $0xc0] ss:$8 sps:$4 sm:$0xff]   ;;  %v3719_v54 = vld [vmem:[%s5195_s1 + $0xd4] ss:$8 sps:$4 sm:$0xff]  }
  0x18   : > { %2608 = vmatpush1.bf16.msra.mxu0 %v3670_v19  ;;  %2325 = vmatprep.subr.bf16.mxu1 %v3671_v20  ;;  %v3715_v50 = vld [vmem:[%s5195_s1 + $0x4c4] ss:$8 sps:$4 sm:$0xff]   ;;  %v3718_v53 = vld [vmem:[%s5195_s1 + $0x4c0] ss:$8 sps:$4 sm:$0xff]   ;;  %v3721_v55 = vld [vmem:[%s5195_s1 + $0x4d4] ss:$8 sps:$4 sm:$0xff]  }
  0x19   : > { %2609 = vmatprep.subr.bf16.mxu0 %v3673_v21  ;;  %2347 = vmatprep.mubr.bf16.mxu1 %v3739_v48  ;;  %v3745_v51 = vld [vmem:[%s4351_s5 + $0x24] ss:$72 sps:$4 sm:$0xff]   ;;  %v3723_v56 = vld [vmem:[%s5195_s1 + $0xd0] ss:$8 sps:$4 sm:$0xff]   ;;  %v3729_v60 = vld [vmem:[%s5195_s1 + $0xe0] ss:$8 sps:$4 sm:$0xff]  }
  0x1a   : > { %2631 = vmatprep.mubr.bf16.mxu0 %v3745_v51  ;;  %v3724_v57 = vld [vmem:[%s5195_s1 + $0x4d0] ss:$8 sps:$4 sm:$0xff]   ;;  %v3725_v58 = vld [vmem:[%s5195_s1 + $0xe4] ss:$8 sps:$4 sm:$0xff]   ;;  %v3730_v61 = vld [vmem:[%s5195_s1 + $0x4e0] ss:$8 sps:$4 sm:$0xff]  }
  0x1b   : > { %2326 = vmatpush1.bf16.msra.mxu1 %v3675_v22  ;;  %v3727_v59 = vld [vmem:[%s5195_s1 + $0x4e4] ss:$8 sps:$4 sm:$0xff]   ;;  %v3731_v62 = vld [vmem:[%s5195_s1 + $0xf4] ss:$8 sps:$4 sm:$0xff]   ;;  %v3735_v0 = vld [vmem:[%s5195_s1 + $0xf0] ss:$8 sps:$4 sm:$0xff]  }
  0x1c   : > { %2610 = vmatpush1.bf16.msra.mxu0 %v3676_v23  ;;  %2327 = vmatprep.subr.bf16.mxu1 %v3677_v24  ;;  %v3733_v63 = vld [vmem:[%s5195_s1 + $0x4f4] ss:$8 sps:$4 sm:$0xff]   ;;  %v3736_v1 = vld [vmem:[%s5195_s1 + $0x4f0] ss:$8 sps:$4 sm:$0xff]   ;;  %v3742_v2 = vld [vmem:[%s5195_s1 + $0x104] ss:$8 sps:$4 sm:$0xff]  }
  0x1d   : > { %2611 = vmatprep.subr.bf16.mxu0 %v3679_v25  ;;  %v3748_v3 = vld [vmem:[%s5195_s1 + $0x504] ss:$8 sps:$4 sm:$0xff]   ;;  %v3737_v4 = vld [vmem:[%s4351_s5] ss:$72 sps:$4 sm:$0xff]   ;;  %v3751_v8 = vld [vmem:[%s5195_s1 + $0x114] ss:$8 sps:$4 sm:$0xff]  }
  0x1e   : > { %v3740_v5 = vld [vmem:[%s5195_s1 + $0x100] ss:$8 sps:$4 sm:$0xff]   ;;  %v3754_v9 = vld [vmem:[%s5195_s1 + $0x514] ss:$8 sps:$4 sm:$0xff]   ;;  %v3749_v10 = vld [vmem:[%s5195_s1 + $0x110] ss:$8 sps:$4 sm:$0xff]  }
  0x1f   : > { %2328 = vmatpush1.bf16.msra.mxu1 %v3681_v26  ;;  %v3743_v6 = vld [vmem:[%s4351_s5 + $0x20] ss:$72 sps:$4 sm:$0xff]   ;;  %v3752_v11 = vld [vmem:[%s5195_s1 + $0x510] ss:$8 sps:$4 sm:$0xff]   ;;  %v3757_v12 = vld [vmem:[%s5195_s1 + $0x124] ss:$8 sps:$4 sm:$0xff]  }
  0x20   : > { %2612 = vmatpush1.bf16.msra.mxu0 %v3682_v27  ;;  %2329 = vmatprep.subr.bf16.mxu1 %v3683_v28  ;;  %v3746_v7 = vld [vmem:[%s5195_s1 + $0x500] ss:$8 sps:$4 sm:$0xff]   ;;  %v3760_v13 = vld [vmem:[%s5195_s1 + $0x524] ss:$8 sps:$4 sm:$0xff]   ;;  %v3763_v16 = vld [vmem:[%s5195_s1 + $0x134] ss:$8 sps:$4 sm:$0xff]  }
  0x21   : > { %2613 = vmatprep.subr.bf16.mxu0 %v3685_v29  ;;  %v3755_v14 = vld [vmem:[%s5195_s1 + $0x120] ss:$8 sps:$4 sm:$0xff]   ;;  %v3803_v17 = vld [vmem:[%s4351_s5 + $0x94] ss:$72 sps:$4 sm:$0xff]   ;;  %v3761_v19 = vld [vmem:[%s5195_s1 + $0x130] ss:$8 sps:$4 sm:$0xff]  }
  0x22   : > { %v3758_v15 = vld [vmem:[%s5195_s1 + $0x520] ss:$8 sps:$4 sm:$0xff]   ;;  %v3766_v18 = vld [vmem:[%s5195_s1 + $0x534] ss:$8 sps:$4 sm:$0xff]   ;;  %v3764_v20 = vld [vmem:[%s5195_s1 + $0x530] ss:$8 sps:$4 sm:$0xff]  }
  0x23   : > { %2330 = vmatpush1.bf16.msra.mxu1 %v3687_v30  ;;  %v3808_v21 = vld [vmem:[%s4351_s5 + $0xb4] ss:$72 sps:$4 sm:$0xff]   ;;  %v3769_v22 = vld [vmem:[%s5195_s1 + $0x144] ss:$8 sps:$4 sm:$0xff]   ;;  %v3813_v24 = vld [vmem:[%s4351_s5 + $0x90] ss:$72 sps:$4 sm:$0xff]  }
  0x24   : > { %2614 = vmatpush1.bf16.msra.mxu0 %v3688_v31  ;;  %2331 = vmatprep.subr.bf16.mxu1 %v3689_v32  ;;  %v3772_v23 = vld [vmem:[%s5195_s1 + $0x544] ss:$8 sps:$4 sm:$0xff]   ;;  %v3814_v25 = vld [vmem:[%s4351_s5 + $0xb0] ss:$72 sps:$4 sm:$0xff]   ;;  %v3767_v26 = vld [vmem:[%s5195_s1 + $0x140] ss:$8 sps:$4 sm:$0xff]  }
  0x25   : > { %2615 = vmatprep.subr.bf16.mxu0 %v3691_v33  ;;  %v3770_v27 = vld [vmem:[%s5195_s1 + $0x540] ss:$8 sps:$4 sm:$0xff]   ;;  %v3775_v28 = vld [vmem:[%s5195_s1 + $0x154] ss:$8 sps:$4 sm:$0xff]   ;;  %v3821_v29 = vld [vmem:[%s4351_s5 + $0x124] ss:$72 sps:$4 sm:$0xff]  }
  0x26   : > { %v3778_v30 = vld [vmem:[%s5195_s1 + $0x554] ss:$8 sps:$4 sm:$0xff]   ;;  %v3773_v31 = vld [vmem:[%s5195_s1 + $0x150] ss:$8 sps:$4 sm:$0xff]   ;;  %v3826_v33 = vld [vmem:[%s4351_s5 + $0x144] ss:$72 sps:$4 sm:$0xff]  }
  0x27   : > { %2332 = vmatpush1.bf16.msra.mxu1 %v3693_v34  ;;  %v3776_v32 = vld [vmem:[%s5195_s1 + $0x550] ss:$8 sps:$4 sm:$0xff]   ;;  %v3781_v34 = vld [vmem:[%s5195_s1 + $0x164] ss:$8 sps:$4 sm:$0xff]  }
  0x28   : > { %2616 = vmatpush1.bf16.msra.mxu0 %v3694_v35  ;;  %2333 = vmatprep.subr.bf16.mxu1 %v3695_v36  ;;  %v3784_v35 = vld [vmem:[%s5195_s1 + $0x564] ss:$8 sps:$4 sm:$0xff]   ;;  %v3831_v36 = vld [vmem:[%s4351_s5 + $0x120] ss:$72 sps:$4 sm:$0xff]   ;;  %v3785_v48 = vld [vmem:[%s5195_s1 + $0x170] ss:$8 sps:$4 sm:$0xff]  }
  0x29   : > { %2617 = vmatprep.subr.bf16.mxu0 %v3697_v37  ;;  %v3832_v37 = vld [vmem:[%s4351_s5 + $0x140] ss:$72 sps:$4 sm:$0xff]   ;;  %v3796_v51 = vld [vmem:[%s5195_s1 + $0x584] ss:$8 sps:$4 sm:$0xff]  }
  0x2b   : > { %2334 = vmatpush1.bf16.msra.mxu1 %v3699_v38  ;;  %v3779_v38 = vld [vmem:[%s5195_s1 + $0x160] ss:$8 sps:$4 sm:$0xff]  }
  0x2c   : > { %2618 = vmatpush1.bf16.msra.mxu0 %v3700_v39  ;;  %2335 = vmatprep.subr.bf16.mxu1 %v3701_v40  ;;  %v3782_v39 = vld [vmem:[%s5195_s1 + $0x560] ss:$8 sps:$4 sm:$0xff]   ;;  %v233_v40 = vld [vmem:[%s4351_s5 + $0x1b0] sm:$0xff] }
  0x2d   : > { %2619 = vmatprep.subr.bf16.mxu0 %v3703_v41  ;;  %v3787_v41 = vld [vmem:[%s5195_s1 + $0x174] ss:$8 sps:$4 sm:$0xff]  }
  0x2f   : > { %2336 = vmatpush1.bf16.msra.mxu1 %v3705_v42  ;;  %v3790_v42 = vld [vmem:[%s5195_s1 + $0x574] ss:$8 sps:$4 sm:$0xff]  }
  0x30   : > { %2620 = vmatpush1.bf16.msra.mxu0 %v3706_v43  ;;  %2337 = vmatprep.subr.bf16.mxu1 %v3707_v44  ;;  %v3140_v43 = vcombine.high %v233_v40, %v233_v40  ;;  %v237_v44 = vld [vmem:[%s4351_s5 + $0x1d0] sm:$0xff] }
  0x31   : > { %2621 = vmatprep.subr.bf16.mxu0 %v3709_v45  ;;  %v3148_v45 = vcombine.high %v237_v44, %v237_v44 }
  0x33   : > { %2338 = vmatpush1.bf16.msra.mxu1 %v3711_v46  ;;  %v3139_v46 = vcombine.low %v233_v40, %v233_v40  ;;  %v3939_v40 = vld [vmem:[%s4351_s5 + $0x12c] ss:$72 sps:$4 sm:$0xff]  }
  0x34   : > { %2622 = vmatpush1.bf16.msra.mxu0 %v3712_v47  ;;  %2339 = vmatprep.subr.bf16.mxu1 %v3713_v49  ;;  %v3147_v47 = vcombine.low %v237_v44, %v237_v44  ;;  %v3788_v49 = vld [vmem:[%s5195_s1 + $0x570] ss:$8 sps:$4 sm:$0xff]   ;;  %v3887_v44 = vld [vmem:[%s5195_s1 + $0x244] ss:$8 sps:$4 sm:$0xff]  }
  0x35   : > { %2623 = vmatprep.subr.bf16.mxu0 %v3715_v50  ;;  %v3793_v50 = vld [vmem:[%s5195_s1 + $0x184] ss:$8 sps:$4 sm:$0xff]  }
  0x37   : > { %2340 = vmatpush1.bf16.msra.mxu1 %v3717_v52  ;;  %v3791_v52 = vld [vmem:[%s5195_s1 + $0x180] ss:$8 sps:$4 sm:$0xff]  }
  0x38   : > { %2624 = vmatpush1.bf16.msra.mxu0 %v3718_v53  ;;  %2341 = vmatprep.subr.bf16.mxu1 %v3719_v54  ;;  %v3857_v53 = vld [vmem:[%s4351_s5 + $0xc] ss:$72 sps:$4 sm:$0xff]   ;;  %v3794_v54 = vld [vmem:[%s5195_s1 + $0x580] ss:$8 sps:$4 sm:$0xff]  }
  0x39   : > { %2625 = vmatprep.subr.bf16.mxu0 %v3721_v55  ;;  %v3799_v55 = vld [vmem:[%s5195_s1 + $0x194] ss:$8 sps:$4 sm:$0xff]  }
  0x3b   : > { %2342 = vmatpush1.bf16.msra.mxu1 %v3723_v56  ;;  %v3802_v56 = vld [vmem:[%s5195_s1 + $0x594] ss:$8 sps:$4 sm:$0xff]  }
  0x3c   : > { %2626 = vmatpush1.bf16.msra.mxu0 %v3724_v57  ;;  %2343 = vmatprep.subr.bf16.mxu1 %v3725_v58  ;;  %v3863_v57 = vld [vmem:[%s4351_s5 + $0x2c] ss:$72 sps:$4 sm:$0xff]   ;;  %v3797_v58 = vld [vmem:[%s5195_s1 + $0x190] ss:$8 sps:$4 sm:$0xff]  }
  0x3d   : > { %2627 = vmatprep.subr.bf16.mxu0 %v3727_v59  ;;  %v3800_v59 = vld [vmem:[%s5195_s1 + $0x590] ss:$8 sps:$4 sm:$0xff]  }
  0x3f   : > { %2344 = vmatpush1.bf16.msra.mxu1 %v3729_v60  ;;  %v3807_v60 = vld [vmem:[%s5195_s1 + $0x1a4] ss:$8 sps:$4 sm:$0xff]  }
  0x40   : > { %2628 = vmatpush1.bf16.msra.mxu0 %v3730_v61  ;;  %2345 = vmatprep.subr.bf16.mxu1 %v3731_v62  ;;  %v3812_v61 = vld [vmem:[%s5195_s1 + $0x5a4] ss:$8 sps:$4 sm:$0xff]   ;;  %v3805_v62 = vld [vmem:[%s5195_s1 + $0x1a0] ss:$8 sps:$4 sm:$0xff]  }
  0x41   : > { %2629 = vmatprep.subr.bf16.mxu0 %v3733_v63  ;;  %v3810_v63 = vld [vmem:[%s5195_s1 + $0x5a0] ss:$8 sps:$4 sm:$0xff]  }
  0x43   : > { %2346 = vmatpush1.bf16.msra.mxu1 %v3735_v0  ;;  %v3817_v0 = vld [vmem:[%s5195_s1 + $0x1b4] ss:$8 sps:$4 sm:$0xff]  }
  0x44   : > { %2630 = vmatpush1.bf16.msra.mxu0 %v3736_v1  ;;  %2386 = vmatprep.subr.bf16.mxu1 %v3742_v2  ;;  %v3820_v1 = vld [vmem:[%s5195_s1 + $0x5b4] ss:$8 sps:$4 sm:$0xff]   ;;  %v3815_v2 = vld [vmem:[%s5195_s1 + $0x1b0] ss:$8 sps:$4 sm:$0xff]  }
  0x45   : > { %2670 = vmatprep.subr.bf16.mxu0 %v3748_v3  ;;  %v3818_v3 = vld [vmem:[%s5195_s1 + $0x5b0] ss:$8 sps:$4 sm:$0xff]  }
  0x46   : > { %2348 = vmatmul.mubr.bf16.vlgmr.msra.gmra.mrb[0].mxu1 %v3737_v4  ;;  %v3825_v4 = vld [vmem:[%s5195_s1 + $0x1c4] ss:$8 sps:$4 sm:$0xff]  }
  0x47   : > { %2632 = vmatmul.mubr.bf16.vlgmr.msra.gmra.mrb[0].mxu0 %v3743_v6  ;;  %2387 = vmatpush1.bf16.msra.mxu1 %v3740_v5  ;;  %v3830_v5 = vld [vmem:[%s5195_s1 + $0x5c4] ss:$8 sps:$4 sm:$0xff]   ;;  %v3823_v6 = vld [vmem:[%s5195_s1 + $0x1c0] ss:$8 sps:$4 sm:$0xff]  }
  0x48   : > { %2671 = vmatpush1.bf16.msra.mxu0 %v3746_v7  ;;  %2388 = vmatprep.subr.bf16.mxu1 %v3751_v8  ;;  %v3828_v7 = vld [vmem:[%s5195_s1 + $0x5c0] ss:$8 sps:$4 sm:$0xff]   ;;  %v3835_v8 = vld [vmem:[%s5195_s1 + $0x1d4] ss:$8 sps:$4 sm:$0xff]  }
  0x49   : > { %2672 = vmatprep.subr.bf16.mxu0 %v3754_v9  ;;  %2357 = vmatprep.mubr.bf16.mxu1 %v3803_v17  ;;  %v3838_v9 = vld [vmem:[%s5195_s1 + $0x5d4] ss:$8 sps:$4 sm:$0xff]  }
  0x4a   : > { %2641 = vmatprep.mubr.bf16.mxu0 %v3808_v21  ;;  %v3854_v17 = vld [vmem:[%s5195_s1 + $0x5f4] ss:$8 sps:$4 sm:$0xff]   ;;  %v3866_v21 = vld [vmem:[%s5195_s1 + $0x604] ss:$8 sps:$4 sm:$0xff]  }
  0x4b   : > { %2389 = vmatpush1.bf16.msra.mxu1 %v3749_v10  ;;  %v3833_v10 = vld [vmem:[%s5195_s1 + $0x1d0] ss:$8 sps:$4 sm:$0xff]  }
  0x4c   : > { %2673 = vmatpush1.bf16.msra.mxu0 %v3752_v11  ;;  %2390 = vmatprep.subr.bf16.mxu1 %v3757_v12  ;;  %v3836_v11 = vld [vmem:[%s5195_s1 + $0x5d0] ss:$8 sps:$4 sm:$0xff]   ;;  %v3842_v12 = vld [vmem:[%s5195_s1 + $0x1e4] ss:$8 sps:$4 sm:$0xff]  }
  0x4d   : > { %2674 = vmatprep.subr.bf16.mxu0 %v3760_v13  ;;  %v3846_v13 = vld [vmem:[%s5195_s1 + $0x5e4] ss:$8 sps:$4 sm:$0xff]  }
  0x4e   : > { %2358 = vmatmul.mubr.bf16.gmra.mrb[4].mxu1 %v3813_v24  ;;  %v3861_v24 = vld [vmem:[%s4351_s5 + $0x28] ss:$72 sps:$4 sm:$0xff]  }
  0x4f   : > { %2391 = vmatpush1.bf16.msra.mxu1 %v3755_v14  ;;  %2642 = vmatmul.mubr.bf16.gmra.mrb[4].mxu0 %v3814_v25  ;;  %v3840_v14 = vld [vmem:[%s5195_s1 + $0x1e0] ss:$8 sps:$4 sm:$0xff]  }
  0x50   : > { %2675 = vmatpush1.bf16.msra.mxu0 %v3758_v15  ;;  %2392 = vmatprep.subr.bf16.mxu1 %v3763_v16  ;;  %v3844_v15 = vld [vmem:[%s5195_s1 + $0x5e0] ss:$8 sps:$4 sm:$0xff]   ;;  %v3851_v16 = vld [vmem:[%s5195_s1 + $0x1f4] ss:$8 sps:$4 sm:$0xff]  }
  0x51   : > { %2676 = vmatprep.subr.bf16.mxu0 %v3766_v18  ;;  %2367 = vmatprep.mubr.bf16.mxu1 %v3821_v29  ;;  %v3849_v18 = vld [vmem:[%s5195_s1 + $0x1f0] ss:$8 sps:$4 sm:$0xff]   ;;  %v3864_v25 = vld [vmem:[%s5195_s1 + $0x600] ss:$8 sps:$4 sm:$0xff]   ;;  %v3926_v29 = vld [vmem:[%s4351_s5 + $0xbc] ss:$72 sps:$4 sm:$0xff]  }
  0x52   : > { %2651 = vmatprep.mubr.bf16.mxu0 %v3826_v33  ;;  %v3878_v33 = vld [vmem:[%s5195_s1 + $0x624] ss:$8 sps:$4 sm:$0xff]  }
  0x53   : > { %2393 = vmatpush1.bf16.msra.mxu1 %v3761_v19  ;;  %v3852_v19 = vld [vmem:[%s5195_s1 + $0x5f0] ss:$8 sps:$4 sm:$0xff]  }
  0x54   : > { %2677 = vmatpush1.bf16.msra.mxu0 %v3764_v20  ;;  %2394 = vmatprep.subr.bf16.mxu1 %v3769_v22  ;;  %v3860_v20 = vld [vmem:[%s5195_s1 + $0x204] ss:$8 sps:$4 sm:$0xff]   ;;  %v3855_v22 = vld [vmem:[%s4351_s5 + $0x8] ss:$72 sps:$4 sm:$0xff]  }
  0x55   : > { %2678 = vmatprep.subr.bf16.mxu0 %v3772_v23  ;;  %v3858_v23 = vld [vmem:[%s5195_s1 + $0x200] ss:$8 sps:$4 sm:$0xff]  }
  0x56   : > { %2368 = vmatmul.mubr.bf16.gmra.mrb[8].mxu1 %v3831_v36  ;;  %v3932_v36 = vld [vmem:[%s4351_s5 + $0xb8] ss:$72 sps:$4 sm:$0xff]  }
  0x57   : > { %2395 = vmatpush1.bf16.msra.mxu1 %v3767_v26  ;;  %2652 = vmatmul.mubr.bf16.gmra.mrb[8].mxu0 %v3832_v37  ;;  %v3869_v26 = vld [vmem:[%s5195_s1 + $0x214] ss:$8 sps:$4 sm:$0xff]   ;;  %v3876_v37 = vld [vmem:[%s5195_s1 + $0x620] ss:$8 sps:$4 sm:$0xff]  }
  0x58   : > { %2679 = vmatpush1.bf16.msra.mxu0 %v3770_v27  ;;  %2396 = vmatprep.subr.bf16.mxu1 %v3775_v28  ;;  %v3872_v27 = vld [vmem:[%s5195_s1 + $0x614] ss:$8 sps:$4 sm:$0xff]  }
  0x59   : > { %2680 = vmatprep.subr.bf16.mxu0 %v3778_v30  ;;  %2377 = vmatprep.mubr.bf16.mxu1 %v3140_v43  ;;  %v3921_v28 = vld [vmem:[%s4351_s5 + $0x9c] ss:$72 sps:$4 sm:$0xff]   ;;  %v3867_v30 = vld [vmem:[%s5195_s1 + $0x210] ss:$8 sps:$4 sm:$0xff]  }
  0x5a   : > { %2661 = vmatprep.mubr.bf16.mxu0 %v3148_v45  ;;  %v3882_v43 = vld [vmem:[%s5195_s1 + $0x630] ss:$8 sps:$4 sm:$0xff]   ;;  %v3890_v45 = vld [vmem:[%s5195_s1 + $0x644] ss:$8 sps:$4 sm:$0xff]  }
  0x5b   : > { %2397 = vmatpush1.bf16.msra.mxu1 %v3773_v31  ;;  %v3870_v31 = vld [vmem:[%s5195_s1 + $0x610] ss:$8 sps:$4 sm:$0xff]  }
  0x5c   : > { %2681 = vmatpush1.bf16.msra.mxu0 %v3776_v32  ;;  %2398 = vmatprep.subr.bf16.mxu1 %v3781_v34  ;;  %v3875_v32 = vld [vmem:[%s5195_s1 + $0x224] ss:$8 sps:$4 sm:$0xff]   ;;  %v3873_v34 = vld [vmem:[%s5195_s1 + $0x220] ss:$8 sps:$4 sm:$0xff]  }
  0x5d   : > { %2682 = vmatprep.subr.bf16.mxu0 %v3784_v35  ;;  %v3931_v35 = vld [vmem:[%s4351_s5 + $0x98] ss:$72 sps:$4 sm:$0xff]  }
  0x5e   : > { %2378 = vmatmul.mubr.bf16.gmra.mrb[12].mxu1 %v3139_v46  ;;  %v3885_v46 = vld [vmem:[%s5195_s1 + $0x240] ss:$8 sps:$4 sm:$0xff]  }
  0x5f   : > { %2399 = vmatpush1.bf16.msra.mxu1 %v3779_v38  ;;  %2662 = vmatmul.mubr.bf16.gmra.mrb[12].mxu0 %v3147_v47  ;;  %v3881_v38 = vld [vmem:[%s5195_s1 + $0x234] ss:$8 sps:$4 sm:$0xff]   ;;  %v3888_v47 = vld [vmem:[%s5195_s1 + $0x640] ss:$8 sps:$4 sm:$0xff]  }
  0x60   : > { %2683 = vmatpush1.bf16.msra.mxu0 %v3782_v39  ;;  %2400 = vmatprep.subr.bf16.mxu1 %v3787_v41  ;;  %v3884_v39 = vld [vmem:[%s5195_s1 + $0x634] ss:$8 sps:$4 sm:$0xff]  }
  0x61   : > { %2684 = vmatprep.subr.bf16.mxu0 %v3790_v42  ;;  %2418 = vmatprep.mubr.bf16.mxu1 %v3857_v53  ;;  %v3944_v41 = vld [vmem:[%s4351_s5 + $0x14c] ss:$72 sps:$4 sm:$0xff]   ;;  %v3879_v42 = vld [vmem:[%s5195_s1 + $0x230] ss:$8 sps:$4 sm:$0xff]  }
  0x62   : > { %2702 = vmatprep.mubr.bf16.mxu0 %v3863_v57  ;;  %v3896_v53 = vld [vmem:[%s5195_s1 + $0x654] ss:$8 sps:$4 sm:$0xff]   ;;  %v3894_v57 = vld [vmem:[%s5195_s1 + $0x650] ss:$8 sps:$4 sm:$0xff]  }
  0x63   : > { %2401 = vmatpush1.bf16.msra.mxu1 %v3785_v48  ;;  %v3949_v48 = vld [vmem:[%s4351_s5 + $0x128] ss:$72 sps:$4 sm:$0xff]  }
  0x64   : > { %2685 = vmatpush1.bf16.msra.mxu0 %v3788_v49  ;;  %2402 = vmatprep.subr.bf16.mxu1 %v3793_v50  ;;  %v3950_v49 = vld [vmem:[%s4351_s5 + $0x148] ss:$72 sps:$4 sm:$0xff]   ;;  %v234_v50 = vld [vmem:[%s4351_s5 + $0x1b8] sm:$0xff] }
  0x65   : > { %2686 = vmatprep.subr.bf16.mxu0 %v3796_v51  ;;  %v238_v51 = vld [vmem:[%s4351_s5 + $0x1d8] sm:$0xff] }
  0x67   : > { %2403 = vmatpush1.bf16.msra.mxu1 %v3791_v52  ;;  %v3893_v52 = vld [vmem:[%s5195_s1 + $0x254] ss:$8 sps:$4 sm:$0xff]  }
  0x68   : > { %2687 = vmatpush1.bf16.msra.mxu0 %v3794_v54  ;;  %2404 = vmatprep.subr.bf16.mxu1 %v3799_v55  ;;  %v3142_v54 = vcombine.high %v234_v50, %v234_v50  ;;  %v3150_v55 = vcombine.high %v238_v51, %v238_v51 }
  0x69   : > { %2688 = vmatprep.subr.bf16.mxu0 %v3802_v56  ;;  %v3891_v56 = vld [vmem:[%s5195_s1 + $0x250] ss:$8 sps:$4 sm:$0xff]  }
  0x6b   : > { %2405 = vmatpush1.bf16.msra.mxu1 %v3797_v58  ;;  %v3899_v58 = vld [vmem:[%s5195_s1 + $0x264] ss:$8 sps:$4 sm:$0xff]  }
  0x6c   : > { %2689 = vmatpush1.bf16.msra.mxu0 %v3800_v59  ;;  %2406 = vmatprep.subr.bf16.mxu1 %v3807_v60  ;;  %v3902_v59 = vld [vmem:[%s5195_s1 + $0x664] ss:$8 sps:$4 sm:$0xff]   ;;  %v3897_v60 = vld [vmem:[%s5195_s1 + $0x260] ss:$8 sps:$4 sm:$0xff]  }
  0x6d   : > { %2690 = vmatprep.subr.bf16.mxu0 %v3812_v61  ;;  %v3900_v61 = vld [vmem:[%s5195_s1 + $0x660] ss:$8 sps:$4 sm:$0xff]  }
  0x6f   : > { %2407 = vmatpush1.bf16.msra.mxu1 %v3805_v62  ;;  %v3141_v62 = vcombine.low %v234_v50, %v234_v50  ;;  %v3993_v50 = vld [vmem:[%s5195_s1 + $0x324] ss:$8 sps:$4 sm:$0xff]  }
  0x70   : > { %2691 = vmatpush1.bf16.msra.mxu0 %v3810_v63  ;;  %2408 = vmatprep.subr.bf16.mxu1 %v3817_v0  ;;  %v3149_v63 = vcombine.low %v238_v51, %v238_v51  ;;  %v3905_v0 = vld [vmem:[%s5195_s1 + $0x274] ss:$8 sps:$4 sm:$0xff]   ;;  %v3996_v51 = vld [vmem:[%s5195_s1 + $0x724] ss:$8 sps:$4 sm:$0xff]  }
  0x71   : > { %2692 = vmatprep.subr.bf16.mxu0 %v3820_v1  ;;  %v3908_v1 = vld [vmem:[%s5195_s1 + $0x674] ss:$8 sps:$4 sm:$0xff]  }
  0x73   : > { %2409 = vmatpush1.bf16.msra.mxu1 %v3815_v2  ;;  %v3975_v2 = vld [vmem:[%s4351_s5 + $0x14] ss:$72 sps:$4 sm:$0xff]  }
  0x74   : > { %2693 = vmatpush1.bf16.msra.mxu0 %v3818_v3  ;;  %2410 = vmatprep.subr.bf16.mxu1 %v3825_v4  ;;  %v3981_v3 = vld [vmem:[%s4351_s5 + $0x34] ss:$72 sps:$4 sm:$0xff]   ;;  %v3903_v4 = vld [vmem:[%s5195_s1 + $0x270] ss:$8 sps:$4 sm:$0xff]  }
  0x75   : > { %2694 = vmatprep.subr.bf16.mxu0 %v3830_v5  ;;  %v3906_v5 = vld [vmem:[%s5195_s1 + $0x670] ss:$8 sps:$4 sm:$0xff]  }
  0x77   : > { %2411 = vmatpush1.bf16.msra.mxu1 %v3823_v6  ;;  %v3911_v6 = vld [vmem:[%s5195_s1 + $0x284] ss:$8 sps:$4 sm:$0xff]  }
  0x78   : > { %2695 = vmatpush1.bf16.msra.mxu0 %v3828_v7  ;;  %2412 = vmatprep.subr.bf16.mxu1 %v3835_v8  ;;  %v3914_v7 = vld [vmem:[%s5195_s1 + $0x684] ss:$8 sps:$4 sm:$0xff]   ;;  %v3909_v8 = vld [vmem:[%s5195_s1 + $0x280] ss:$8 sps:$4 sm:$0xff]  }
  0x79   : > { %2696 = vmatprep.subr.bf16.mxu0 %v3838_v9  ;;  %v3912_v9 = vld [vmem:[%s5195_s1 + $0x680] ss:$8 sps:$4 sm:$0xff]  }
  0x7b   : > { %2413 = vmatpush1.bf16.msra.mxu1 %v3833_v10  ;;  %v3917_v10 = vld [vmem:[%s5195_s1 + $0x294] ss:$8 sps:$4 sm:$0xff]  }
  0x7c   : > { %2697 = vmatpush1.bf16.msra.mxu0 %v3836_v11  ;;  %2414 = vmatprep.subr.bf16.mxu1 %v3842_v12  ;;  %v3920_v11 = vld [vmem:[%s5195_s1 + $0x694] ss:$8 sps:$4 sm:$0xff]   ;;  %v3915_v12 = vld [vmem:[%s5195_s1 + $0x290] ss:$8 sps:$4 sm:$0xff]  }
  0x7d   : > { %2698 = vmatprep.subr.bf16.mxu0 %v3846_v13  ;;  %v3918_v13 = vld [vmem:[%s5195_s1 + $0x690] ss:$8 sps:$4 sm:$0xff]  }
  0x7f   : > { %2415 = vmatpush1.bf16.msra.mxu1 %v3840_v14  ;;  %v3925_v14 = vld [vmem:[%s5195_s1 + $0x2a4] ss:$8 sps:$4 sm:$0xff]  }
  0x80   : > { %2699 = vmatpush1.bf16.msra.mxu0 %v3844_v15  ;;  %2416 = vmatprep.subr.bf16.mxu1 %v3851_v16  ;;  %v3930_v15 = vld [vmem:[%s5195_s1 + $0x6a4] ss:$8 sps:$4 sm:$0xff]   ;;  %v3923_v16 = vld [vmem:[%s5195_s1 + $0x2a0] ss:$8 sps:$4 sm:$0xff]  }
  0x81   : > { %2700 = vmatprep.subr.bf16.mxu0 %v3854_v17  ;;  %v3928_v17 = vld [vmem:[%s5195_s1 + $0x6a0] ss:$8 sps:$4 sm:$0xff]  }
  0x83   : > { %2417 = vmatpush1.bf16.msra.mxu1 %v3849_v18  ;;  %v3935_v18 = vld [vmem:[%s5195_s1 + $0x2b4] ss:$8 sps:$4 sm:$0xff]  }
  0x84   : > { %2701 = vmatpush1.bf16.msra.mxu0 %v3852_v19  ;;  %2457 = vmatprep.subr.bf16.mxu1 %v3860_v20  ;;  %v3938_v19 = vld [vmem:[%s5195_s1 + $0x6b4] ss:$8 sps:$4 sm:$0xff]   ;;  %v3933_v20 = vld [vmem:[%s5195_s1 + $0x2b0] ss:$8 sps:$4 sm:$0xff]  }
  0x85   : > { %2741 = vmatprep.subr.bf16.mxu0 %v3866_v21  ;;  %v3936_v21 = vld [vmem:[%s5195_s1 + $0x6b0] ss:$8 sps:$4 sm:$0xff]  }
  0x86   : > { %2419 = vmatmul.mubr.bf16.vlgmr.msra.gmra.mrb[0].mxu1 %v3855_v22  ;;  %v3943_v22 = vld [vmem:[%s5195_s1 + $0x2c4] ss:$8 sps:$4 sm:$0xff]  }
  0x87   : > { %2703 = vmatmul.mubr.bf16.vlgmr.msra.gmra.mrb[0].mxu0 %v3861_v24  ;;  %2458 = vmatpush1.bf16.msra.mxu1 %v3858_v23  ;;  %v3948_v23 = vld [vmem:[%s5195_s1 + $0x6c4] ss:$8 sps:$4 sm:$0xff]   ;;  %v3941_v24 = vld [vmem:[%s5195_s1 + $0x2c0] ss:$8 sps:$4 sm:$0xff]  }
  0x88   : > { %2742 = vmatpush1.bf16.msra.mxu0 %v3864_v25  ;;  %2459 = vmatprep.subr.bf16.mxu1 %v3869_v26  ;;  %v3946_v25 = vld [vmem:[%s5195_s1 + $0x6c0] ss:$8 sps:$4 sm:$0xff]   ;;  %v3953_v26 = vld [vmem:[%s5195_s1 + $0x2d4] ss:$8 sps:$4 sm:$0xff]  }
  0x89   : > { %2743 = vmatprep.subr.bf16.mxu0 %v3872_v27  ;;  %2428 = vmatprep.mubr.bf16.mxu1 %v3921_v28  ;;  %v3956_v27 = vld [vmem:[%s5195_s1 + $0x6d4] ss:$8 sps:$4 sm:$0xff]   ;;  %v3951_v28 = vld [vmem:[%s5195_s1 + $0x2d0] ss:$8 sps:$4 sm:$0xff]  }
  0x8a   : > { %2712 = vmatprep.mubr.bf16.mxu0 %v3926_v29  ;;  %v3954_v29 = vld [vmem:[%s5195_s1 + $0x6d0] ss:$8 sps:$4 sm:$0xff]  }
  0x8b   : > { %2460 = vmatpush1.bf16.msra.mxu1 %v3867_v30  ;;  %v3960_v30 = vld [vmem:[%s5195_s1 + $0x2e4] ss:$8 sps:$4 sm:$0xff]  }
  0x8c   : > { %2744 = vmatpush1.bf16.msra.mxu0 %v3870_v31  ;;  %2461 = vmatprep.subr.bf16.mxu1 %v3875_v32  ;;  %v3964_v31 = vld [vmem:[%s5195_s1 + $0x6e4] ss:$8 sps:$4 sm:$0xff]   ;;  %v3958_v32 = vld [vmem:[%s5195_s1 + $0x2e0] ss:$8 sps:$4 sm:$0xff]  }
  0x8d   : > { %2745 = vmatprep.subr.bf16.mxu0 %v3878_v33  ;;  %v3962_v33 = vld [vmem:[%s5195_s1 + $0x6e0] ss:$8 sps:$4 sm:$0xff]  }
  0x8e   : > { %2429 = vmatmul.mubr.bf16.gmra.mrb[4].mxu1 %v3931_v35  ;;  %v3972_v35 = vld [vmem:[%s5195_s1 + $0x6f4] ss:$8 sps:$4 sm:$0xff]  }
  0x8f   : > { %2713 = vmatmul.mubr.bf16.gmra.mrb[4].mxu0 %v3932_v36  ;;  %2462 = vmatpush1.bf16.msra.mxu1 %v3873_v34  ;;  %v3969_v34 = vld [vmem:[%s5195_s1 + $0x2f4] ss:$8 sps:$4 sm:$0xff]   ;;  %v3967_v36 = vld [vmem:[%s5195_s1 + $0x2f0] ss:$8 sps:$4 sm:$0xff]  }
  0x90   : > { %2746 = vmatpush1.bf16.msra.mxu0 %v3876_v37  ;;  %2463 = vmatprep.subr.bf16.mxu1 %v3881_v38  ;;  %v3970_v37 = vld [vmem:[%s5195_s1 + $0x6f0] ss:$8 sps:$4 sm:$0xff]   ;;  %v3978_v38 = vld [vmem:[%s5195_s1 + $0x304] ss:$8 sps:$4 sm:$0xff]  }
  0x91   : > { %2747 = vmatprep.subr.bf16.mxu0 %v3884_v39  ;;  %2438 = vmatprep.mubr.bf16.mxu1 %v3939_v40  ;;  %v3984_v39 = vld [vmem:[%s5195_s1 + $0x704] ss:$8 sps:$4 sm:$0xff]   ;;  %v3973_v40 = vld [vmem:[%s4351_s5 + $0x10] ss:$72 sps:$4 sm:$0xff]  }
  0x92   : > { %2722 = vmatprep.mubr.bf16.mxu0 %v3944_v41  ;;  %v3976_v41 = vld [vmem:[%s5195_s1 + $0x300] ss:$8 sps:$4 sm:$0xff]  }
  0x93   : > { %2464 = vmatpush1.bf16.msra.mxu1 %v3879_v42  ;;  %v3979_v42 = vld [vmem:[%s4351_s5 + $0x30] ss:$72 sps:$4 sm:$0xff]  }
  0x94   : > { %2748 = vmatpush1.bf16.msra.mxu0 %v3882_v43  ;;  %2465 = vmatprep.subr.bf16.mxu1 %v3887_v44  ;;  %v3982_v43 = vld [vmem:[%s5195_s1 + $0x700] ss:$8 sps:$4 sm:$0xff]   ;;  %v3987_v44 = vld [vmem:[%s5195_s1 + $0x314] ss:$8 sps:$4 sm:$0xff]  }
  0x95   : > { %2749 = vmatprep.subr.bf16.mxu0 %v3890_v45  ;;  %v3990_v45 = vld [vmem:[%s5195_s1 + $0x714] ss:$8 sps:$4 sm:$0xff]  }
  0x96   : > { %2439 = vmatmul.mubr.bf16.gmra.mrb[8].mxu1 %v3949_v48  ;;  %v3985_v48 = vld [vmem:[%s5195_s1 + $0x310] ss:$8 sps:$4 sm:$0xff]  }
  0x97   : > { %2723 = vmatmul.mubr.bf16.gmra.mrb[8].mxu0 %v3950_v49  ;;  %2466 = vmatpush1.bf16.msra.mxu1 %v3885_v46  ;;  %v4039_v46 = vld [vmem:[%s4351_s5 + $0xa4] ss:$72 sps:$4 sm:$0xff]   ;;  %v3988_v49 = vld [vmem:[%s5195_s1 + $0x710] ss:$8 sps:$4 sm:$0xff]  }
  0x98   : > { %2750 = vmatpush1.bf16.msra.mxu0 %v3888_v47  ;;  %2467 = vmatprep.subr.bf16.mxu1 %v3893_v52  ;;  %v4041_v47 = vld [vmem:[%s4351_s5 + $0xc4] ss:$72 sps:$4 sm:$0xff]   ;;  %v3991_v52 = vld [vmem:[%s5195_s1 + $0x320] ss:$8 sps:$4 sm:$0xff]  }
  0x99   : > { %2751 = vmatprep.subr.bf16.mxu0 %v3896_v53  ;;  %2448 = vmatprep.mubr.bf16.mxu1 %v3142_v54  ;;  %v4043_v53 = vld [vmem:[%s4351_s5 + $0xa0] ss:$72 sps:$4 sm:$0xff]  }
  0x9a   : > { %2732 = vmatprep.mubr.bf16.mxu0 %v3150_v55  ;;  %v4047_v54 = vld [vmem:[%s4351_s5 + $0xc0] ss:$72 sps:$4 sm:$0xff]  }
  0x9b   : > { %2468 = vmatpush1.bf16.msra.mxu1 %v3891_v56  ;;  %v3994_v55 = vld [vmem:[%s5195_s1 + $0x720] ss:$8 sps:$4 sm:$0xff]   ;;  %v3999_v56 = vld [vmem:[%s5195_s1 + $0x334] ss:$8 sps:$4 sm:$0xff]  }
  0x9c   : > { %2752 = vmatpush1.bf16.msra.mxu0 %v3894_v57  ;;  %2469 = vmatprep.subr.bf16.mxu1 %v3899_v58  ;;  %v4002_v57 = vld [vmem:[%s5195_s1 + $0x734] ss:$8 sps:$4 sm:$0xff]  }
  0x9d   : > { %2753 = vmatprep.subr.bf16.mxu0 %v3902_v59  ;;  %v4057_v58 = vld [vmem:[%s4351_s5 + $0x134] ss:$72 sps:$4 sm:$0xff]   ;;  %v3997_v59 = vld [vmem:[%s5195_s1 + $0x330] ss:$8 sps:$4 sm:$0xff]  }
  0x9e   : > { %2449 = vmatmul.mubr.bf16.gmra.mrb[12].mxu1 %v3141_v62  ;;  %v4005_v62 = vld [vmem:[%s5195_s1 + $0x344] ss:$8 sps:$4 sm:$0xff]  }
  0x9f   : > { %2733 = vmatmul.mubr.bf16.gmra.mrb[12].mxu0 %v3149_v63  ;;  %2470 = vmatpush1.bf16.msra.mxu1 %v3897_v60  ;;  %v4059_v60 = vld [vmem:[%s4351_s5 + $0x154] ss:$72 sps:$4 sm:$0xff]   ;;  %v4008_v63 = vld [vmem:[%s5195_s1 + $0x744] ss:$8 sps:$4 sm:$0xff]  }
  0xa0   : > { %2754 = vmatpush1.bf16.msra.mxu0 %v3900_v61  ;;  %2471 = vmatprep.subr.bf16.mxu1 %v3905_v0  ;;  %v4000_v61 = vld [vmem:[%s5195_s1 + $0x730] ss:$8 sps:$4 sm:$0xff]  }
  0xa1   : > { %2755 = vmatprep.subr.bf16.mxu0 %v3908_v1  ;;  %2489 = vmatprep.mubr.bf16.mxu1 %v3975_v2  ;;  %v4061_v0 = vld [vmem:[%s4351_s5 + $0x130] ss:$72 sps:$4 sm:$0xff]   ;;  %v4003_v2 = vld [vmem:[%s5195_s1 + $0x340] ss:$8 sps:$4 sm:$0xff]  }
  0xa2   : > { %2773 = vmatprep.mubr.bf16.mxu0 %v3981_v3  ;;  %v4065_v1 = vld [vmem:[%s4351_s5 + $0x150] ss:$72 sps:$4 sm:$0xff]   ;;  %v235_v3 = vld [vmem:[%s4351_s5 + $0x1c0] sm:$0xff] }
  0xa3   : > { %2472 = vmatpush1.bf16.msra.mxu1 %v3903_v4  ;;  %v239_v4 = vld [vmem:[%s4351_s5 + $0x1e0] sm:$0xff] }
  0xa4   : > { %2756 = vmatpush1.bf16.msra.mxu0 %v3906_v5  ;;  %2473 = vmatprep.subr.bf16.mxu1 %v3911_v6  ;;  %v4006_v5 = vld [vmem:[%s5195_s1 + $0x740] ss:$8 sps:$4 sm:$0xff]   ;;  %v4011_v6 = vld [vmem:[%s5195_s1 + $0x354] ss:$8 sps:$4 sm:$0xff]  }
  0xa5   : > { %2757 = vmatprep.subr.bf16.mxu0 %v3914_v7  ;;  %v4014_v7 = vld [vmem:[%s5195_s1 + $0x754] ss:$8 sps:$4 sm:$0xff]  }
  0xa7   : > { %2474 = vmatpush1.bf16.msra.mxu1 %v3909_v8  ;;  %v3144_v8 = vcombine.high %v235_v3, %v235_v3 }
  0xa8   : > { %2758 = vmatpush1.bf16.msra.mxu0 %v3912_v9  ;;  %2475 = vmatprep.subr.bf16.mxu1 %v3917_v10  ;;  %v3152_v9 = vcombine.high %v239_v4, %v239_v4  ;;  %v4009_v10 = vld [vmem:[%s5195_s1 + $0x350] ss:$8 sps:$4 sm:$0xff]  }
  0xa9   : > { %2759 = vmatprep.subr.bf16.mxu0 %v3920_v11  ;;  %v4012_v11 = vld [vmem:[%s5195_s1 + $0x750] ss:$8 sps:$4 sm:$0xff]  }
  0xab   : > { %2476 = vmatpush1.bf16.msra.mxu1 %v3915_v12  ;;  %v4017_v12 = vld [vmem:[%s5195_s1 + $0x364] ss:$8 sps:$4 sm:$0xff]  }
  0xac   : > { %2760 = vmatpush1.bf16.msra.mxu0 %v3918_v13  ;;  %2477 = vmatprep.subr.bf16.mxu1 %v3925_v14  ;;  %v4020_v13 = vld [vmem:[%s5195_s1 + $0x764] ss:$8 sps:$4 sm:$0xff]   ;;  %v4015_v14 = vld [vmem:[%s5195_s1 + $0x360] ss:$8 sps:$4 sm:$0xff]  }
  0xad   : > { %2761 = vmatprep.subr.bf16.mxu0 %v3930_v15  ;;  %v4018_v15 = vld [vmem:[%s5195_s1 + $0x760] ss:$8 sps:$4 sm:$0xff]  }
  0xaf   : > { %2478 = vmatpush1.bf16.msra.mxu1 %v3923_v16  ;;  %v3143_v16 = vcombine.low %v235_v3, %v235_v3  ;;  %v4109_v3 = vld [vmem:[%s5195_s1 + $0x820] ss:$8 sps:$4 sm:$0xff]  }
  0xb0   : > { %2762 = vmatpush1.bf16.msra.mxu0 %v3928_v17  ;;  %2479 = vmatprep.subr.bf16.mxu1 %v3935_v18  ;;  %v3151_v17 = vcombine.low %v239_v4, %v239_v4  ;;  %v4023_v18 = vld [vmem:[%s5195_s1 + $0x374] ss:$8 sps:$4 sm:$0xff]  }
  0xb1   : > { %2763 = vmatprep.subr.bf16.mxu0 %v3938_v19  ;;  %v4026_v19 = vld [vmem:[%s5195_s1 + $0x774] ss:$8 sps:$4 sm:$0xff]  }
  0xb2   : > { %v4114_v4 = vld [vmem:[%s5195_s1 + $0x834] ss:$8 sps:$4 sm:$0xff]  }
  0xb3   : > { %2480 = vmatpush1.bf16.msra.mxu1 %v3933_v20  ;;  %v4093_v20 = vld [vmem:[%s4351_s5 + $0x1c] ss:$72 sps:$4 sm:$0xff]  }
  0xb4   : > { %2764 = vmatpush1.bf16.msra.mxu0 %v3936_v21  ;;  %2481 = vmatprep.subr.bf16.mxu1 %v3943_v22  ;;  %v4096_v21 = vld [vmem:[%s4351_s5 + $0x3c] ss:$72 sps:$4 sm:$0xff]   ;;  %v4021_v22 = vld [vmem:[%s5195_s1 + $0x370] ss:$8 sps:$4 sm:$0xff]  }
  0xb5   : > { %2765 = vmatprep.subr.bf16.mxu0 %v3948_v23  ;;  %v4024_v23 = vld [vmem:[%s5195_s1 + $0x770] ss:$8 sps:$4 sm:$0xff]  }
  0xb7   : > { %2482 = vmatpush1.bf16.msra.mxu1 %v3941_v24  ;;  %v4029_v24 = vld [vmem:[%s5195_s1 + $0x384] ss:$8 sps:$4 sm:$0xff]  }
  0xb8   : > { %2766 = vmatpush1.bf16.msra.mxu0 %v3946_v25  ;;  %2483 = vmatprep.subr.bf16.mxu1 %v3953_v26  ;;  %v4032_v25 = vld [vmem:[%s5195_s1 + $0x784] ss:$8 sps:$4 sm:$0xff]   ;;  %v4027_v26 = vld [vmem:[%s5195_s1 + $0x380] ss:$8 sps:$4 sm:$0xff]  }
  0xb9   : > { %2767 = vmatprep.subr.bf16.mxu0 %v3956_v27  ;;  %v4030_v27 = vld [vmem:[%s5195_s1 + $0x780] ss:$8 sps:$4 sm:$0xff]  }
  0xbb   : > { %2484 = vmatpush1.bf16.msra.mxu1 %v3951_v28  ;;  %v4035_v28 = vld [vmem:[%s5195_s1 + $0x394] ss:$8 sps:$4 sm:$0xff]  }
  0xbc   : > { %2768 = vmatpush1.bf16.msra.mxu0 %v3954_v29  ;;  %2485 = vmatprep.subr.bf16.mxu1 %v3960_v30  ;;  %v4038_v29 = vld [vmem:[%s5195_s1 + $0x794] ss:$8 sps:$4 sm:$0xff]   ;;  %v4033_v30 = vld [vmem:[%s5195_s1 + $0x390] ss:$8 sps:$4 sm:$0xff]  }
  0xbd   : > { %2769 = vmatprep.subr.bf16.mxu0 %v3964_v31  ;;  %v4036_v31 = vld [vmem:[%s5195_s1 + $0x790] ss:$8 sps:$4 sm:$0xff]  }
  0xbf   : > { %2486 = vmatpush1.bf16.msra.mxu1 %v3958_v32  ;;  %v4046_v32 = vld [vmem:[%s5195_s1 + $0x3a4] ss:$8 sps:$4 sm:$0xff]  }
  0xc0   : > { %2770 = vmatpush1.bf16.msra.mxu0 %v3962_v33  ;;  %2487 = vmatprep.subr.bf16.mxu1 %v3969_v34  ;;  %v4050_v33 = vld [vmem:[%s5195_s1 + $0x7a4] ss:$8 sps:$4 sm:$0xff]   ;;  %v4044_v34 = vld [vmem:[%s5195_s1 + $0x3a0] ss:$8 sps:$4 sm:$0xff]  }
  0xc1   : > { %2771 = vmatprep.subr.bf16.mxu0 %v3972_v35  ;;  %v4048_v35 = vld [vmem:[%s5195_s1 + $0x7a0] ss:$8 sps:$4 sm:$0xff]  }
  0xc3   : > { %2488 = vmatpush1.bf16.msra.mxu1 %v3967_v36  ;;  %v4053_v36 = vld [vmem:[%s5195_s1 + $0x3b4] ss:$8 sps:$4 sm:$0xff]  }
  0xc4   : > { %2772 = vmatpush1.bf16.msra.mxu0 %v3970_v37  ;;  %2528 = vmatprep.subr.bf16.mxu1 %v3978_v38  ;;  %v4056_v37 = vld [vmem:[%s5195_s1 + $0x7b4] ss:$8 sps:$4 sm:$0xff]   ;;  %v4051_v38 = vld [vmem:[%s5195_s1 + $0x3b0] ss:$8 sps:$4 sm:$0xff]  }
  0xc5   : > { %2812 = vmatprep.subr.bf16.mxu0 %v3984_v39  ;;  %v4054_v39 = vld [vmem:[%s5195_s1 + $0x7b0] ss:$8 sps:$4 sm:$0xff]  }
  0xc6   : > { %2490 = vmatmul.mubr.bf16.vlgmr.msra.gmra.mrb[0].mxu1 %v3973_v40  ;;  %v4064_v40 = vld [vmem:[%s5195_s1 + $0x3c4] ss:$8 sps:$4 sm:$0xff]  }
  0xc7   : > { %2774 = vmatmul.mubr.bf16.vlgmr.msra.gmra.mrb[0].mxu0 %v3979_v42  ;;  %2529 = vmatpush1.bf16.msra.mxu1 %v3976_v41  ;;  %v4068_v41 = vld [vmem:[%s5195_s1 + $0x7c4] ss:$8 sps:$4 sm:$0xff]   ;;  %v4062_v42 = vld [vmem:[%s5195_s1 + $0x3c0] ss:$8 sps:$4 sm:$0xff]  }
  0xc8   : > { %2813 = vmatpush1.bf16.msra.mxu0 %v3982_v43  ;;  %2530 = vmatprep.subr.bf16.mxu1 %v3987_v44  ;;  %v4066_v43 = vld [vmem:[%s5195_s1 + $0x7c0] ss:$8 sps:$4 sm:$0xff]   ;;  %v4071_v44 = vld [vmem:[%s5195_s1 + $0x3d4] ss:$8 sps:$4 sm:$0xff]  }
  0xc9   : > { %2814 = vmatprep.subr.bf16.mxu0 %v3990_v45  ;;  %2499 = vmatprep.mubr.bf16.mxu1 %v4039_v46  ;;  %v4074_v45 = vld [vmem:[%s5195_s1 + $0x7d4] ss:$8 sps:$4 sm:$0xff]   ;;  %v4069_v46 = vld [vmem:[%s5195_s1 + $0x3d0] ss:$8 sps:$4 sm:$0xff]  }
  0xca   : > { %2783 = vmatprep.mubr.bf16.mxu0 %v4041_v47  ;;  %v4072_v47 = vld [vmem:[%s5195_s1 + $0x7d0] ss:$8 sps:$4 sm:$0xff]  }
  0xcb   : > { %2531 = vmatpush1.bf16.msra.mxu1 %v3985_v48  ;;  %v4080_v48 = vld [vmem:[%s5195_s1 + $0x3e4] ss:$8 sps:$4 sm:$0xff]  }
  0xcc   : > { %2815 = vmatpush1.bf16.msra.mxu0 %v3988_v49  ;;  %2532 = vmatprep.subr.bf16.mxu1 %v3993_v50  ;;  %v4084_v49 = vld [vmem:[%s5195_s1 + $0x7e4] ss:$8 sps:$4 sm:$0xff]   ;;  %v4078_v50 = vld [vmem:[%s5195_s1 + $0x3e0] ss:$8 sps:$4 sm:$0xff]  }
  0xcd   : > { %2816 = vmatprep.subr.bf16.mxu0 %v3996_v51  ;;  %v4082_v51 = vld [vmem:[%s5195_s1 + $0x7e0] ss:$8 sps:$4 sm:$0xff]  }
  0xce   : > { %2500 = vmatmul.mubr.bf16.gmra.mrb[4].mxu1 %v4043_v53  ;;  %v4090_v53 = vld [vmem:[%s5195_s1 + $0x7f4] ss:$8 sps:$4 sm:$0xff]  }
  0xcf   : > { %2784 = vmatmul.mubr.bf16.gmra.mrb[4].mxu0 %v4047_v54  ;;  %2533 = vmatpush1.bf16.msra.mxu1 %v3991_v52  ;;  %v4087_v52 = vld [vmem:[%s5195_s1 + $0x3f4] ss:$8 sps:$4 sm:$0xff]   ;;  %v4085_v54 = vld [vmem:[%s5195_s1 + $0x3f0] ss:$8 sps:$4 sm:$0xff]  }
  0xd0   : > { %2817 = vmatpush1.bf16.msra.mxu0 %v3994_v55  ;;  %2534 = vmatprep.subr.bf16.mxu1 %v3999_v56  ;;  %v4088_v55 = vld [vmem:[%s5195_s1 + $0x7f0] ss:$8 sps:$4 sm:$0xff]   ;;  %v4099_v56 = vld [vmem:[%s5195_s1 + $0x804] ss:$8 sps:$4 sm:$0xff]  }
  0xd1   : > { %2818 = vmatprep.subr.bf16.mxu0 %v4002_v57  ;;  %2509 = vmatprep.mubr.bf16.mxu1 %v4057_v58  ;;  %v4091_v57 = vld [vmem:[%s4351_s5 + $0x18] ss:$72 sps:$4 sm:$0xff]  }
  0xd2   : > { %2793 = vmatprep.mubr.bf16.mxu0 %v4059_v60  ;;  %v4094_v58 = vld [vmem:[%s4351_s5 + $0x38] ss:$72 sps:$4 sm:$0xff]   ;;  %v4102_v60 = vld [vmem:[%s5195_s1 + $0x814] ss:$8 sps:$4 sm:$0xff]  }
  0xd3   : > { %2535 = vmatpush1.bf16.msra.mxu1 %v3997_v59  ;;  %v4097_v59 = vld [vmem:[%s5195_s1 + $0x800] ss:$8 sps:$4 sm:$0xff]  }
  0xd4   : > { %2819 = vmatpush1.bf16.msra.mxu0 %v4000_v61  ;;  %2536 = vmatprep.subr.bf16.mxu1 %v4005_v62  ;;  %v4103_v61 = vld [vmem:[%s4351_s5 + $0xac] ss:$72 sps:$4 sm:$0xff]  }
  0xd5   : > { %2820 = vmatprep.subr.bf16.mxu0 %v4008_v63  ;;  %v4105_v62 = vld [vmem:[%s4351_s5 + $0xcc] ss:$72 sps:$4 sm:$0xff]   ;;  %v4100_v63 = vld [vmem:[%s5195_s1 + $0x810] ss:$8 sps:$4 sm:$0xff]  }
  0xd6   : > { %2510 = vmatmul.mubr.bf16.gmra.mrb[8].mxu1 %v4061_v0  ;;  %v4111_v0 = vld [vmem:[%s5195_s1 + $0x824] ss:$8 sps:$4 sm:$0xff]  }
  0xd7   : > { %2794 = vmatmul.mubr.bf16.gmra.mrb[8].mxu0 %v4065_v1  ;;  %2537 = vmatpush1.bf16.msra.mxu1 %v4003_v2  ;;  %v4107_v1 = vld [vmem:[%s4351_s5 + $0xa8] ss:$72 sps:$4 sm:$0xff]  }
  0xd8   : > { %2821 = vmatpush1.bf16.msra.mxu0 %v4006_v5  ;;  %2538 = vmatprep.subr.bf16.mxu1 %v4011_v6  ;;  %v4108_v2 = vld [vmem:[%s4351_s5 + $0xc8] ss:$72 sps:$4 sm:$0xff]   ;;  %v4115_v5 = vld [vmem:[%s4351_s5 + $0x13c] ss:$72 sps:$4 sm:$0xff]  }
  0xd9   : > { %2822 = vmatprep.subr.bf16.mxu0 %v4014_v7  ;;  %2519 = vmatprep.mubr.bf16.mxu1 %v3144_v8  ;;  %v4117_v6 = vld [vmem:[%s4351_s5 + $0x15c] ss:$72 sps:$4 sm:$0xff]   ;;  %v4112_v7 = vld [vmem:[%s5195_s1 + $0x830] ss:$8 sps:$4 sm:$0xff]  }
  0xda   : > { %2803 = vmatprep.mubr.bf16.mxu0 %v3152_v9  ;;  %v4123_v8 = vld [vmem:[%s5195_s1 + $0x844] ss:$8 sps:$4 sm:$0xff]   ;;  %v4119_v9 = vld [vmem:[%s4351_s5 + $0x138] ss:$72 sps:$4 sm:$0xff]  }
  0xdb   : > { %2539 = vmatpush1.bf16.msra.mxu1 %v4009_v10  ;;  %v4120_v10 = vld [vmem:[%s4351_s5 + $0x158] ss:$72 sps:$4 sm:$0xff]  }
  0xdc   : > { %2823 = vmatpush1.bf16.msra.mxu0 %v4012_v11  ;;  %2540 = vmatprep.subr.bf16.mxu1 %v4017_v12  ;;  %v236_v11 = vld [vmem:[%s4351_s5 + $0x1c8] sm:$0xff] }
  0xdd   : > { %2824 = vmatprep.subr.bf16.mxu0 %v4020_v13  ;;  %v240_v12 = vld [vmem:[%s4351_s5 + $0x1e8] sm:$0xff] }
  0xde   : > { %2520 = vmatmul.mubr.bf16.gmra.mrb[12].mxu1 %v3143_v16  ;;  %v4121_v13 = vld [vmem:[%s5195_s1 + $0x840] ss:$8 sps:$4 sm:$0xff]   ;;  %v3154_v16 = vcombine.high %v240_v12, %v240_v12 }
  0xdf   : > { %2804 = vmatmul.mubr.bf16.gmra.mrb[12].mxu0 %v3151_v17  ;;  %2541 = vmatpush1.bf16.msra.mxu1 %v4015_v14  ;;  %v4126_v14 = vld [vmem:[%s5195_s1 + $0x854] ss:$8 sps:$4 sm:$0xff]   ;;  %v4124_v17 = vld [vmem:[%s5195_s1 + $0x850] ss:$8 sps:$4 sm:$0xff]  }
  0xe0   : > { %2825 = vmatpush1.bf16.msra.mxu0 %v4018_v15  ;;  %2542 = vmatprep.subr.bf16.mxu1 %v4023_v18  ;;  %v3146_v15 = vcombine.high %v236_v11, %v236_v11  ;;  %v4133_v18 = vld [vmem:[%s5195_s1 + $0x864] ss:$8 sps:$4 sm:$0xff]  }
  0xe1   : > { %2826 = vmatprep.subr.bf16.mxu0 %v4026_v19  ;;  %2560 = vmatprep.mubr.bf16.mxu1 %v4093_v20  ;;  %v3145_v19 = vcombine.low %v236_v11, %v236_v11  ;;  %v3153_v20 = vcombine.low %v240_v12, %v240_v12 }
  0xe2   : > { %2844 = vmatprep.mubr.bf16.mxu0 %v4096_v21  ;;  %v4131_v21 = vld [vmem:[%s5195_s1 + $0x860] ss:$8 sps:$4 sm:$0xff]  }
  0xe3   : > { %2543 = vmatpush1.bf16.msra.mxu1 %v4021_v22  ;;  %v4136_v22 = vld [vmem:[%s5195_s1 + $0x874] ss:$8 sps:$4 sm:$0xff]  }
  0xe4   : > { %2827 = vmatpush1.bf16.msra.mxu0 %v4024_v23  ;;  %2544 = vmatprep.subr.bf16.mxu1 %v4029_v24  ;;  %v4163_v23 = vld [vmem:[%s4351_s5 + $0x44] ss:$72 sps:$4 sm:$0xff]  }
  0xe5   : > { %2828 = vmatprep.subr.bf16.mxu0 %v4032_v25  ;;  %v4166_v24 = vld [vmem:[%s4351_s5 + $0x164] ss:$72 sps:$4 sm:$0xff]   ;;  %v4134_v25 = vld [vmem:[%s5195_s1 + $0x870] ss:$8 sps:$4 sm:$0xff]  }
  0xe7   : > { %2545 = vmatpush1.bf16.msra.mxu1 %v4027_v26  ;;  %v4139_v26 = vld [vmem:[%s5195_s1 + $0x884] ss:$8 sps:$4 sm:$0xff]  }
  0xe8   : > { %2829 = vmatpush1.bf16.msra.mxu0 %v4030_v27  ;;  %2546 = vmatprep.subr.bf16.mxu1 %v4035_v28  ;;  %v4137_v27 = vld [vmem:[%s5195_s1 + $0x880] ss:$8 sps:$4 sm:$0xff]   ;;  %v4142_v28 = vld [vmem:[%s5195_s1 + $0x894] ss:$8 sps:$4 sm:$0xff]  }
  0xe9   : > { %2830 = vmatprep.subr.bf16.mxu0 %v4038_v29  ;;  %v4140_v29 = vld [vmem:[%s5195_s1 + $0x890] ss:$8 sps:$4 sm:$0xff]  }
  0xeb   : > { %2547 = vmatpush1.bf16.msra.mxu1 %v4033_v30  ;;  %v4145_v30 = vld [vmem:[%s5195_s1 + $0x8a4] ss:$8 sps:$4 sm:$0xff]  }
  0xec   : > { %2831 = vmatpush1.bf16.msra.mxu0 %v4036_v31  ;;  %2548 = vmatprep.subr.bf16.mxu1 %v4046_v32  ;;  %v4143_v31 = vld [vmem:[%s5195_s1 + $0x8a0] ss:$8 sps:$4 sm:$0xff]   ;;  %v4148_v32 = vld [vmem:[%s5195_s1 + $0x8b4] ss:$8 sps:$4 sm:$0xff]  }
  0xed   : > { %2832 = vmatprep.subr.bf16.mxu0 %v4050_v33  ;;  %v4146_v33 = vld [vmem:[%s5195_s1 + $0x8b0] ss:$8 sps:$4 sm:$0xff]  }
  0xef   : > { %2549 = vmatpush1.bf16.msra.mxu1 %v4044_v34  ;;  %v4151_v34 = vld [vmem:[%s5195_s1 + $0x8c4] ss:$8 sps:$4 sm:$0xff]  }
  0xf0   : > { %2833 = vmatpush1.bf16.msra.mxu0 %v4048_v35  ;;  %2550 = vmatprep.subr.bf16.mxu1 %v4053_v36  ;;  %v4149_v35 = vld [vmem:[%s5195_s1 + $0x8c0] ss:$8 sps:$4 sm:$0xff]   ;;  %v4154_v36 = vld [vmem:[%s5195_s1 + $0x8d4] ss:$8 sps:$4 sm:$0xff]  }
  0xf1   : > { %2834 = vmatprep.subr.bf16.mxu0 %v4056_v37  ;;  %v4152_v37 = vld [vmem:[%s5195_s1 + $0x8d0] ss:$8 sps:$4 sm:$0xff]  }
  0xf3   : > { %2551 = vmatpush1.bf16.msra.mxu1 %v4051_v38  ;;  %v4157_v38 = vld [vmem:[%s5195_s1 + $0x8e4] ss:$8 sps:$4 sm:$0xff]  }
  0xf4   : > { %2835 = vmatpush1.bf16.msra.mxu0 %v4054_v39  ;;  %2552 = vmatprep.subr.bf16.mxu1 %v4064_v40  ;;  %v4155_v39 = vld [vmem:[%s5195_s1 + $0x8e0] ss:$8 sps:$4 sm:$0xff]   ;;  %v4160_v40 = vld [vmem:[%s5195_s1 + $0x8f4] ss:$8 sps:$4 sm:$0xff]  }
  0xf5   : > { %2836 = vmatprep.subr.bf16.mxu0 %v4068_v41  ;;  %v4158_v41 = vld [vmem:[%s5195_s1 + $0x8f0] ss:$8 sps:$4 sm:$0xff]  }
  0xf7   : > { %2553 = vmatpush1.bf16.msra.mxu1 %v4062_v42  ;;  %v241_v42 = vld [vmem:[%s4351_s5 + $0x1f0] sm:$0xff] }
  0xf8   : > { %2837 = vmatpush1.bf16.msra.mxu0 %v4066_v43  ;;  %2554 = vmatprep.subr.bf16.mxu1 %v4071_v44  ;;  %v4161_v43 = vld [vmem:[%s4351_s5 + $0x40] ss:$72 sps:$4 sm:$0xff]  }
  0xf9   : > { %2838 = vmatprep.subr.bf16.mxu0 %v4074_v45  ;;  %v4164_v44 = vld [vmem:[%s4351_s5 + $0x160] ss:$72 sps:$4 sm:$0xff]   ;;  %v4167_v45 = vld [vmem:[%s4351_s5 + $0xd4] ss:$72 sps:$4 sm:$0xff]  }
  0xfb   : > { %2555 = vmatpush1.bf16.msra.mxu1 %v4069_v46  ;;  %v3156_v46 = vcombine.high %v241_v42, %v241_v42 }
  0xfc   : > { %2839 = vmatpush1.bf16.msra.mxu0 %v4072_v47  ;;  %2556 = vmatprep.subr.bf16.mxu1 %v4080_v48  ;;  %v4170_v47 = vld [vmem:[%s4351_s5 + $0xd0] ss:$72 sps:$4 sm:$0xff]   ;;  %v3155_v48 = vcombine.low %v241_v42, %v241_v42 }
  0xfd   : > { %2840 = vmatprep.subr.bf16.mxu0 %v4084_v49 }
  0xff   : > { %2557 = vmatpush1.bf16.msra.mxu1 %v4078_v50 }
 0x100   : > { %2841 = vmatpush1.bf16.msra.mxu0 %v4082_v51  ;;  %2558 = vmatprep.subr.bf16.mxu1 %v4087_v52  ;;  %v532_v52 = vlaneseq }
 0x101   : > { %2842 = vmatprep.subr.bf16.mxu0 %v4090_v53 }
 0x103   : > { %2559 = vmatpush1.bf16.msra.mxu1 %v4085_v54  ;;  %v533_v54 = vshrl.u32 %v532_v52, 7 }
 0x104   : > { %2843 = vmatpush1.bf16.msra.mxu0 %v4088_v55  ;;  %3462 = vmatprep.subr.bf16.mxu1 %v4099_v56 }
 0x105   : > { %2883 = vmatprep.subr.bf16.mxu0 %v4099_v56 }
 0x106   : > { %2561 = vmatmul.mubr.bf16.vlgmr.msra.gmra.mrb[0].mxu1 %v4091_v57 }
 0x107   : > { %2845 = vmatmul.mubr.bf16.vlgmr.msra.gmra.mrb[0].mxu0 %v4094_v58  ;;  %3478 = vmatpush1.bf16.msra.mxu1 %v4097_v59  ;;  %v534_v58 = vsub.s32 0, %v533_v54 }
 0x108   : > { %2884 = vmatpush1.bf16.msra.mxu0 %v4097_v59  ;;  %3463 = vmatprep.subr.bf16.mxu1 %v4102_v60 }
 0x109   : > { %2885 = vmatprep.subr.bf16.mxu0 %v4102_v60  ;;  %2570 = vmatprep.mubr.bf16.mxu1 %v4103_v61  ;;  %v530_v60 = vld [vmem:[%s5196_s2] sm:$0x3]  ;;  %v538_v61 = vsub.s32 1, %v533_v54 }
 0x10a   : > { %2854 = vmatprep.mubr.bf16.mxu0 %v4105_v62  ;;  %v5156_v62 = vrot.slane %v530_v60, %v534_v58 }
 0x10b   : > { %3479 = vmatpush1.bf16.msra.mxu1 %v4100_v63 }
 0x10c   : > { %2886 = vmatpush1.bf16.msra.mxu0 %v4100_v63  ;;  %3464 = vmatprep.subr.bf16.mxu1 %v4111_v0  ;;  %v5158_v63 = vrot.slane %v530_v60, %v538_v61 }
 0x10d   : > { %2887 = vmatprep.subr.bf16.mxu0 %v4111_v0 }
 0x10e   : > { %2571 = vmatmul.mubr.bf16.gmra.mrb[4].mxu1 %v4107_v1 }
 0x10f   : > { %2855 = vmatmul.mubr.bf16.gmra.mrb[4].mxu0 %v4108_v2  ;;  %3480 = vmatpush1.bf16.msra.mxu1 %v4109_v3 }
 0x110   : > { %2888 = vmatpush1.bf16.msra.mxu0 %v4109_v3  ;;  %3465 = vmatprep.subr.bf16.mxu1 %v4114_v4 }
 0x111   : > { %2889 = vmatprep.subr.bf16.mxu0 %v4114_v4  ;;  %2580 = vmatprep.mubr.bf16.mxu1 %v4115_v5 }
 0x112   : > { %2864 = vmatprep.mubr.bf16.mxu0 %v4117_v6 }
 0x113   : > { %3481 = vmatpush1.bf16.msra.mxu1 %v4112_v7 }
 0x114   : > { %2890 = vmatpush1.bf16.msra.mxu0 %v4112_v7  ;;  %3466 = vmatprep.subr.bf16.mxu1 %v4123_v8 }
 0x115   : > { %2891 = vmatprep.subr.bf16.mxu0 %v4123_v8 }
 0x116   : > { %2581 = vmatmul.mubr.bf16.gmra.mrb[8].mxu1 %v4119_v9 }
 0x117   : > { %2865 = vmatmul.mubr.bf16.gmra.mrb[8].mxu0 %v4120_v10  ;;  %3482 = vmatpush1.bf16.msra.mxu1 %v4121_v13 }
 0x118   : > { %2892 = vmatpush1.bf16.msra.mxu0 %v4121_v13  ;;  %3467 = vmatprep.subr.bf16.mxu1 %v4126_v14 }
 0x119   : > { %2893 = vmatprep.subr.bf16.mxu0 %v4126_v14  ;;  %2590 = vmatprep.mubr.bf16.mxu1 %v3146_v15 }
 0x11a   : > { %2874 = vmatprep.mubr.bf16.mxu0 %v3154_v16 }
 0x11b   : > { %3483 = vmatpush1.bf16.msra.mxu1 %v4124_v17 }
 0x11c   : > { %2894 = vmatpush1.bf16.msra.mxu0 %v4124_v17  ;;  %3468 = vmatprep.subr.bf16.mxu1 %v4133_v18 }
 0x11d   : > { %2895 = vmatprep.subr.bf16.mxu0 %v4133_v18 }
 0x11e   : > { %2591 = vmatmul.mubr.bf16.gmra.mrb[12].mxu1 %v3145_v19 }
 0x11f   : > { %2875 = vmatmul.mubr.bf16.gmra.mrb[12].mxu0 %v3153_v20  ;;  %3484 = vmatpush1.bf16.msra.mxu1 %v4131_v21 }
 0x120   : > { %2896 = vmatpush1.bf16.msra.mxu0 %v4131_v21  ;;  %3469 = vmatprep.subr.bf16.mxu1 %v4136_v22 }
 0x121   : > { %2897 = vmatprep.subr.bf16.mxu0 %v4136_v22  ;;  %2915 = vmatprep.mubr.bf16.mxu0 %v4163_v23 }
 0x122   : > { %2935 = vmatprep.mubr.bf16.mxu1 %v4166_v24 }
 0x123   : > { %3485 = vmatpush1.bf16.msra.mxu1 %v4134_v25 }
 0x124   : > { %2898 = vmatpush1.bf16.msra.mxu0 %v4134_v25  ;;  %3470 = vmatprep.subr.bf16.mxu1 %v4139_v26 }
 0x125   : > { %2899 = vmatprep.subr.bf16.mxu0 %v4139_v26 }
 0x127   : > { %3486 = vmatpush1.bf16.msra.mxu1 %v4137_v27 }
 0x128   : > { %2900 = vmatpush1.bf16.msra.mxu0 %v4137_v27  ;;  %3471 = vmatprep.subr.bf16.mxu1 %v4142_v28 }
 0x129   : > { %2901 = vmatprep.subr.bf16.mxu0 %v4142_v28 }
 0x12b   : > { %3487 = vmatpush1.bf16.msra.mxu1 %v4140_v29 }
 0x12c   : > { %2902 = vmatpush1.bf16.msra.mxu0 %v4140_v29  ;;  %3472 = vmatprep.subr.bf16.mxu1 %v4145_v30 }
 0x12d   : > { %2903 = vmatprep.subr.bf16.mxu0 %v4145_v30 }
 0x12f   : > { %3488 = vmatpush1.bf16.msra.mxu1 %v4143_v31 }
 0x130   : > { %2904 = vmatpush1.bf16.msra.mxu0 %v4143_v31  ;;  %3473 = vmatprep.subr.bf16.mxu1 %v4148_v32 }
 0x131   : > { %2905 = vmatprep.subr.bf16.mxu0 %v4148_v32 }
 0x133   : > { %3489 = vmatpush1.bf16.msra.mxu1 %v4146_v33 }
 0x134   : > { %2906 = vmatpush1.bf16.msra.mxu0 %v4146_v33  ;;  %3474 = vmatprep.subr.bf16.mxu1 %v4151_v34 }
 0x135   : > { %2907 = vmatprep.subr.bf16.mxu0 %v4151_v34 }
 0x137   : > { %3490 = vmatpush1.bf16.msra.mxu1 %v4149_v35 }
 0x138   : > { %2908 = vmatpush1.bf16.msra.mxu0 %v4149_v35  ;;  %3475 = vmatprep.subr.bf16.mxu1 %v4154_v36 }
 0x139   : > { %2909 = vmatprep.subr.bf16.mxu0 %v4154_v36 }
 0x13b   : > { %3491 = vmatpush1.bf16.msra.mxu1 %v4152_v37 }
 0x13c   : > { %2910 = vmatpush1.bf16.msra.mxu0 %v4152_v37  ;;  %3476 = vmatprep.subr.bf16.mxu1 %v4157_v38 }
 0x13d   : > { %2911 = vmatprep.subr.bf16.mxu0 %v4157_v38 }
 0x13f   : > { %3492 = vmatpush1.bf16.msra.mxu1 %v4155_v39 }
 0x140   : > { %2912 = vmatpush1.bf16.msra.mxu0 %v4155_v39  ;;  %3477 = vmatprep.subr.bf16.mxu1 %v4160_v40 }
 0x141   : > { %2913 = vmatprep.subr.bf16.mxu0 %v4160_v40 }
 0x143   : > { %3493 = vmatpush1.bf16.msra.mxu1 %v4158_v41 }
 0x144   : > { %2914 = vmatpush1.bf16.msra.mxu0 %v4158_v41 }
 0x146   : > { %2936 = vmatmul.mubr.bf16.vlgmr.msra.gmra.mrb[16].mxu1 %v4164_v44 }
 0x147   : > { %2916 = vmatmul.mubr.bf16.vlgmr.msra.gmra.mrb[0].mxu0 %v4161_v43  ;;  %2945 = vmatprep.mubr.bf16.mxu1 %v3156_v46 }
 0x148   : > { %2925 = vmatprep.mubr.bf16.mxu0 %v4167_v45 }
 0x14e   : > { %2946 = vmatmul.mubr.bf16.gmra.mrb[20].mxu1 %v3155_v48 }
 0x14f   : > { %2926 = vmatmul.mubr.bf16.gmra.mrb[4].mxu0 %v4170_v47 }
 0x1d9   : > { %v2562_v49 = vpop.f32.mrb[0].mxu1 }
 0x1da   : > { %v2564_v50 = vpop.f32.mrb[1].mxu1  ;;  %v3494_v28 = vadd.f32 %v2562_v49, %v5156_v62 }
 0x1db   : > { %v2566_v51 = vpop.f32.mrb[2].mxu1  ;;  %v3496_v29 = vadd.f32 %v2564_v50, %v5158_v63 }
 0x1dc   : > { %v2568_v53 = vpop.f32.mrb[3].mxu1  ;;  %v3498_v32 = vadd.f32 %v2566_v51, %v5156_v62 }
 0x1dd   : > { %v3500_v37 = vadd.f32 %v2568_v53, %v5158_v63 }
 0x1e1   : > { %v5145_v55 = vpop.f32.mrb[4].mxu1 }
 0x1e2   : > { %v5147_v56 = vpop.f32.mrb[5].mxu1 }
 0x1e3   : > { %v5149_v57 = vpop.f32.mrb[6].mxu1 }
 0x1e4   : > { %v5151_v59 = vpop.f32.mrb[7].mxu1 }
 0x1e9   : > { %v2582_v0 = vpop.f32.mrb[8].mxu1 }
 0x1ea   : > { %v2866_v1 = vpop.f32.mrb[8].mxu0  ;;  %v3510_v2 = vadd.f32 %v2582_v0, %v5156_v62  ;;  %v2584_v3 = vpop.f32.mrb[9].mxu1  ;;  %v3502_v0 = vadd.f32 %v5145_v55, %v5156_v62 }
 0x1eb   : > { %v2868_v4 = vpop.f32.mrb[9].mxu0  ;;  %v3513_v5 = vadd.f32 %v2584_v3, %v5158_v63  ;;  %v2586_v6 = vpop.f32.mrb[10].mxu1 }
 0x1ec   : > { %v2870_v7 = vpop.f32.mrb[10].mxu0  ;;  %v3511_v8 = vadd.f32 %v3510_v2, %v2866_v1  ;;  %v3516_v9 = vadd.f32 %v2586_v6, %v5156_v62  ;;  %v2588_v10 = vpop.f32.mrb[11].mxu1  ;;  %v3504_v1 = vadd.f32 %v5147_v56, %v5158_v63  ;;  %v3506_v6 = vadd.f32 %v5149_v57, %v5156_v62 }
 0x1ed   : > { %v2872_v11 = vpop.f32.mrb[11].mxu0  ;;  %v3514_v12 = vadd.f32 %v3513_v5, %v2868_v4  ;;  %v3519_v13 = vadd.f32 %v2588_v10, %v5158_v63 }
 0x1ee   : > { %v3517_v14 = vadd.f32 %v3516_v9, %v2870_v7 }
 0x1ef   : > { %v3520_v15 = vadd.f32 %v3519_v13, %v2872_v11  ;;  %v3508_v11 = vadd.f32 %v5151_v59, %v5158_v63 }
 0x1f1   : > { %v2592_v16 = vpop.f32.mrb[12].mxu1 }
 0x1f2   : > { %v2876_v17 = vpop.f32.mrb[12].mxu0  ;;  %v3522_v18 = vadd.f32 %v2592_v16, %v5156_v62  ;;  %v2594_v19 = vpop.f32.mrb[13].mxu1 }
 0x1f3   : > { %v2878_v20 = vpop.f32.mrb[13].mxu0  ;;  %v3525_v21 = vadd.f32 %v2594_v19, %v5158_v63  ;;  %v2596_v22 = vpop.f32.mrb[14].mxu1 }
 0x1f4   : > { %v2880_v23 = vpop.f32.mrb[14].mxu0  ;;  %v3523_v24 = vadd.f32 %v3522_v18, %v2876_v17  ;;  %v2597_v25 = vpop.f32.mrb[15].mxu1 }
 0x1f5   : > { %v2881_v26 = vpop.f32.mrb[15].mxu0  ;;  %v3526_v27 = vadd.f32 %v3525_v21, %v2878_v20 }
 0x219   : > { %v2937_v31 = vpop.f32.mrb[16].mxu1 }
 0x21a   : > { %v2917_v30 = vpop.f32.mrb[0].mxu0  ;;  %v3512_v34 = vadd.f32 %v3511_v8, %v2937_v31  ;;  %v2939_v36 = vpop.f32.mrb[17].mxu1 }
 0x21b   : > { %v3495_v33 = vadd.f32 %v3494_v28, %v2917_v30  ;;  %v2919_v35 = vpop.f32.mrb[1].mxu0  ;;  %v3515_v39 = vadd.f32 %v3514_v12, %v2939_v36  ;;  %v2941_v41 = vpop.f32.mrb[18].mxu1 }
 0x21c   : > { %v3497_v38 = vadd.f32 %v3496_v29, %v2919_v35  ;;  %v2921_v40 = vpop.f32.mrb[2].mxu0  ;;  %v2962_v43 = vmax.f32 %v3512_v34, 0.0  ;;  %v3518_v45 = vadd.f32 %v3517_v14, %v2941_v41  ;;  %v2943_v47 = vpop.f32.mrb[19].mxu1 }
 0x21d   : > { %v2954_v42 = vmax.f32 %v3495_v33, 0.0  ;;  %v3499_v44 = vadd.f32 %v3498_v32, %v2921_v40  ;;  %v2923_v46 = vpop.f32.mrb[3].mxu0  ;;  %v2963_v49 = vmax.f32 %v3515_v39, 0.0  ;;  %v3521_v51 = vadd.f32 %v3520_v15, %v2943_v47 }
 0x21e   : > { %v2955_v48 = vmax.f32 %v3497_v38, 0.0  ;;  %v3501_v50 = vadd.f32 %v3500_v37, %v2923_v46  ;;  %v2964_v53 = vmax.f32 %v3518_v45, 0.0 }
 0x21f   : > { %v2956_v52 = vmax.f32 %v3499_v44, 0.0  ;;  %v3459_v58 = vpack.c.bf16 %v2963_v49, %v2962_v43  ;;  %v2965_v61 = vmax.f32 %v3521_v51, 0.0 }
 0x220   : > { %v3455_v54 = vpack.c.bf16 %v2955_v48, %v2954_v42  ;;  %v2957_v60 = vmax.f32 %v3501_v50, 0.0 }
 0x221   : > { %3016 = vst [vmem:[%s5174_s18 + $0x20] sm:$0xff] %v3459_v58  ;;  %v3460_v3 = vpack.c.bf16 %v2965_v61, %v2964_v53  ;;  %v2947_v5 = vpop.f32.mrb[20].mxu1 }
 0x222   : > { %3012 = vst [vmem:[%s5174_s18] sm:$0xff] %v3455_v54  ;;  %v3456_v2 = vpack.c.bf16 %v2957_v60, %v2956_v52  ;;  %v2927_v4 = vpop.f32.mrb[4].mxu0  ;;  %v3524_v8 = vadd.f32 %v3523_v24, %v2947_v5  ;;  %v2949_v10 = vpop.f32.mrb[21].mxu1 }
 0x223   : > { %v3503_v7 = vadd.f32 %v3502_v0, %v2927_v4  ;;  %v2929_v9 = vpop.f32.mrb[5].mxu0  ;;  %3017 = vst [vmem:[%s5174_s18 + $0x28] sm:$0xff] %v3460_v3  ;;  %v3527_v56 = vadd.f32 %v3526_v27, %v2949_v10  ;;  %v2951_v13 = vpop.f32.mrb[22].mxu1 }
 0x224   : > { %3013 = vst [vmem:[%s5174_s18 + $0x8] sm:$0xff] %v3456_v2  ;;  %v3505_v55 = vadd.f32 %v3504_v1, %v2929_v9  ;;  %v2931_v12 = vpop.f32.mrb[6].mxu0  ;;  %v2966_v15 = vmax.f32 %v3524_v8, 0.0  ;;  %v2952_v62 = vpop.f32.mrb[23].mxu1 }
 0x225   : > { %v2958_v14 = vmax.f32 %v3503_v7, 0.0  ;;  %v3507_v16 = vadd.f32 %v3506_v6, %v2931_v12  ;;  %v2933_v57 = vpop.f32.mrb[7].mxu0  ;;  %v2967_v18 = vmax.f32 %v3527_v56, 0.0 }
 0x226   : > { %v2959_v17 = vmax.f32 %v3505_v55, 0.0  ;;  %v3509_v19 = vadd.f32 %v3508_v11, %v2933_v57 }
 0x227   : > { %v2960_v20 = vmax.f32 %v3507_v16, 0.0  ;;  %v3461_v59 = vpack.c.bf16 %v2967_v18, %v2966_v15 }
 0x228   : > { %v3457_v21 = vpack.c.bf16 %v2959_v17, %v2958_v14  ;;  %v2961_v63 = vmax.f32 %v3509_v19, 0.0 }
 0x229   : > { %3018 = vst [vmem:[%s5174_s18 + $0x30] sm:$0xff] %v3461_v59 }
 0x22a   : > { %3014 = vst [vmem:[%s5174_s18 + $0x10] sm:$0xff] %v3457_v21  ;;  %v3458_v22 = vpack.c.bf16 %v2961_v63, %v2960_v20 }
 0x22c   : > { %3015 = vst [vmem:[%s5174_s18 + $0x18] sm:$0xff] %v3458_v22 }
 0x22d PF: > { %s13_s12 = sadd.s32 1, %s4178_s12  }
 0x22e   : > { %p10_p4 = scmp.ge.s32.totalorder %s13_s12, 4  }
 0x230   :  { %12 = sbr.rel (!%p10_p4) target bundleno = 1 (0x1), region = 62 }

// kernel: mnist_encoder_forward.6
= control target key start
LH: loop header
LB: loop body
LE: loop exit
PB: predicated region body
PF: predicated region fallthrough
CT: control target
= control target key end

     0   :  { %s3345_s12 = smov 0   ;;  %s4255_s0 = inlined_call_operand.vmem [shape: bf16[32,2304], index: 0, kind: input, shape index: {}]   ;;  %s4256_s1 = inlined_call_operand.vmem [shape: bf16[2304,256], index: 1, kind: input, shape index: {}]   ;;  %s4257_s2 = inlined_call_operand.vmem [shape: f32[1,256], index: 2, kind: input, shape index: {}]   ;;  %s4258_s3 = inlined_call_operand.vmem [shape: bf16[32,256], index: 3, kind: output, shape index: {}]  }
   0x1 LB: > { %s2490_s13 = sadd.s32 4294967295, %s3323_s12   ;;  %p2494_p0 = scmp.ge.s32.totalorder %s3323_s12, 1  ;;  %s3323_s12 = sphi %s3345_s12, %s13_s12  }
   0x2   : > { %p139_p1 = scmp.lt.s32.totalorder %s3323_s12, 3 }
   0x4   : > { %p140_p2 = pnand %p2494_p0, %p139_p1 }
   0x5   : > { %v2858_v0 = vld [vmem:[%s4256_s1 + $0x4] ss:$8 sps:$4 sm:$0xff] (!%p140_p2)   ;;  %v2862_v2 = vld [vmem:[%s4256_s1] ss:$8 sps:$4 sm:$0xff] (!%p140_p2)   ;;  %v2864_v4 = vld [vmem:[%s4256_s1 + $0x14] ss:$8 sps:$4 sm:$0xff] (!%p140_p2)  }
   0x6   : > { %143 = sbr.rel (%p140_p2) target bundleno = 549 (0x225), region = 32  ;;  %v2860_v1 = vld [vmem:[%s4256_s1 + $0x404] ss:$8 sps:$4 sm:$0xff] (!%p140_p2)   ;;  %2027 = vmatprep.subr.bf16.mxu1 (!%p140_p2), %v2858_v0  ;;  %v2863_v3 = vld [vmem:[%s4256_s1 + $0x400] ss:$8 sps:$4 sm:$0xff] (!%p140_p2)   ;;  %s2495_s24 = sshll.u32 (!%p140_p2), %s2490_s13, 1 }
   0x7   : > { %2199 = vmatprep.subr.bf16.mxu0 (!%p140_p2), %v2860_v1  ;;  %2028 = vmatpush1.bf16.msra.mxu1 (!%p140_p2), %v2862_v2  ;;  %v2866_v5 = vld [vmem:[%s4256_s1 + $0x414] ss:$8 sps:$4 sm:$0xff] (!%p140_p2)   ;;  %v2868_v6 = vld [vmem:[%s4256_s1 + $0x10] ss:$8 sps:$4 sm:$0xff] (!%p140_p2)   ;;  %v2870_v8 = vld [vmem:[%s4256_s1 + $0x24] ss:$8 sps:$4 sm:$0xff] (!%p140_p2)  }
   0x8   : > { %2200 = vmatpush1.bf16.msra.mxu0 (!%p140_p2), %v2863_v3  ;;  %2029 = vmatprep.subr.bf16.mxu1 (!%p140_p2), %v2864_v4  ;;  %v2869_v7 = vld [vmem:[%s4256_s1 + $0x410] ss:$8 sps:$4 sm:$0xff] (!%p140_p2)   ;;  %v2872_v9 = vld [vmem:[%s4256_s1 + $0x424] ss:$8 sps:$4 sm:$0xff] (!%p140_p2)   ;;  %v2874_v10 = vld [vmem:[%s4256_s1 + $0x20] ss:$8 sps:$4 sm:$0xff] (!%p140_p2)  }
   0x9   : > { %2201 = vmatprep.subr.bf16.mxu0 (!%p140_p2), %v2866_v5  ;;  %v2875_v11 = vld [vmem:[%s4256_s1 + $0x420] ss:$8 sps:$4 sm:$0xff] (!%p140_p2)   ;;  %v2876_v12 = vld [vmem:[%s4256_s1 + $0x34] ss:$8 sps:$4 sm:$0xff] (!%p140_p2)   ;;  %v2880_v14 = vld [vmem:[%s4256_s1 + $0x30] ss:$8 sps:$4 sm:$0xff] (!%p140_p2)  }
   0xa   : > { %v2878_v13 = vld [vmem:[%s4256_s1 + $0x434] ss:$8 sps:$4 sm:$0xff] (!%p140_p2)   ;;  %v2881_v15 = vld [vmem:[%s4256_s1 + $0x430] ss:$8 sps:$4 sm:$0xff] (!%p140_p2)   ;;  %v2882_v16 = vld [vmem:[%s4256_s1 + $0x44] ss:$8 sps:$4 sm:$0xff] (!%p140_p2)  }
   0xb   : > { %2030 = vmatpush1.bf16.msra.mxu1 (!%p140_p2), %v2868_v6  ;;  %v2884_v17 = vld [vmem:[%s4256_s1 + $0x444] ss:$8 sps:$4 sm:$0xff] (!%p140_p2)   ;;  %v2886_v18 = vld [vmem:[%s4256_s1 + $0x40] ss:$8 sps:$4 sm:$0xff] (!%p140_p2)   ;;  %v2888_v20 = vld [vmem:[%s4256_s1 + $0x54] ss:$8 sps:$4 sm:$0xff] (!%p140_p2)  }
   0xc   : > { %2202 = vmatpush1.bf16.msra.mxu0 (!%p140_p2), %v2869_v7  ;;  %2031 = vmatprep.subr.bf16.mxu1 (!%p140_p2), %v2870_v8  ;;  %v2887_v19 = vld [vmem:[%s4256_s1 + $0x440] ss:$8 sps:$4 sm:$0xff] (!%p140_p2)   ;;  %v2890_v21 = vld [vmem:[%s4256_s1 + $0x454] ss:$8 sps:$4 sm:$0xff] (!%p140_p2)   ;;  %v2892_v22 = vld [vmem:[%s4256_s1 + $0x50] ss:$8 sps:$4 sm:$0xff] (!%p140_p2)  }
   0xd   : > { %2203 = vmatprep.subr.bf16.mxu0 %v2872_v9  ;;  %v2893_v23 = vld [vmem:[%s4256_s1 + $0x450] ss:$8 sps:$4 sm:$0xff]   ;;  %v2894_v24 = vld [vmem:[%s4256_s1 + $0x64] ss:$8 sps:$4 sm:$0xff]   ;;  %v2898_v26 = vld [vmem:[%s4256_s1 + $0x60] ss:$8 sps:$4 sm:$0xff]  }
   0xe   : > { %v2896_v25 = vld [vmem:[%s4256_s1 + $0x464] ss:$8 sps:$4 sm:$0xff]   ;;  %v2899_v27 = vld [vmem:[%s4256_s1 + $0x460] ss:$8 sps:$4 sm:$0xff]   ;;  %v2900_v28 = vld [vmem:[%s4256_s1 + $0x74] ss:$8 sps:$4 sm:$0xff]  }
   0xf   : > { %2032 = vmatpush1.bf16.msra.mxu1 %v2874_v10  ;;  %v2902_v29 = vld [vmem:[%s4256_s1 + $0x474] ss:$8 sps:$4 sm:$0xff]   ;;  %v2904_v30 = vld [vmem:[%s4256_s1 + $0x70] ss:$8 sps:$4 sm:$0xff]   ;;  %v2906_v32 = vld [vmem:[%s4256_s1 + $0x84] ss:$8 sps:$4 sm:$0xff]  }
  0x10   : > { %2204 = vmatpush1.bf16.msra.mxu0 %v2875_v11  ;;  %2033 = vmatprep.subr.bf16.mxu1 %v2876_v12  ;;  %v2905_v31 = vld [vmem:[%s4256_s1 + $0x470] ss:$8 sps:$4 sm:$0xff]   ;;  %p166_p3 = scmp.lt.s32.totalorder %s2495_s24, 3  ;;  %v2908_v33 = vld [vmem:[%s4256_s1 + $0x484] ss:$8 sps:$4 sm:$0xff]  }
  0x11   : > { %2205 = vmatprep.subr.bf16.mxu0 %v2878_v13  ;;  %v2910_v34 = vld [vmem:[%s4256_s1 + $0x80] ss:$8 sps:$4 sm:$0xff]   ;;  %v2912_v36 = vld [vmem:[%s4256_s1 + $0x94] ss:$8 sps:$4 sm:$0xff]   ;;  %v2916_v38 = vld [vmem:[%s4256_s1 + $0x90] ss:$8 sps:$4 sm:$0xff]  }
  0x12   : > { %v2911_v35 = vld [vmem:[%s4256_s1 + $0x480] ss:$8 sps:$4 sm:$0xff]   ;;  %s4260_s24 = smov (!%p166_p3, %s2495_s24), 3  ;;  %v2914_v37 = vld [vmem:[%s4256_s1 + $0x494] ss:$8 sps:$4 sm:$0xff]  }
  0x13   : > { %2034 = vmatpush1.bf16.msra.mxu1 %v2880_v14  ;;  %v2917_v39 = vld [vmem:[%s4256_s1 + $0x490] ss:$8 sps:$4 sm:$0xff]   ;;  %v2918_v40 = vld [vmem:[%s4256_s1 + $0xa4] ss:$8 sps:$4 sm:$0xff]   ;;  %s2849_s21 = smul.u32 72, %s4260_s24 }
  0x14   : > { %2206 = vmatpush1.bf16.msra.mxu0 %v2881_v15  ;;  %2035 = vmatprep.subr.bf16.mxu1 %v2882_v16  ;;  %v2920_v41 = vld [vmem:[%s4256_s1 + $0x4a4] ss:$8 sps:$4 sm:$0xff]   ;;  %v2922_v42 = vld [vmem:[%s4256_s1 + $0xa0] ss:$8 sps:$4 sm:$0xff]   ;;  %v2924_v44 = vld [vmem:[%s4256_s1 + $0xb4] ss:$8 sps:$4 sm:$0xff]  }
  0x15   : > { %2207 = vmatprep.subr.bf16.mxu0 %v2884_v17  ;;  %v2923_v43 = vld [vmem:[%s4256_s1 + $0x4a0] ss:$8 sps:$4 sm:$0xff]   ;;  %s3496_s13 = scalar_lea.vmem %s4255_s0, %s2849_s21  ;;  %v2926_v45 = vld [vmem:[%s4256_s1 + $0x4b4] ss:$8 sps:$4 sm:$0xff]   ;;  %v2928_v46 = vld [vmem:[%s4256_s1 + $0xb0] ss:$8 sps:$4 sm:$0xff]  }
  0x16   : > { %v2929_v47 = vld [vmem:[%s4256_s1 + $0x4b0] ss:$8 sps:$4 sm:$0xff]   ;;  %v2956_v48 = vld [vmem:[%s3496_s13 + $0x4] ss:$72 sps:$4 sm:$0xff]   ;;  %v2934_v52 = vld [vmem:[%s4256_s1 + $0xc0] ss:$8 sps:$4 sm:$0xff]  }
  0x17   : > { %2036 = vmatpush1.bf16.msra.mxu1 %v2886_v18  ;;  %v2930_v49 = vld [vmem:[%s4256_s1 + $0xc4] ss:$8 sps:$4 sm:$0xff]   ;;  %2059 = vmatprep.mubr.bf16.mxu1 %v2956_v48  ;;  %v2935_v53 = vld [vmem:[%s4256_s1 + $0x4c0] ss:$8 sps:$4 sm:$0xff]   ;;  %v2936_v54 = vld [vmem:[%s4256_s1 + $0xd4] ss:$8 sps:$4 sm:$0xff]  }
  0x18   : > { %2208 = vmatpush1.bf16.msra.mxu0 %v2887_v19  ;;  %2037 = vmatprep.subr.bf16.mxu1 %v2888_v20  ;;  %v2932_v50 = vld [vmem:[%s4256_s1 + $0x4c4] ss:$8 sps:$4 sm:$0xff]   ;;  %v2938_v55 = vld [vmem:[%s4256_s1 + $0x4d4] ss:$8 sps:$4 sm:$0xff]   ;;  %v2940_v56 = vld [vmem:[%s4256_s1 + $0xd0] ss:$8 sps:$4 sm:$0xff]  }
  0x19   : > { %2209 = vmatprep.subr.bf16.mxu0 %v2890_v21  ;;  %v2962_v51 = vld [vmem:[%s3496_s13 + $0x24] ss:$72 sps:$4 sm:$0xff]   ;;  %v2941_v57 = vld [vmem:[%s4256_s1 + $0x4d0] ss:$8 sps:$4 sm:$0xff]   ;;  %v2946_v60 = vld [vmem:[%s4256_s1 + $0xe0] ss:$8 sps:$4 sm:$0xff]  }
  0x1a   : > { %2231 = vmatprep.mubr.bf16.mxu0 %v2962_v51  ;;  %v2942_v58 = vld [vmem:[%s4256_s1 + $0xe4] ss:$8 sps:$4 sm:$0xff]   ;;  %v2947_v61 = vld [vmem:[%s4256_s1 + $0x4e0] ss:$8 sps:$4 sm:$0xff]   ;;  %v2948_v62 = vld [vmem:[%s4256_s1 + $0xf4] ss:$8 sps:$4 sm:$0xff]  }
  0x1b   : > { %2038 = vmatpush1.bf16.msra.mxu1 %v2892_v22  ;;  %v2944_v59 = vld [vmem:[%s4256_s1 + $0x4e4] ss:$8 sps:$4 sm:$0xff]   ;;  %v2950_v63 = vld [vmem:[%s4256_s1 + $0x4f4] ss:$8 sps:$4 sm:$0xff]   ;;  %v2952_v0 = vld [vmem:[%s4256_s1 + $0xf0] ss:$8 sps:$4 sm:$0xff]  }
  0x1c   : > { %2210 = vmatpush1.bf16.msra.mxu0 %v2893_v23  ;;  %2039 = vmatprep.subr.bf16.mxu1 %v2894_v24  ;;  %v2953_v1 = vld [vmem:[%s4256_s1 + $0x4f0] ss:$8 sps:$4 sm:$0xff]   ;;  %v2959_v2 = vld [vmem:[%s4256_s1 + $0x104] ss:$8 sps:$4 sm:$0xff]   ;;  %v2954_v4 = vld [vmem:[%s3496_s13] ss:$72 sps:$4 sm:$0xff]  }
  0x1d   : > { %2211 = vmatprep.subr.bf16.mxu0 %v2896_v25  ;;  %v2965_v3 = vld [vmem:[%s4256_s1 + $0x504] ss:$8 sps:$4 sm:$0xff]   ;;  %v2957_v5 = vld [vmem:[%s4256_s1 + $0x100] ss:$8 sps:$4 sm:$0xff]   ;;  %v2968_v8 = vld [vmem:[%s4256_s1 + $0x114] ss:$8 sps:$4 sm:$0xff]  }
  0x1e   : > { %v2960_v6 = vld [vmem:[%s3496_s13 + $0x20] ss:$72 sps:$4 sm:$0xff]   ;;  %v2971_v9 = vld [vmem:[%s4256_s1 + $0x514] ss:$8 sps:$4 sm:$0xff]   ;;  %v2966_v10 = vld [vmem:[%s4256_s1 + $0x110] ss:$8 sps:$4 sm:$0xff]  }
  0x1f   : > { %2040 = vmatpush1.bf16.msra.mxu1 %v2898_v26  ;;  %v2963_v7 = vld [vmem:[%s4256_s1 + $0x500] ss:$8 sps:$4 sm:$0xff]   ;;  %v2969_v11 = vld [vmem:[%s4256_s1 + $0x510] ss:$8 sps:$4 sm:$0xff]   ;;  %v2974_v12 = vld [vmem:[%s4256_s1 + $0x124] ss:$8 sps:$4 sm:$0xff]  }
  0x20   : > { %2212 = vmatpush1.bf16.msra.mxu0 %v2899_v27  ;;  %2041 = vmatprep.subr.bf16.mxu1 %v2900_v28  ;;  %v2977_v13 = vld [vmem:[%s4256_s1 + $0x524] ss:$8 sps:$4 sm:$0xff]   ;;  %v2972_v14 = vld [vmem:[%s4256_s1 + $0x120] ss:$8 sps:$4 sm:$0xff]   ;;  %v2980_v16 = vld [vmem:[%s4256_s1 + $0x134] ss:$8 sps:$4 sm:$0xff]  }
  0x21   : > { %2213 = vmatprep.subr.bf16.mxu0 %v2902_v29  ;;  %v2975_v15 = vld [vmem:[%s4256_s1 + $0x520] ss:$8 sps:$4 sm:$0xff]   ;;  %v2983_v17 = vld [vmem:[%s4256_s1 + $0x534] ss:$8 sps:$4 sm:$0xff]   ;;  %v2978_v18 = vld [vmem:[%s4256_s1 + $0x130] ss:$8 sps:$4 sm:$0xff]  }
  0x22   : > { %v2981_v19 = vld [vmem:[%s4256_s1 + $0x530] ss:$8 sps:$4 sm:$0xff]   ;;  %v2986_v20 = vld [vmem:[%s4256_s1 + $0x144] ss:$8 sps:$4 sm:$0xff]   ;;  %v2984_v22 = vld [vmem:[%s4256_s1 + $0x140] ss:$8 sps:$4 sm:$0xff]  }
  0x23   : > { %2042 = vmatpush1.bf16.msra.mxu1 %v2904_v30  ;;  %v2989_v21 = vld [vmem:[%s4256_s1 + $0x544] ss:$8 sps:$4 sm:$0xff]   ;;  %v2987_v23 = vld [vmem:[%s4256_s1 + $0x540] ss:$8 sps:$4 sm:$0xff]   ;;  %v2992_v24 = vld [vmem:[%s4256_s1 + $0x154] ss:$8 sps:$4 sm:$0xff]  }
  0x24   : > { %2214 = vmatpush1.bf16.msra.mxu0 %v2905_v31  ;;  %2043 = vmatprep.subr.bf16.mxu1 %v2906_v32  ;;  %v2995_v25 = vld [vmem:[%s4256_s1 + $0x554] ss:$8 sps:$4 sm:$0xff]   ;;  %v2990_v26 = vld [vmem:[%s4256_s1 + $0x150] ss:$8 sps:$4 sm:$0xff]   ;;  %v2998_v28 = vld [vmem:[%s4256_s1 + $0x164] ss:$8 sps:$4 sm:$0xff]  }
  0x25   : > { %2215 = vmatprep.subr.bf16.mxu0 %v2908_v33  ;;  %v2993_v27 = vld [vmem:[%s4256_s1 + $0x550] ss:$8 sps:$4 sm:$0xff]   ;;  %v3001_v29 = vld [vmem:[%s4256_s1 + $0x564] ss:$8 sps:$4 sm:$0xff]   ;;  %v2996_v30 = vld [vmem:[%s4256_s1 + $0x160] ss:$8 sps:$4 sm:$0xff]  }
  0x26   : > { %v2999_v31 = vld [vmem:[%s4256_s1 + $0x560] ss:$8 sps:$4 sm:$0xff]   ;;  %v3004_v32 = vld [vmem:[%s4256_s1 + $0x174] ss:$8 sps:$4 sm:$0xff]  }
  0x27   : > { %2044 = vmatpush1.bf16.msra.mxu1 %v2910_v34  ;;  %v3007_v33 = vld [vmem:[%s4256_s1 + $0x574] ss:$8 sps:$4 sm:$0xff]   ;;  %v3020_v48 = vld [vmem:[%s4256_s1 + $0x1a0] ss:$8 sps:$4 sm:$0xff]  }
  0x28   : > { %2216 = vmatpush1.bf16.msra.mxu0 %v2911_v35  ;;  %2045 = vmatprep.subr.bf16.mxu1 %v2912_v36  ;;  %v3058_v34 = vld [vmem:[%s3496_s13 + $0xc] ss:$72 sps:$4 sm:$0xff]   ;;  %v3002_v35 = vld [vmem:[%s4256_s1 + $0x170] ss:$8 sps:$4 sm:$0xff]  }
  0x29   : > { %2217 = vmatprep.subr.bf16.mxu0 %v2914_v37  ;;  %v3005_v36 = vld [vmem:[%s4256_s1 + $0x570] ss:$8 sps:$4 sm:$0xff]   ;;  %v3064_v37 = vld [vmem:[%s3496_s13 + $0x2c] ss:$72 sps:$4 sm:$0xff]  }
  0x2a   : > { %v3031_v51 = vld [vmem:[%s4256_s1 + $0x5b4] ss:$8 sps:$4 sm:$0xff]  }
  0x2b   : > { %2046 = vmatpush1.bf16.msra.mxu1 %v2916_v38  ;;  %v3010_v38 = vld [vmem:[%s4256_s1 + $0x184] ss:$8 sps:$4 sm:$0xff]  }
  0x2c   : > { %2218 = vmatpush1.bf16.msra.mxu0 %v2917_v39  ;;  %2047 = vmatprep.subr.bf16.mxu1 %v2918_v40  ;;  %v3013_v39 = vld [vmem:[%s4256_s1 + $0x584] ss:$8 sps:$4 sm:$0xff]   ;;  %v3008_v40 = vld [vmem:[%s4256_s1 + $0x180] ss:$8 sps:$4 sm:$0xff]  }
  0x2d   : > { %2219 = vmatprep.subr.bf16.mxu0 %v2920_v41  ;;  %v3011_v41 = vld [vmem:[%s4256_s1 + $0x580] ss:$8 sps:$4 sm:$0xff]  }
  0x2f   : > { %2048 = vmatpush1.bf16.msra.mxu1 %v2922_v42  ;;  %v3016_v42 = vld [vmem:[%s4256_s1 + $0x194] ss:$8 sps:$4 sm:$0xff]  }
  0x30   : > { %2220 = vmatpush1.bf16.msra.mxu0 %v2923_v43  ;;  %2049 = vmatprep.subr.bf16.mxu1 %v2924_v44  ;;  %v3019_v43 = vld [vmem:[%s4256_s1 + $0x594] ss:$8 sps:$4 sm:$0xff]   ;;  %v3014_v44 = vld [vmem:[%s4256_s1 + $0x190] ss:$8 sps:$4 sm:$0xff]  }
  0x31   : > { %2221 = vmatprep.subr.bf16.mxu0 %v2926_v45  ;;  %v3017_v45 = vld [vmem:[%s4256_s1 + $0x590] ss:$8 sps:$4 sm:$0xff]  }
  0x33   : > { %2050 = vmatpush1.bf16.msra.mxu1 %v2928_v46  ;;  %v3022_v46 = vld [vmem:[%s4256_s1 + $0x1a4] ss:$8 sps:$4 sm:$0xff]  }
  0x34   : > { %2222 = vmatpush1.bf16.msra.mxu0 %v2929_v47  ;;  %2051 = vmatprep.subr.bf16.mxu1 %v2930_v49  ;;  %v3025_v47 = vld [vmem:[%s4256_s1 + $0x5a4] ss:$8 sps:$4 sm:$0xff]   ;;  %v3023_v49 = vld [vmem:[%s4256_s1 + $0x5a0] ss:$8 sps:$4 sm:$0xff]  }
  0x35   : > { %2223 = vmatprep.subr.bf16.mxu0 %v2932_v50  ;;  %v3028_v50 = vld [vmem:[%s4256_s1 + $0x1b4] ss:$8 sps:$4 sm:$0xff]  }
  0x37   : > { %2052 = vmatpush1.bf16.msra.mxu1 %v2934_v52  ;;  %v3026_v52 = vld [vmem:[%s4256_s1 + $0x1b0] ss:$8 sps:$4 sm:$0xff]  }
  0x38   : > { %2224 = vmatpush1.bf16.msra.mxu0 %v2935_v53  ;;  %2053 = vmatprep.subr.bf16.mxu1 %v2936_v54  ;;  %v3029_v53 = vld [vmem:[%s4256_s1 + $0x5b0] ss:$8 sps:$4 sm:$0xff]   ;;  %v3034_v54 = vld [vmem:[%s4256_s1 + $0x1c4] ss:$8 sps:$4 sm:$0xff]  }
  0x39   : > { %2225 = vmatprep.subr.bf16.mxu0 %v2938_v55  ;;  %v3037_v55 = vld [vmem:[%s4256_s1 + $0x5c4] ss:$8 sps:$4 sm:$0xff]  }
  0x3b   : > { %2054 = vmatpush1.bf16.msra.mxu1 %v2940_v56  ;;  %v3032_v56 = vld [vmem:[%s4256_s1 + $0x1c0] ss:$8 sps:$4 sm:$0xff]  }
  0x3c   : > { %2226 = vmatpush1.bf16.msra.mxu0 %v2941_v57  ;;  %2055 = vmatprep.subr.bf16.mxu1 %v2942_v58  ;;  %v3035_v57 = vld [vmem:[%s4256_s1 + $0x5c0] ss:$8 sps:$4 sm:$0xff]   ;;  %v3040_v58 = vld [vmem:[%s4256_s1 + $0x1d4] ss:$8 sps:$4 sm:$0xff]  }
  0x3d   : > { %2227 = vmatprep.subr.bf16.mxu0 %v2944_v59  ;;  %v3043_v59 = vld [vmem:[%s4256_s1 + $0x5d4] ss:$8 sps:$4 sm:$0xff]  }
  0x3f   : > { %2056 = vmatpush1.bf16.msra.mxu1 %v2946_v60  ;;  %v3038_v60 = vld [vmem:[%s4256_s1 + $0x1d0] ss:$8 sps:$4 sm:$0xff]  }
  0x40   : > { %2228 = vmatpush1.bf16.msra.mxu0 %v2947_v61  ;;  %2057 = vmatprep.subr.bf16.mxu1 %v2948_v62  ;;  %v3041_v61 = vld [vmem:[%s4256_s1 + $0x5d0] ss:$8 sps:$4 sm:$0xff]   ;;  %v3046_v62 = vld [vmem:[%s4256_s1 + $0x1e4] ss:$8 sps:$4 sm:$0xff]  }
  0x41   : > { %2229 = vmatprep.subr.bf16.mxu0 %v2950_v63  ;;  %v3049_v63 = vld [vmem:[%s4256_s1 + $0x5e4] ss:$8 sps:$4 sm:$0xff]  }
  0x43   : > { %2058 = vmatpush1.bf16.msra.mxu1 %v2952_v0  ;;  %v3044_v0 = vld [vmem:[%s4256_s1 + $0x1e0] ss:$8 sps:$4 sm:$0xff]  }
  0x44   : > { %2230 = vmatpush1.bf16.msra.mxu0 %v2953_v1  ;;  %2070 = vmatprep.subr.bf16.mxu1 %v2959_v2  ;;  %v3047_v1 = vld [vmem:[%s4256_s1 + $0x5e0] ss:$8 sps:$4 sm:$0xff]   ;;  %v3052_v2 = vld [vmem:[%s4256_s1 + $0x1f4] ss:$8 sps:$4 sm:$0xff]  }
  0x45   : > { %2242 = vmatprep.subr.bf16.mxu0 %v2965_v3  ;;  %v3055_v3 = vld [vmem:[%s4256_s1 + $0x5f4] ss:$8 sps:$4 sm:$0xff]  }
  0x46   : > { %2060 = vmatmul.mubr.bf16.vlgmr.msra.gmra.mrb[0].mxu1 %v2954_v4  ;;  %v3050_v4 = vld [vmem:[%s4256_s1 + $0x1f0] ss:$8 sps:$4 sm:$0xff]  }
  0x47   : > { %2232 = vmatmul.mubr.bf16.vlgmr.msra.gmra.mrb[0].mxu0 %v2960_v6  ;;  %2071 = vmatpush1.bf16.msra.mxu1 %v2957_v5  ;;  %v3053_v5 = vld [vmem:[%s4256_s1 + $0x5f0] ss:$8 sps:$4 sm:$0xff]   ;;  %v3061_v6 = vld [vmem:[%s4256_s1 + $0x204] ss:$8 sps:$4 sm:$0xff]  }
  0x48   : > { %2243 = vmatpush1.bf16.msra.mxu0 %v2963_v7  ;;  %2072 = vmatprep.subr.bf16.mxu1 %v2968_v8  ;;  %v3067_v7 = vld [vmem:[%s4256_s1 + $0x604] ss:$8 sps:$4 sm:$0xff]   ;;  %v3056_v8 = vld [vmem:[%s3496_s13 + $0x8] ss:$72 sps:$4 sm:$0xff]  }
  0x49   : > { %2244 = vmatprep.subr.bf16.mxu0 %v2971_v9  ;;  %2102 = vmatprep.mubr.bf16.mxu1 %v3058_v34  ;;  %v3059_v9 = vld [vmem:[%s4256_s1 + $0x200] ss:$8 sps:$4 sm:$0xff]   ;;  %v3100_v34 = vld [vmem:[%s4256_s1 + $0x264] ss:$8 sps:$4 sm:$0xff]  }
  0x4a   : > { %2274 = vmatprep.mubr.bf16.mxu0 %v3064_v37  ;;  %v3101_v37 = vld [vmem:[%s4256_s1 + $0x660] ss:$8 sps:$4 sm:$0xff]  }
  0x4b   : > { %2073 = vmatpush1.bf16.msra.mxu1 %v2966_v10  ;;  %v3062_v10 = vld [vmem:[%s3496_s13 + $0x28] ss:$72 sps:$4 sm:$0xff]  }
  0x4c   : > { %2245 = vmatpush1.bf16.msra.mxu0 %v2969_v11  ;;  %2074 = vmatprep.subr.bf16.mxu1 %v2974_v12  ;;  %v3065_v11 = vld [vmem:[%s4256_s1 + $0x600] ss:$8 sps:$4 sm:$0xff]   ;;  %v3070_v12 = vld [vmem:[%s4256_s1 + $0x214] ss:$8 sps:$4 sm:$0xff]  }
  0x4d   : > { %2246 = vmatprep.subr.bf16.mxu0 %v2977_v13  ;;  %v3073_v13 = vld [vmem:[%s4256_s1 + $0x614] ss:$8 sps:$4 sm:$0xff]  }
  0x4f   : > { %2075 = vmatpush1.bf16.msra.mxu1 %v2972_v14  ;;  %v3068_v14 = vld [vmem:[%s4256_s1 + $0x210] ss:$8 sps:$4 sm:$0xff]  }
  0x50   : > { %2247 = vmatpush1.bf16.msra.mxu0 %v2975_v15  ;;  %2076 = vmatprep.subr.bf16.mxu1 %v2980_v16  ;;  %v3071_v15 = vld [vmem:[%s4256_s1 + $0x610] ss:$8 sps:$4 sm:$0xff]   ;;  %v3076_v16 = vld [vmem:[%s4256_s1 + $0x224] ss:$8 sps:$4 sm:$0xff]  }
  0x51   : > { %2248 = vmatprep.subr.bf16.mxu0 %v2983_v17  ;;  %v3079_v17 = vld [vmem:[%s4256_s1 + $0x624] ss:$8 sps:$4 sm:$0xff]  }
  0x53   : > { %2077 = vmatpush1.bf16.msra.mxu1 %v2978_v18  ;;  %v3074_v18 = vld [vmem:[%s4256_s1 + $0x220] ss:$8 sps:$4 sm:$0xff]  }
  0x54   : > { %2249 = vmatpush1.bf16.msra.mxu0 %v2981_v19  ;;  %2078 = vmatprep.subr.bf16.mxu1 %v2986_v20  ;;  %v3160_v19 = vld [vmem:[%s3496_s13 + $0x14] ss:$72 sps:$4 sm:$0xff]   ;;  %v3077_v20 = vld [vmem:[%s4256_s1 + $0x620] ss:$8 sps:$4 sm:$0xff]  }
  0x55   : > { %2250 = vmatprep.subr.bf16.mxu0 %v2989_v21  ;;  %v3082_v21 = vld [vmem:[%s4256_s1 + $0x234] ss:$8 sps:$4 sm:$0xff]  }
  0x57   : > { %2079 = vmatpush1.bf16.msra.mxu1 %v2984_v22  ;;  %v3085_v22 = vld [vmem:[%s4256_s1 + $0x634] ss:$8 sps:$4 sm:$0xff]  }
  0x58   : > { %2251 = vmatpush1.bf16.msra.mxu0 %v2987_v23  ;;  %2080 = vmatprep.subr.bf16.mxu1 %v2992_v24  ;;  %v3166_v23 = vld [vmem:[%s3496_s13 + $0x34] ss:$72 sps:$4 sm:$0xff]   ;;  %v3080_v24 = vld [vmem:[%s4256_s1 + $0x230] ss:$8 sps:$4 sm:$0xff]  }
  0x59   : > { %2252 = vmatprep.subr.bf16.mxu0 %v2995_v25  ;;  %v3083_v25 = vld [vmem:[%s4256_s1 + $0x630] ss:$8 sps:$4 sm:$0xff]  }
  0x5b   : > { %2081 = vmatpush1.bf16.msra.mxu1 %v2990_v26  ;;  %v3088_v26 = vld [vmem:[%s4256_s1 + $0x244] ss:$8 sps:$4 sm:$0xff]  }
  0x5c   : > { %2253 = vmatpush1.bf16.msra.mxu0 %v2993_v27  ;;  %2082 = vmatprep.subr.bf16.mxu1 %v2998_v28  ;;  %v3091_v27 = vld [vmem:[%s4256_s1 + $0x644] ss:$8 sps:$4 sm:$0xff]   ;;  %v3086_v28 = vld [vmem:[%s4256_s1 + $0x240] ss:$8 sps:$4 sm:$0xff]  }
  0x5d   : > { %2254 = vmatprep.subr.bf16.mxu0 %v3001_v29  ;;  %v3089_v29 = vld [vmem:[%s4256_s1 + $0x640] ss:$8 sps:$4 sm:$0xff]  }
  0x5f   : > { %2083 = vmatpush1.bf16.msra.mxu1 %v2996_v30  ;;  %v3094_v30 = vld [vmem:[%s4256_s1 + $0x254] ss:$8 sps:$4 sm:$0xff]  }
  0x60   : > { %2255 = vmatpush1.bf16.msra.mxu0 %v2999_v31  ;;  %2084 = vmatprep.subr.bf16.mxu1 %v3004_v32  ;;  %v3097_v31 = vld [vmem:[%s4256_s1 + $0x654] ss:$8 sps:$4 sm:$0xff]   ;;  %v3092_v32 = vld [vmem:[%s4256_s1 + $0x250] ss:$8 sps:$4 sm:$0xff]  }
  0x61   : > { %2256 = vmatprep.subr.bf16.mxu0 %v3007_v33  ;;  %v3095_v33 = vld [vmem:[%s4256_s1 + $0x650] ss:$8 sps:$4 sm:$0xff]  }
  0x63   : > { %2085 = vmatpush1.bf16.msra.mxu1 %v3002_v35  ;;  %v3103_v35 = vld [vmem:[%s4256_s1 + $0x664] ss:$8 sps:$4 sm:$0xff]  }
  0x64   : > { %2257 = vmatpush1.bf16.msra.mxu0 %v3005_v36  ;;  %2086 = vmatprep.subr.bf16.mxu1 %v3010_v38  ;;  %v3098_v36 = vld [vmem:[%s4256_s1 + $0x260] ss:$8 sps:$4 sm:$0xff]   ;;  %v3106_v38 = vld [vmem:[%s4256_s1 + $0x274] ss:$8 sps:$4 sm:$0xff]  }
  0x65   : > { %2258 = vmatprep.subr.bf16.mxu0 %v3013_v39  ;;  %v3109_v39 = vld [vmem:[%s4256_s1 + $0x674] ss:$8 sps:$4 sm:$0xff]  }
  0x67   : > { %2087 = vmatpush1.bf16.msra.mxu1 %v3008_v40  ;;  %v3104_v40 = vld [vmem:[%s4256_s1 + $0x270] ss:$8 sps:$4 sm:$0xff]  }
  0x68   : > { %2259 = vmatpush1.bf16.msra.mxu0 %v3011_v41  ;;  %2088 = vmatprep.subr.bf16.mxu1 %v3016_v42  ;;  %v3107_v41 = vld [vmem:[%s4256_s1 + $0x670] ss:$8 sps:$4 sm:$0xff]   ;;  %v3112_v42 = vld [vmem:[%s4256_s1 + $0x284] ss:$8 sps:$4 sm:$0xff]  }
  0x69   : > { %2260 = vmatprep.subr.bf16.mxu0 %v3019_v43  ;;  %v3115_v43 = vld [vmem:[%s4256_s1 + $0x684] ss:$8 sps:$4 sm:$0xff]  }
  0x6b   : > { %2089 = vmatpush1.bf16.msra.mxu1 %v3014_v44  ;;  %v3110_v44 = vld [vmem:[%s4256_s1 + $0x280] ss:$8 sps:$4 sm:$0xff]  }
  0x6c   : > { %2261 = vmatpush1.bf16.msra.mxu0 %v3017_v45  ;;  %2090 = vmatprep.subr.bf16.mxu1 %v3022_v46  ;;  %v3113_v45 = vld [vmem:[%s4256_s1 + $0x680] ss:$8 sps:$4 sm:$0xff]   ;;  %v3118_v46 = vld [vmem:[%s4256_s1 + $0x294] ss:$8 sps:$4 sm:$0xff]  }
  0x6d   : > { %2262 = vmatprep.subr.bf16.mxu0 %v3025_v47  ;;  %v3121_v47 = vld [vmem:[%s4256_s1 + $0x694] ss:$8 sps:$4 sm:$0xff]  }
  0x6f   : > { %2091 = vmatpush1.bf16.msra.mxu1 %v3020_v48  ;;  %v3116_v48 = vld [vmem:[%s4256_s1 + $0x290] ss:$8 sps:$4 sm:$0xff]  }
  0x70   : > { %2263 = vmatpush1.bf16.msra.mxu0 %v3023_v49  ;;  %2092 = vmatprep.subr.bf16.mxu1 %v3028_v50  ;;  %v3119_v49 = vld [vmem:[%s4256_s1 + $0x690] ss:$8 sps:$4 sm:$0xff]   ;;  %v3124_v50 = vld [vmem:[%s4256_s1 + $0x2a4] ss:$8 sps:$4 sm:$0xff]  }
  0x71   : > { %2264 = vmatprep.subr.bf16.mxu0 %v3031_v51  ;;  %v3127_v51 = vld [vmem:[%s4256_s1 + $0x6a4] ss:$8 sps:$4 sm:$0xff]  }
  0x73   : > { %2093 = vmatpush1.bf16.msra.mxu1 %v3026_v52  ;;  %v3122_v52 = vld [vmem:[%s4256_s1 + $0x2a0] ss:$8 sps:$4 sm:$0xff]  }
  0x74   : > { %2265 = vmatpush1.bf16.msra.mxu0 %v3029_v53  ;;  %2094 = vmatprep.subr.bf16.mxu1 %v3034_v54  ;;  %v3125_v53 = vld [vmem:[%s4256_s1 + $0x6a0] ss:$8 sps:$4 sm:$0xff]   ;;  %v3130_v54 = vld [vmem:[%s4256_s1 + $0x2b4] ss:$8 sps:$4 sm:$0xff]  }
  0x75   : > { %2266 = vmatprep.subr.bf16.mxu0 %v3037_v55  ;;  %v3133_v55 = vld [vmem:[%s4256_s1 + $0x6b4] ss:$8 sps:$4 sm:$0xff]  }
  0x77   : > { %2095 = vmatpush1.bf16.msra.mxu1 %v3032_v56  ;;  %v3128_v56 = vld [vmem:[%s4256_s1 + $0x2b0] ss:$8 sps:$4 sm:$0xff]  }
  0x78   : > { %2267 = vmatpush1.bf16.msra.mxu0 %v3035_v57  ;;  %2096 = vmatprep.subr.bf16.mxu1 %v3040_v58  ;;  %v3131_v57 = vld [vmem:[%s4256_s1 + $0x6b0] ss:$8 sps:$4 sm:$0xff]   ;;  %v3136_v58 = vld [vmem:[%s4256_s1 + $0x2c4] ss:$8 sps:$4 sm:$0xff]  }
  0x79   : > { %2268 = vmatprep.subr.bf16.mxu0 %v3043_v59  ;;  %v3139_v59 = vld [vmem:[%s4256_s1 + $0x6c4] ss:$8 sps:$4 sm:$0xff]  }
  0x7b   : > { %2097 = vmatpush1.bf16.msra.mxu1 %v3038_v60  ;;  %v3134_v60 = vld [vmem:[%s4256_s1 + $0x2c0] ss:$8 sps:$4 sm:$0xff]  }
  0x7c   : > { %2269 = vmatpush1.bf16.msra.mxu0 %v3041_v61  ;;  %2098 = vmatprep.subr.bf16.mxu1 %v3046_v62  ;;  %v3137_v61 = vld [vmem:[%s4256_s1 + $0x6c0] ss:$8 sps:$4 sm:$0xff]   ;;  %v3142_v62 = vld [vmem:[%s4256_s1 + $0x2d4] ss:$8 sps:$4 sm:$0xff]  }
  0x7d   : > { %2270 = vmatprep.subr.bf16.mxu0 %v3049_v63  ;;  %v3145_v63 = vld [vmem:[%s4256_s1 + $0x6d4] ss:$8 sps:$4 sm:$0xff]  }
  0x7f   : > { %2099 = vmatpush1.bf16.msra.mxu1 %v3044_v0  ;;  %v3140_v0 = vld [vmem:[%s4256_s1 + $0x2d0] ss:$8 sps:$4 sm:$0xff]  }
  0x80   : > { %2271 = vmatpush1.bf16.msra.mxu0 %v3047_v1  ;;  %2100 = vmatprep.subr.bf16.mxu1 %v3052_v2  ;;  %v3143_v1 = vld [vmem:[%s4256_s1 + $0x6d0] ss:$8 sps:$4 sm:$0xff]   ;;  %v3148_v2 = vld [vmem:[%s4256_s1 + $0x2e4] ss:$8 sps:$4 sm:$0xff]  }
  0x81   : > { %2272 = vmatprep.subr.bf16.mxu0 %v3055_v3  ;;  %v3151_v3 = vld [vmem:[%s4256_s1 + $0x6e4] ss:$8 sps:$4 sm:$0xff]  }
  0x83   : > { %2101 = vmatpush1.bf16.msra.mxu1 %v3050_v4  ;;  %v3146_v4 = vld [vmem:[%s4256_s1 + $0x2e0] ss:$8 sps:$4 sm:$0xff]  }
  0x84   : > { %2273 = vmatpush1.bf16.msra.mxu0 %v3053_v5  ;;  %2113 = vmatprep.subr.bf16.mxu1 %v3061_v6  ;;  %v3149_v5 = vld [vmem:[%s4256_s1 + $0x6e0] ss:$8 sps:$4 sm:$0xff]   ;;  %v3154_v6 = vld [vmem:[%s4256_s1 + $0x2f4] ss:$8 sps:$4 sm:$0xff]  }
  0x85   : > { %2285 = vmatprep.subr.bf16.mxu0 %v3067_v7  ;;  %v3157_v7 = vld [vmem:[%s4256_s1 + $0x6f4] ss:$8 sps:$4 sm:$0xff]  }
  0x86   : > { %2103 = vmatmul.mubr.bf16.vlgmr.msra.gmra.mrb[0].mxu1 %v3056_v8  ;;  %v3152_v8 = vld [vmem:[%s4256_s1 + $0x2f0] ss:$8 sps:$4 sm:$0xff]  }
  0x87   : > { %2275 = vmatmul.mubr.bf16.vlgmr.msra.gmra.mrb[0].mxu0 %v3062_v10  ;;  %2114 = vmatpush1.bf16.msra.mxu1 %v3059_v9  ;;  %v3155_v9 = vld [vmem:[%s4256_s1 + $0x6f0] ss:$8 sps:$4 sm:$0xff]   ;;  %v3163_v10 = vld [vmem:[%s4256_s1 + $0x304] ss:$8 sps:$4 sm:$0xff]  }
  0x88   : > { %2286 = vmatpush1.bf16.msra.mxu0 %v3065_v11  ;;  %2115 = vmatprep.subr.bf16.mxu1 %v3070_v12  ;;  %v3169_v11 = vld [vmem:[%s4256_s1 + $0x704] ss:$8 sps:$4 sm:$0xff]   ;;  %v3158_v12 = vld [vmem:[%s3496_s13 + $0x10] ss:$72 sps:$4 sm:$0xff]  }
  0x89   : > { %2287 = vmatprep.subr.bf16.mxu0 %v3073_v13  ;;  %2145 = vmatprep.mubr.bf16.mxu1 %v3160_v19  ;;  %v3161_v13 = vld [vmem:[%s4256_s1 + $0x300] ss:$8 sps:$4 sm:$0xff]   ;;  %v3265_v19 = vld [vmem:[%s3496_s13 + $0x3c] ss:$72 sps:$4 sm:$0xff]  }
  0x8a   : > { %2317 = vmatprep.mubr.bf16.mxu0 %v3166_v23  ;;  %v3181_v23 = vld [vmem:[%s4256_s1 + $0x724] ss:$8 sps:$4 sm:$0xff]  }
  0x8b   : > { %2116 = vmatpush1.bf16.msra.mxu1 %v3068_v14  ;;  %v3164_v14 = vld [vmem:[%s3496_s13 + $0x30] ss:$72 sps:$4 sm:$0xff]  }
  0x8c   : > { %2288 = vmatpush1.bf16.msra.mxu0 %v3071_v15  ;;  %2117 = vmatprep.subr.bf16.mxu1 %v3076_v16  ;;  %v3167_v15 = vld [vmem:[%s4256_s1 + $0x700] ss:$8 sps:$4 sm:$0xff]   ;;  %v3172_v16 = vld [vmem:[%s4256_s1 + $0x314] ss:$8 sps:$4 sm:$0xff]  }
  0x8d   : > { %2289 = vmatprep.subr.bf16.mxu0 %v3079_v17  ;;  %v3175_v17 = vld [vmem:[%s4256_s1 + $0x714] ss:$8 sps:$4 sm:$0xff]  }
  0x8f   : > { %2118 = vmatpush1.bf16.msra.mxu1 %v3074_v18  ;;  %v3262_v18 = vld [vmem:[%s3496_s13 + $0x1c] ss:$72 sps:$4 sm:$0xff]  }
  0x90   : > { %2290 = vmatpush1.bf16.msra.mxu0 %v3077_v20  ;;  %2119 = vmatprep.subr.bf16.mxu1 %v3082_v21  ;;  %v3170_v20 = vld [vmem:[%s4256_s1 + $0x310] ss:$8 sps:$4 sm:$0xff]  }
  0x91   : > { %2291 = vmatprep.subr.bf16.mxu0 %v3085_v22  ;;  %v3173_v21 = vld [vmem:[%s4256_s1 + $0x710] ss:$8 sps:$4 sm:$0xff]   ;;  %v3178_v22 = vld [vmem:[%s4256_s1 + $0x324] ss:$8 sps:$4 sm:$0xff]  }
  0x93   : > { %2120 = vmatpush1.bf16.msra.mxu1 %v3080_v24  ;;  %v3176_v24 = vld [vmem:[%s4256_s1 + $0x320] ss:$8 sps:$4 sm:$0xff]  }
  0x94   : > { %2292 = vmatpush1.bf16.msra.mxu0 %v3083_v25  ;;  %2121 = vmatprep.subr.bf16.mxu1 %v3088_v26  ;;  %v3179_v25 = vld [vmem:[%s4256_s1 + $0x720] ss:$8 sps:$4 sm:$0xff]   ;;  %v3184_v26 = vld [vmem:[%s4256_s1 + $0x334] ss:$8 sps:$4 sm:$0xff]  }
  0x95   : > { %2293 = vmatprep.subr.bf16.mxu0 %v3091_v27  ;;  %v3187_v27 = vld [vmem:[%s4256_s1 + $0x734] ss:$8 sps:$4 sm:$0xff]  }
  0x97   : > { %2122 = vmatpush1.bf16.msra.mxu1 %v3086_v28  ;;  %v3182_v28 = vld [vmem:[%s4256_s1 + $0x330] ss:$8 sps:$4 sm:$0xff]  }
  0x98   : > { %2294 = vmatpush1.bf16.msra.mxu0 %v3089_v29  ;;  %2123 = vmatprep.subr.bf16.mxu1 %v3094_v30  ;;  %v3185_v29 = vld [vmem:[%s4256_s1 + $0x730] ss:$8 sps:$4 sm:$0xff]   ;;  %v3190_v30 = vld [vmem:[%s4256_s1 + $0x344] ss:$8 sps:$4 sm:$0xff]  }
  0x99   : > { %2295 = vmatprep.subr.bf16.mxu0 %v3097_v31  ;;  %v3193_v31 = vld [vmem:[%s4256_s1 + $0x744] ss:$8 sps:$4 sm:$0xff]  }
  0x9b   : > { %2124 = vmatpush1.bf16.msra.mxu1 %v3092_v32  ;;  %v3188_v32 = vld [vmem:[%s4256_s1 + $0x340] ss:$8 sps:$4 sm:$0xff]  }
  0x9c   : > { %2296 = vmatpush1.bf16.msra.mxu0 %v3095_v33  ;;  %2125 = vmatprep.subr.bf16.mxu1 %v3100_v34  ;;  %v3191_v33 = vld [vmem:[%s4256_s1 + $0x740] ss:$8 sps:$4 sm:$0xff]   ;;  %v3196_v34 = vld [vmem:[%s4256_s1 + $0x354] ss:$8 sps:$4 sm:$0xff]  }
  0x9d   : > { %2297 = vmatprep.subr.bf16.mxu0 %v3103_v35  ;;  %v3199_v35 = vld [vmem:[%s4256_s1 + $0x754] ss:$8 sps:$4 sm:$0xff]  }
  0x9f   : > { %2126 = vmatpush1.bf16.msra.mxu1 %v3098_v36  ;;  %v3194_v36 = vld [vmem:[%s4256_s1 + $0x350] ss:$8 sps:$4 sm:$0xff]  }
  0xa0   : > { %2298 = vmatpush1.bf16.msra.mxu0 %v3101_v37  ;;  %2127 = vmatprep.subr.bf16.mxu1 %v3106_v38  ;;  %v3197_v37 = vld [vmem:[%s4256_s1 + $0x750] ss:$8 sps:$4 sm:$0xff]   ;;  %v3202_v38 = vld [vmem:[%s4256_s1 + $0x364] ss:$8 sps:$4 sm:$0xff]  }
  0xa1   : > { %2299 = vmatprep.subr.bf16.mxu0 %v3109_v39  ;;  %v3205_v39 = vld [vmem:[%s4256_s1 + $0x764] ss:$8 sps:$4 sm:$0xff]  }
  0xa3   : > { %2128 = vmatpush1.bf16.msra.mxu1 %v3104_v40  ;;  %v3200_v40 = vld [vmem:[%s4256_s1 + $0x360] ss:$8 sps:$4 sm:$0xff]  }
  0xa4   : > { %2300 = vmatpush1.bf16.msra.mxu0 %v3107_v41  ;;  %2129 = vmatprep.subr.bf16.mxu1 %v3112_v42  ;;  %v3203_v41 = vld [vmem:[%s4256_s1 + $0x760] ss:$8 sps:$4 sm:$0xff]   ;;  %v3208_v42 = vld [vmem:[%s4256_s1 + $0x374] ss:$8 sps:$4 sm:$0xff]  }
  0xa5   : > { %2301 = vmatprep.subr.bf16.mxu0 %v3115_v43  ;;  %v3211_v43 = vld [vmem:[%s4256_s1 + $0x774] ss:$8 sps:$4 sm:$0xff]  }
  0xa7   : > { %2130 = vmatpush1.bf16.msra.mxu1 %v3110_v44  ;;  %v3206_v44 = vld [vmem:[%s4256_s1 + $0x370] ss:$8 sps:$4 sm:$0xff]  }
  0xa8   : > { %2302 = vmatpush1.bf16.msra.mxu0 %v3113_v45  ;;  %2131 = vmatprep.subr.bf16.mxu1 %v3118_v46  ;;  %v3209_v45 = vld [vmem:[%s4256_s1 + $0x770] ss:$8 sps:$4 sm:$0xff]   ;;  %v3214_v46 = vld [vmem:[%s4256_s1 + $0x384] ss:$8 sps:$4 sm:$0xff]  }
  0xa9   : > { %2303 = vmatprep.subr.bf16.mxu0 %v3121_v47  ;;  %v3217_v47 = vld [vmem:[%s4256_s1 + $0x784] ss:$8 sps:$4 sm:$0xff]  }
  0xab   : > { %2132 = vmatpush1.bf16.msra.mxu1 %v3116_v48  ;;  %v3212_v48 = vld [vmem:[%s4256_s1 + $0x380] ss:$8 sps:$4 sm:$0xff]  }
  0xac   : > { %2304 = vmatpush1.bf16.msra.mxu0 %v3119_v49  ;;  %2133 = vmatprep.subr.bf16.mxu1 %v3124_v50  ;;  %v3215_v49 = vld [vmem:[%s4256_s1 + $0x780] ss:$8 sps:$4 sm:$0xff]   ;;  %v3220_v50 = vld [vmem:[%s4256_s1 + $0x394] ss:$8 sps:$4 sm:$0xff]  }
  0xad   : > { %2305 = vmatprep.subr.bf16.mxu0 %v3127_v51  ;;  %v3223_v51 = vld [vmem:[%s4256_s1 + $0x794] ss:$8 sps:$4 sm:$0xff]  }
  0xaf   : > { %2134 = vmatpush1.bf16.msra.mxu1 %v3122_v52  ;;  %v3218_v52 = vld [vmem:[%s4256_s1 + $0x390] ss:$8 sps:$4 sm:$0xff]  }
  0xb0   : > { %2306 = vmatpush1.bf16.msra.mxu0 %v3125_v53  ;;  %2135 = vmatprep.subr.bf16.mxu1 %v3130_v54  ;;  %v3221_v53 = vld [vmem:[%s4256_s1 + $0x790] ss:$8 sps:$4 sm:$0xff]   ;;  %v3226_v54 = vld [vmem:[%s4256_s1 + $0x3a4] ss:$8 sps:$4 sm:$0xff]  }
  0xb1   : > { %2307 = vmatprep.subr.bf16.mxu0 %v3133_v55  ;;  %v3229_v55 = vld [vmem:[%s4256_s1 + $0x7a4] ss:$8 sps:$4 sm:$0xff]  }
  0xb3   : > { %2136 = vmatpush1.bf16.msra.mxu1 %v3128_v56  ;;  %v3224_v56 = vld [vmem:[%s4256_s1 + $0x3a0] ss:$8 sps:$4 sm:$0xff]  }
  0xb4   : > { %2308 = vmatpush1.bf16.msra.mxu0 %v3131_v57  ;;  %2137 = vmatprep.subr.bf16.mxu1 %v3136_v58  ;;  %v3227_v57 = vld [vmem:[%s4256_s1 + $0x7a0] ss:$8 sps:$4 sm:$0xff]   ;;  %v3232_v58 = vld [vmem:[%s4256_s1 + $0x3b4] ss:$8 sps:$4 sm:$0xff]  }
  0xb5   : > { %2309 = vmatprep.subr.bf16.mxu0 %v3139_v59  ;;  %v3235_v59 = vld [vmem:[%s4256_s1 + $0x7b4] ss:$8 sps:$4 sm:$0xff]  }
  0xb7   : > { %2138 = vmatpush1.bf16.msra.mxu1 %v3134_v60  ;;  %v3230_v60 = vld [vmem:[%s4256_s1 + $0x3b0] ss:$8 sps:$4 sm:$0xff]  }
  0xb8   : > { %2310 = vmatpush1.bf16.msra.mxu0 %v3137_v61  ;;  %2139 = vmatprep.subr.bf16.mxu1 %v3142_v62  ;;  %v3233_v61 = vld [vmem:[%s4256_s1 + $0x7b0] ss:$8 sps:$4 sm:$0xff]   ;;  %v3238_v62 = vld [vmem:[%s4256_s1 + $0x3c4] ss:$8 sps:$4 sm:$0xff]  }
  0xb9   : > { %2311 = vmatprep.subr.bf16.mxu0 %v3145_v63  ;;  %v3241_v63 = vld [vmem:[%s4256_s1 + $0x7c4] ss:$8 sps:$4 sm:$0xff]  }
  0xbb   : > { %2140 = vmatpush1.bf16.msra.mxu1 %v3140_v0  ;;  %v3236_v0 = vld [vmem:[%s4256_s1 + $0x3c0] ss:$8 sps:$4 sm:$0xff]  }
  0xbc   : > { %2312 = vmatpush1.bf16.msra.mxu0 %v3143_v1  ;;  %2141 = vmatprep.subr.bf16.mxu1 %v3148_v2  ;;  %v3239_v1 = vld [vmem:[%s4256_s1 + $0x7c0] ss:$8 sps:$4 sm:$0xff]   ;;  %v3244_v2 = vld [vmem:[%s4256_s1 + $0x3d4] ss:$8 sps:$4 sm:$0xff]  }
  0xbd   : > { %2313 = vmatprep.subr.bf16.mxu0 %v3151_v3  ;;  %v3247_v3 = vld [vmem:[%s4256_s1 + $0x7d4] ss:$8 sps:$4 sm:$0xff]  }
  0xbf   : > { %2142 = vmatpush1.bf16.msra.mxu1 %v3146_v4  ;;  %v3242_v4 = vld [vmem:[%s4256_s1 + $0x3d0] ss:$8 sps:$4 sm:$0xff]  }
  0xc0   : > { %2314 = vmatpush1.bf16.msra.mxu0 %v3149_v5  ;;  %2143 = vmatprep.subr.bf16.mxu1 %v3154_v6  ;;  %v3245_v5 = vld [vmem:[%s4256_s1 + $0x7d0] ss:$8 sps:$4 sm:$0xff]   ;;  %v3250_v6 = vld [vmem:[%s4256_s1 + $0x3e4] ss:$8 sps:$4 sm:$0xff]  }
  0xc1   : > { %2315 = vmatprep.subr.bf16.mxu0 %v3157_v7  ;;  %v3253_v7 = vld [vmem:[%s4256_s1 + $0x7e4] ss:$8 sps:$4 sm:$0xff]  }
  0xc3   : > { %2144 = vmatpush1.bf16.msra.mxu1 %v3152_v8  ;;  %v3248_v8 = vld [vmem:[%s4256_s1 + $0x3e0] ss:$8 sps:$4 sm:$0xff]  }
  0xc4   : > { %2316 = vmatpush1.bf16.msra.mxu0 %v3155_v9  ;;  %2156 = vmatprep.subr.bf16.mxu1 %v3163_v10  ;;  %v3251_v9 = vld [vmem:[%s4256_s1 + $0x7e0] ss:$8 sps:$4 sm:$0xff]   ;;  %v3256_v10 = vld [vmem:[%s4256_s1 + $0x3f4] ss:$8 sps:$4 sm:$0xff]  }
  0xc5   : > { %2328 = vmatprep.subr.bf16.mxu0 %v3169_v11  ;;  %v3259_v11 = vld [vmem:[%s4256_s1 + $0x7f4] ss:$8 sps:$4 sm:$0xff]  }
  0xc6   : > { %2146 = vmatmul.mubr.bf16.vlgmr.msra.gmra.mrb[0].mxu1 %v3158_v12  ;;  %v3254_v12 = vld [vmem:[%s4256_s1 + $0x3f0] ss:$8 sps:$4 sm:$0xff]  }
  0xc7   : > { %2318 = vmatmul.mubr.bf16.vlgmr.msra.gmra.mrb[0].mxu0 %v3164_v14  ;;  %2157 = vmatpush1.bf16.msra.mxu1 %v3161_v13  ;;  %v3257_v13 = vld [vmem:[%s4256_s1 + $0x7f0] ss:$8 sps:$4 sm:$0xff]   ;;  %v3268_v14 = vld [vmem:[%s4256_s1 + $0x804] ss:$8 sps:$4 sm:$0xff]  }
  0xc8   : > { %2329 = vmatpush1.bf16.msra.mxu0 %v3167_v15  ;;  %2158 = vmatprep.subr.bf16.mxu1 %v3172_v16  ;;  %v3260_v15 = vld [vmem:[%s3496_s13 + $0x18] ss:$72 sps:$4 sm:$0xff]  }
  0xc9   : > { %2330 = vmatprep.subr.bf16.mxu0 %v3175_v17  ;;  %2188 = vmatprep.mubr.bf16.mxu1 %v3262_v18  ;;  %v3263_v16 = vld [vmem:[%s3496_s13 + $0x38] ss:$72 sps:$4 sm:$0xff]   ;;  %v3316_v18 = vld [vmem:[%s3496_s13 + $0x44] ss:$72 sps:$4 sm:$0xff]  }
  0xca   : > { %2360 = vmatprep.mubr.bf16.mxu0 %v3265_v19  ;;  %v3266_v17 = vld [vmem:[%s4256_s1 + $0x800] ss:$8 sps:$4 sm:$0xff]   ;;  %v3271_v19 = vld [vmem:[%s4256_s1 + $0x814] ss:$8 sps:$4 sm:$0xff]  }
  0xcb   : > { %2159 = vmatpush1.bf16.msra.mxu1 %v3170_v20  ;;  %v3269_v20 = vld [vmem:[%s4256_s1 + $0x810] ss:$8 sps:$4 sm:$0xff]  }
  0xcc   : > { %2331 = vmatpush1.bf16.msra.mxu0 %v3173_v21  ;;  %2160 = vmatprep.subr.bf16.mxu1 %v3178_v22  ;;  %v3274_v21 = vld [vmem:[%s4256_s1 + $0x824] ss:$8 sps:$4 sm:$0xff]   ;;  %v3272_v22 = vld [vmem:[%s4256_s1 + $0x820] ss:$8 sps:$4 sm:$0xff]  }
  0xcd   : > { %2332 = vmatprep.subr.bf16.mxu0 %v3181_v23  ;;  %v3277_v23 = vld [vmem:[%s4256_s1 + $0x834] ss:$8 sps:$4 sm:$0xff]  }
  0xcf   : > { %2161 = vmatpush1.bf16.msra.mxu1 %v3176_v24  ;;  %v3275_v24 = vld [vmem:[%s4256_s1 + $0x830] ss:$8 sps:$4 sm:$0xff]  }
  0xd0   : > { %2333 = vmatpush1.bf16.msra.mxu0 %v3179_v25  ;;  %2162 = vmatprep.subr.bf16.mxu1 %v3184_v26  ;;  %v3280_v25 = vld [vmem:[%s4256_s1 + $0x844] ss:$8 sps:$4 sm:$0xff]   ;;  %v3278_v26 = vld [vmem:[%s4256_s1 + $0x840] ss:$8 sps:$4 sm:$0xff]  }
  0xd1   : > { %2334 = vmatprep.subr.bf16.mxu0 %v3187_v27  ;;  %v3283_v27 = vld [vmem:[%s4256_s1 + $0x854] ss:$8 sps:$4 sm:$0xff]  }
  0xd3   : > { %2163 = vmatpush1.bf16.msra.mxu1 %v3182_v28  ;;  %v3281_v28 = vld [vmem:[%s4256_s1 + $0x850] ss:$8 sps:$4 sm:$0xff]  }
  0xd4   : > { %2335 = vmatpush1.bf16.msra.mxu0 %v3185_v29  ;;  %2164 = vmatprep.subr.bf16.mxu1 %v3190_v30  ;;  %v3286_v29 = vld [vmem:[%s4256_s1 + $0x864] ss:$8 sps:$4 sm:$0xff]   ;;  %v3284_v30 = vld [vmem:[%s4256_s1 + $0x860] ss:$8 sps:$4 sm:$0xff]  }
  0xd5   : > { %2336 = vmatprep.subr.bf16.mxu0 %v3193_v31  ;;  %v3289_v31 = vld [vmem:[%s4256_s1 + $0x874] ss:$8 sps:$4 sm:$0xff]  }
  0xd7   : > { %2165 = vmatpush1.bf16.msra.mxu1 %v3188_v32  ;;  %v3287_v32 = vld [vmem:[%s4256_s1 + $0x870] ss:$8 sps:$4 sm:$0xff]  }
  0xd8   : > { %2337 = vmatpush1.bf16.msra.mxu0 %v3191_v33  ;;  %2166 = vmatprep.subr.bf16.mxu1 %v3196_v34  ;;  %v3292_v33 = vld [vmem:[%s4256_s1 + $0x884] ss:$8 sps:$4 sm:$0xff]   ;;  %v3290_v34 = vld [vmem:[%s4256_s1 + $0x880] ss:$8 sps:$4 sm:$0xff]  }
  0xd9   : > { %2338 = vmatprep.subr.bf16.mxu0 %v3199_v35  ;;  %v3295_v35 = vld [vmem:[%s4256_s1 + $0x894] ss:$8 sps:$4 sm:$0xff]  }
  0xdb   : > { %2167 = vmatpush1.bf16.msra.mxu1 %v3194_v36  ;;  %v3293_v36 = vld [vmem:[%s4256_s1 + $0x890] ss:$8 sps:$4 sm:$0xff]  }
  0xdc   : > { %2339 = vmatpush1.bf16.msra.mxu0 %v3197_v37  ;;  %2168 = vmatprep.subr.bf16.mxu1 %v3202_v38  ;;  %v3298_v37 = vld [vmem:[%s4256_s1 + $0x8a4] ss:$8 sps:$4 sm:$0xff]   ;;  %v3296_v38 = vld [vmem:[%s4256_s1 + $0x8a0] ss:$8 sps:$4 sm:$0xff]  }
  0xdd   : > { %2340 = vmatprep.subr.bf16.mxu0 %v3205_v39  ;;  %v3301_v39 = vld [vmem:[%s4256_s1 + $0x8b4] ss:$8 sps:$4 sm:$0xff]  }
  0xdf   : > { %2169 = vmatpush1.bf16.msra.mxu1 %v3200_v40  ;;  %v3299_v40 = vld [vmem:[%s4256_s1 + $0x8b0] ss:$8 sps:$4 sm:$0xff]  }
  0xe0   : > { %2341 = vmatpush1.bf16.msra.mxu0 %v3203_v41  ;;  %2170 = vmatprep.subr.bf16.mxu1 %v3208_v42  ;;  %v3304_v41 = vld [vmem:[%s4256_s1 + $0x8c4] ss:$8 sps:$4 sm:$0xff]   ;;  %v3302_v42 = vld [vmem:[%s4256_s1 + $0x8c0] ss:$8 sps:$4 sm:$0xff]  }
  0xe1   : > { %2342 = vmatprep.subr.bf16.mxu0 %v3211_v43  ;;  %v3307_v43 = vld [vmem:[%s4256_s1 + $0x8d4] ss:$8 sps:$4 sm:$0xff]  }
  0xe3   : > { %2171 = vmatpush1.bf16.msra.mxu1 %v3206_v44  ;;  %v3305_v44 = vld [vmem:[%s4256_s1 + $0x8d0] ss:$8 sps:$4 sm:$0xff]  }
  0xe4   : > { %2343 = vmatpush1.bf16.msra.mxu0 %v3209_v45  ;;  %2172 = vmatprep.subr.bf16.mxu1 %v3214_v46  ;;  %v3310_v45 = vld [vmem:[%s4256_s1 + $0x8e4] ss:$8 sps:$4 sm:$0xff]   ;;  %v3308_v46 = vld [vmem:[%s4256_s1 + $0x8e0] ss:$8 sps:$4 sm:$0xff]  }
  0xe5   : > { %2344 = vmatprep.subr.bf16.mxu0 %v3217_v47  ;;  %v3313_v47 = vld [vmem:[%s4256_s1 + $0x8f4] ss:$8 sps:$4 sm:$0xff]  }
  0xe7   : > { %2173 = vmatpush1.bf16.msra.mxu1 %v3212_v48  ;;  %v3311_v48 = vld [vmem:[%s4256_s1 + $0x8f0] ss:$8 sps:$4 sm:$0xff]  }
  0xe8   : > { %2345 = vmatpush1.bf16.msra.mxu0 %v3215_v49  ;;  %2174 = vmatprep.subr.bf16.mxu1 %v3220_v50  ;;  %v3314_v49 = vld [vmem:[%s3496_s13 + $0x40] ss:$72 sps:$4 sm:$0xff]   ;;  %s2810_s13 = sshll.u32 %s4260_s24, 3 }
  0xe9   : > { %2346 = vmatprep.subr.bf16.mxu0 %v3223_v51  ;;  %s177_s18 = scalar_lea.vmem %s4258_s3, %s2810_s13 }
  0xeb   : > { %2175 = vmatpush1.bf16.msra.mxu1 %v3218_v52 }
  0xec   : > { %2347 = vmatpush1.bf16.msra.mxu0 %v3221_v53  ;;  %2176 = vmatprep.subr.bf16.mxu1 %v3226_v54  ;;  %v487_v54 = vlaneseq }
  0xed   : > { %2348 = vmatprep.subr.bf16.mxu0 %v3229_v55 }
  0xee   : > { %v488_v55 = vshrl.u32 %v487_v54, 7 }
  0xef   : > { %2177 = vmatpush1.bf16.msra.mxu1 %v3224_v56 }
  0xf0   : > { %2349 = vmatpush1.bf16.msra.mxu0 %v3227_v57  ;;  %2178 = vmatprep.subr.bf16.mxu1 %v3232_v58  ;;  %v489_v56 = vsub.s32 0, %v488_v55  ;;  %v485_v57 = vld [vmem:[%s4257_s2] sm:$0x3]  ;;  %v493_v58 = vsub.s32 1, %v488_v55 }
  0xf1   : > { %2350 = vmatprep.subr.bf16.mxu0 %v3235_v59 }
  0xf2   : > { %v490_v59 = vrot.slane %v485_v57, %v489_v56 }
  0xf3   : > { %2179 = vmatpush1.bf16.msra.mxu1 %v3230_v60  ;;  %v494_v60 = vrot.slane %v485_v57, %v493_v58 }
  0xf4   : > { %2351 = vmatpush1.bf16.msra.mxu0 %v3233_v61  ;;  %2180 = vmatprep.subr.bf16.mxu1 %v3238_v62 }
  0xf5   : > { %2352 = vmatprep.subr.bf16.mxu0 %v3241_v63 }
  0xf7   : > { %2181 = vmatpush1.bf16.msra.mxu1 %v3236_v0 }
  0xf8   : > { %2353 = vmatpush1.bf16.msra.mxu0 %v3239_v1  ;;  %2182 = vmatprep.subr.bf16.mxu1 %v3244_v2 }
  0xf9   : > { %2354 = vmatprep.subr.bf16.mxu0 %v3247_v3 }
  0xfb   : > { %2183 = vmatpush1.bf16.msra.mxu1 %v3242_v4 }
  0xfc   : > { %2355 = vmatpush1.bf16.msra.mxu0 %v3245_v5  ;;  %2184 = vmatprep.subr.bf16.mxu1 %v3250_v6 }
  0xfd   : > { %2356 = vmatprep.subr.bf16.mxu0 %v3253_v7 }
  0xff   : > { %2185 = vmatpush1.bf16.msra.mxu1 %v3248_v8 }
 0x100   : > { %2357 = vmatpush1.bf16.msra.mxu0 %v3251_v9  ;;  %2186 = vmatprep.subr.bf16.mxu1 %v3256_v10 }
 0x101   : > { %2358 = vmatprep.subr.bf16.mxu0 %v3259_v11 }
 0x103   : > { %2187 = vmatpush1.bf16.msra.mxu1 %v3254_v12 }
 0x104   : > { %2359 = vmatpush1.bf16.msra.mxu0 %v3257_v13 }
 0x105   : > { %2371 = vmatprep.subr.bf16.mxu0 %v3268_v14 }
 0x106   : > { %2189 = vmatmul.mubr.bf16.vlgmr.msra.gmra.mrb[0].mxu1 %v3260_v15 }
 0x107   : > { %2361 = vmatmul.mubr.bf16.vlgmr.msra.gmra.mrb[0].mxu0 %v3263_v16 }
 0x108   : > { %2372 = vmatpush1.bf16.msra.mxu0 %v3266_v17  ;;  %2403 = vmatprep.mubr.bf16.mxu0 %v3316_v18 }
 0x109   : > { %2373 = vmatprep.subr.bf16.mxu0 %v3271_v19 }
 0x10c   : > { %2374 = vmatpush1.bf16.msra.mxu0 %v3269_v20 }
 0x10d   : > { %2375 = vmatprep.subr.bf16.mxu0 %v3274_v21 }
 0x110   : > { %2376 = vmatpush1.bf16.msra.mxu0 %v3272_v22 }
 0x111   : > { %2377 = vmatprep.subr.bf16.mxu0 %v3277_v23 }
 0x114   : > { %2378 = vmatpush1.bf16.msra.mxu0 %v3275_v24 }
 0x115   : > { %2379 = vmatprep.subr.bf16.mxu0 %v3280_v25 }
 0x118   : > { %2380 = vmatpush1.bf16.msra.mxu0 %v3278_v26 }
 0x119   : > { %2381 = vmatprep.subr.bf16.mxu0 %v3283_v27 }
 0x11c   : > { %2382 = vmatpush1.bf16.msra.mxu0 %v3281_v28 }
 0x11d   : > { %2383 = vmatprep.subr.bf16.mxu0 %v3286_v29 }
 0x120   : > { %2384 = vmatpush1.bf16.msra.mxu0 %v3284_v30 }
 0x121   : > { %2385 = vmatprep.subr.bf16.mxu0 %v3289_v31 }
 0x124   : > { %2386 = vmatpush1.bf16.msra.mxu0 %v3287_v32 }
 0x125   : > { %2387 = vmatprep.subr.bf16.mxu0 %v3292_v33 }
 0x128   : > { %2388 = vmatpush1.bf16.msra.mxu0 %v3290_v34 }
 0x129   : > { %2389 = vmatprep.subr.bf16.mxu0 %v3295_v35 }
 0x12c   : > { %2390 = vmatpush1.bf16.msra.mxu0 %v3293_v36 }
 0x12d   : > { %2391 = vmatprep.subr.bf16.mxu0 %v3298_v37 }
 0x130   : > { %2392 = vmatpush1.bf16.msra.mxu0 %v3296_v38 }
 0x131   : > { %2393 = vmatprep.subr.bf16.mxu0 %v3301_v39 }
 0x134   : > { %2394 = vmatpush1.bf16.msra.mxu0 %v3299_v40 }
 0x135   : > { %2395 = vmatprep.subr.bf16.mxu0 %v3304_v41 }
 0x138   : > { %2396 = vmatpush1.bf16.msra.mxu0 %v3302_v42 }
 0x139   : > { %2397 = vmatprep.subr.bf16.mxu0 %v3307_v43 }
 0x13c   : > { %2398 = vmatpush1.bf16.msra.mxu0 %v3305_v44 }
 0x13d   : > { %2399 = vmatprep.subr.bf16.mxu0 %v3310_v45 }
 0x140   : > { %2400 = vmatpush1.bf16.msra.mxu0 %v3308_v46 }
 0x141   : > { %2401 = vmatprep.subr.bf16.mxu0 %v3313_v47 }
 0x144   : > { %2402 = vmatpush1.bf16.msra.mxu0 %v3311_v48 }
 0x147   : > { %2404 = vmatmul.mubr.bf16.vlgmr.msra.gmra.mrb[0].mxu0 %v3314_v49 }
 0x1d9   : > { %v2190_v50 = vpop.f32.mrb[0].mxu1 }
 0x1da   : > { %v2192_v51 = vpop.f32.mrb[1].mxu1  ;;  %v2813_v61 = vadd.f32 %v2190_v50, %v490_v59 }
 0x1db   : > { %v2194_v52 = vpop.f32.mrb[2].mxu1  ;;  %v2815_v62 = vadd.f32 %v2192_v51, %v494_v60 }
 0x1dc   : > { %v2196_v53 = vpop.f32.mrb[3].mxu1  ;;  %v2817_v0 = vadd.f32 %v2194_v52, %v490_v59 }
 0x1dd   : > { %v2819_v3 = vadd.f32 %v2196_v53, %v494_v60 }
 0x21a   : > { %v2405_v63 = vpop.f32.mrb[0].mxu0 }
 0x21b   : > { %v2814_v1 = vadd.f32 %v2813_v61, %v2405_v63  ;;  %v2407_v2 = vpop.f32.mrb[1].mxu0 }
 0x21c   : > { %v2816_v4 = vadd.f32 %v2815_v62, %v2407_v2  ;;  %v2409_v5 = vpop.f32.mrb[2].mxu0 }
 0x21d   : > { %v2414_v6 = vmax.f32 %v2814_v1, 0.0  ;;  %v2818_v7 = vadd.f32 %v2817_v0, %v2409_v5  ;;  %v2411_v8 = vpop.f32.mrb[3].mxu0 }
 0x21e   : > { %v2415_v9 = vmax.f32 %v2816_v4, 0.0  ;;  %v2820_v10 = vadd.f32 %v2819_v3, %v2411_v8 }
 0x21f   : > { %v2416_v11 = vmax.f32 %v2818_v7, 0.0 }
 0x220   : > { %v2811_v12 = vpack.c.bf16 %v2415_v9, %v2414_v6  ;;  %v2417_v13 = vmax.f32 %v2820_v10, 0.0 }
 0x222   : > { %2430 = vst [vmem:[%s177_s18] sm:$0xff] %v2811_v12  ;;  %v2812_v14 = vpack.c.bf16 %v2417_v13, %v2416_v11 }
 0x224   : > { %2431 = vst [vmem:[%s177_s18 + $0x8] sm:$0xff] %v2812_v14 }
 0x225 PF: > { %s13_s12 = sadd.s32 1, %s3323_s12  }
 0x226   : > { %p10_p4 = scmp.ge.s32.totalorder %s13_s12, 4  }
 0x228   :  { %12 = sbr.rel (!%p10_p4) target bundleno = 1 (0x1), region = 62 }

// kernel: mnist_encoder_forward.7
= control target key start
LH: loop header
LB: loop body
LE: loop exit
PB: predicated region body
PF: predicated region fallthrough
CT: control target
= control target key end

     0   :  { %vm2883_vm0 = vcmask 1043456   ;;  %vm2859_vm1 = vcmask 64512   ;;  %vm3359_vm2 = vcmask 244736   ;;  %s5477_s1 = inlined_call_operand.vmem [shape: bf16[4096,8], index: 1, kind: input, shape index: {}]   ;;  %s5478_s0 = inlined_call_operand.vmem [shape: bf16[8,4096], index: 0, kind: input, shape index: {}]   ;;  %s5479_s2 = inlined_call_operand.vmem [shape: f32[1,8], index: 2, kind: input, shape index: {}]   ;;  %s5480_s3 = inlined_call_operand.vmem [shape: bf16[8,256], index: 3, kind: input, shape index: {}]   ;;  %s5481_s5 = inlined_call_operand.vmem [shape: bf16[256,256], index: 5, kind: input, shape index: {}]   ;;  %s5482_s9 = inlined_call_operand.vmem [shape: f32[8,8], index: 9, kind: output, shape index: {0}]   ;;  %s5483_s7 = inlined_call_operand.vmem [shape: bf16[256,30], index: 7, kind: input, shape index: {}]   ;;  %s5484_s4 = inlined_call_operand.vmem [shape: f32[1,256], index: 4, kind: input, shape index: {}]   ;;  %s5485_s6 = inlined_call_operand.vmem [shape: f32[1,256], index: 6, kind: input, shape index: {}]   ;;  %s5486_s8 = inlined_call_operand.vmem [shape: f32[1,30], index: 8, kind: input, shape index: {}]   ;;  %s5487_s10 = inlined_call_operand.vmem [shape: f32[8,30], index: 10, kind: output, shape index: {1}]  }
   0x1   :  { %v4086_v0 = vld [vmem:[%s5477_s1 + $0x40] sm:$0xff]   ;;  %v4090_v4 = vld [vmem:[%s5477_s1 + $0x48] sm:$0xff]   ;;  %v4094_v8 = vld [vmem:[%s5477_s1 + $0x50] sm:$0xff]  }
   0x2   :  { %v4087_v1 = vld [vmem:[%s5477_s1 + $0xc0] sm:$0xff]   ;;  %3711 = vmatprep.subr.bf16.mxu0 %v4086_v0  ;;  %v4091_v5 = vld [vmem:[%s5477_s1 + $0xc8] sm:$0xff]   ;;  %v4095_v9 = vld [vmem:[%s5477_s1 + $0xd0] sm:$0xff]  }
   0x3   :  { %v4088_v2 = vld [vmem:[%s5477_s1] sm:$0xff]   ;;  %3733 = vmatprep.subr.bf16.mxu1 %v4087_v1  ;;  %v4092_v6 = vld [vmem:[%s5477_s1 + $0x8] sm:$0xff]   ;;  %v4096_v10 = vld [vmem:[%s5477_s1 + $0x10] sm:$0xff]  }
   0x4   :  { %v4089_v3 = vld [vmem:[%s5477_s1 + $0x80] sm:$0xff]   ;;  %3712 = vmatpush3.bf16.msra.mxu0 %v4088_v2  ;;  %v4093_v7 = vld [vmem:[%s5477_s1 + $0x88] sm:$0xff]   ;;  %v4097_v11 = vld [vmem:[%s5477_s1 + $0x90] sm:$0xff]  }
   0x5   :  { %3734 = vmatpush3.bf16.msra.mxu1 %v4089_v3  ;;  %3713 = vmatprep.subr.bf16.mxu0 %v4090_v4  ;;  %v4098_v12 = vld [vmem:[%s5477_s1 + $0x58] sm:$0xff]   ;;  %v4102_v16 = vld [vmem:[%s5477_s1 + $0x60] sm:$0xff]   ;;  %v4106_v20 = vld [vmem:[%s5477_s1 + $0x68] sm:$0xff]  }
   0x6   :  { %3735 = vmatprep.subr.bf16.mxu1 %v4091_v5  ;;  %v4099_v13 = vld [vmem:[%s5477_s1 + $0xd8] sm:$0xff]   ;;  %v4103_v17 = vld [vmem:[%s5477_s1 + $0xe0] sm:$0xff]   ;;  %v4107_v21 = vld [vmem:[%s5477_s1 + $0xe8] sm:$0xff]  }
   0x7   :  { %v4100_v14 = vld [vmem:[%s5477_s1 + $0x18] sm:$0xff]   ;;  %v4104_v18 = vld [vmem:[%s5477_s1 + $0x20] sm:$0xff]   ;;  %v4108_v22 = vld [vmem:[%s5477_s1 + $0x28] sm:$0xff]  }
   0x8   :  { %3714 = vmatpush3.bf16.msra.mxu0 %v4092_v6  ;;  %v4101_v15 = vld [vmem:[%s5477_s1 + $0x98] sm:$0xff]   ;;  %v4105_v19 = vld [vmem:[%s5477_s1 + $0xa0] sm:$0xff]   ;;  %v4109_v23 = vld [vmem:[%s5477_s1 + $0xa8] sm:$0xff]  }
   0x9   :  { %3736 = vmatpush3.bf16.msra.mxu1 %v4093_v7  ;;  %3715 = vmatprep.subr.bf16.mxu0 %v4094_v8  ;;  %v4110_v24 = vld [vmem:[%s5477_s1 + $0x70] sm:$0xff]   ;;  %v4114_v28 = vld [vmem:[%s5477_s1 + $0x78] sm:$0xff]   ;;  %v35_v32 = vld [vmem:[%s5478_s0] sm:$0xff] }
   0xa   :  { %3737 = vmatprep.subr.bf16.mxu1 %v4095_v9  ;;  %v4111_v25 = vld [vmem:[%s5477_s1 + $0xf0] sm:$0xff]   ;;  %v4115_v29 = vld [vmem:[%s5477_s1 + $0xf8] sm:$0xff]   ;;  %v36_v33 = vld [vmem:[%s5478_s0 + $0x8] sm:$0xff]  ;;  %v3370_v34 = vcombine.low %v35_v32, %v35_v32  ;;  %v3371_v35 = vcombine.high %v35_v32, %v35_v32 }
   0xb   :  { %v4112_v26 = vld [vmem:[%s5477_s1 + $0x30] sm:$0xff]   ;;  %v4116_v30 = vld [vmem:[%s5477_s1 + $0x38] sm:$0xff]   ;;  %v3372_v36 = vcombine.low %v36_v33, %v36_v33  ;;  %v3373_v37 = vcombine.high %v36_v33, %v36_v33  ;;  %v4122_v38 = vld [vmem:[%s5477_s1 + $0x140] sm:$0xff]  }
   0xc   :  { %3716 = vmatpush3.bf16.msra.mxu0 %v4096_v10  ;;  %v4113_v27 = vld [vmem:[%s5477_s1 + $0xb0] sm:$0xff]   ;;  %v4117_v31 = vld [vmem:[%s5477_s1 + $0xb8] sm:$0xff]   ;;  %v4123_v39 = vld [vmem:[%s5477_s1 + $0x1c0] sm:$0xff]   ;;  %2250 = vmatprep.mubr.bf16.mxu0 %v3371_v35 }
   0xd   :  { %3738 = vmatpush3.bf16.msra.mxu1 %v4097_v11  ;;  %3717 = vmatprep.subr.bf16.mxu0 %v4098_v12  ;;  %v4124_v40 = vld [vmem:[%s5477_s1 + $0x100] sm:$0xff]   ;;  %v4126_v42 = vld [vmem:[%s5477_s1 + $0x148] sm:$0xff]   ;;  %v4130_v46 = vld [vmem:[%s5477_s1 + $0x150] sm:$0xff]  }
   0xe   :  { %3739 = vmatprep.subr.bf16.mxu1 %v4099_v13  ;;  %2290 = vmatprep.mubr.bf16.mxu1 %v3373_v37  ;;  %v4125_v41 = vld [vmem:[%s5477_s1 + $0x180] sm:$0xff]   ;;  %v4127_v43 = vld [vmem:[%s5477_s1 + $0x1c8] sm:$0xff]   ;;  %v4131_v47 = vld [vmem:[%s5477_s1 + $0x1d0] sm:$0xff]  }
   0xf   :  { %v4128_v44 = vld [vmem:[%s5477_s1 + $0x108] sm:$0xff]   ;;  %v4132_v48 = vld [vmem:[%s5477_s1 + $0x110] sm:$0xff]   ;;  %v4134_v50 = vld [vmem:[%s5477_s1 + $0x158] sm:$0xff]  }
  0x10   :  { %3718 = vmatpush3.bf16.msra.mxu0 %v4100_v14  ;;  %v4129_v45 = vld [vmem:[%s5477_s1 + $0x188] sm:$0xff]   ;;  %v4133_v49 = vld [vmem:[%s5477_s1 + $0x190] sm:$0xff]   ;;  %v4135_v51 = vld [vmem:[%s5477_s1 + $0x1d8] sm:$0xff]  }
  0x11   :  { %3740 = vmatpush3.bf16.msra.mxu1 %v4101_v15  ;;  %3719 = vmatprep.subr.bf16.mxu0 %v4102_v16  ;;  %v4136_v52 = vld [vmem:[%s5477_s1 + $0x118] sm:$0xff]   ;;  %v4138_v54 = vld [vmem:[%s5477_s1 + $0x160] sm:$0xff]   ;;  %v4142_v58 = vld [vmem:[%s5477_s1 + $0x168] sm:$0xff]  }
  0x12   :  { %3741 = vmatprep.subr.bf16.mxu1 %v4103_v17  ;;  %v4137_v53 = vld [vmem:[%s5477_s1 + $0x198] sm:$0xff]   ;;  %v4139_v55 = vld [vmem:[%s5477_s1 + $0x1e0] sm:$0xff]   ;;  %v4143_v59 = vld [vmem:[%s5477_s1 + $0x1e8] sm:$0xff]  }
  0x13   :  { %v4140_v56 = vld [vmem:[%s5477_s1 + $0x120] sm:$0xff]   ;;  %v4144_v60 = vld [vmem:[%s5477_s1 + $0x128] sm:$0xff]   ;;  %v4146_v62 = vld [vmem:[%s5477_s1 + $0x170] sm:$0xff]  }
  0x14   :  { %3720 = vmatpush3.bf16.msra.mxu0 %v4104_v18  ;;  %v4141_v57 = vld [vmem:[%s5477_s1 + $0x1a0] sm:$0xff]   ;;  %v4145_v61 = vld [vmem:[%s5477_s1 + $0x1a8] sm:$0xff]   ;;  %v4147_v63 = vld [vmem:[%s5477_s1 + $0x1f0] sm:$0xff]  }
  0x15   :  { %3742 = vmatpush3.bf16.msra.mxu1 %v4105_v19  ;;  %3721 = vmatprep.subr.bf16.mxu0 %v4106_v20  ;;  %v4148_v0 = vld [vmem:[%s5477_s1 + $0x130] sm:$0xff]   ;;  %v4150_v2 = vld [vmem:[%s5477_s1 + $0x178] sm:$0xff]   ;;  %v4158_v12 = vld [vmem:[%s5477_s1 + $0x240] sm:$0xff]  }
  0x16   :  { %3743 = vmatprep.subr.bf16.mxu1 %v4107_v21  ;;  %v4149_v1 = vld [vmem:[%s5477_s1 + $0x1b0] sm:$0xff]   ;;  %v4151_v3 = vld [vmem:[%s5477_s1 + $0x1f8] sm:$0xff]   ;;  %v4159_v13 = vld [vmem:[%s5477_s1 + $0x2c0] sm:$0xff]  }
  0x17   :  { %v4152_v4 = vld [vmem:[%s5477_s1 + $0x138] sm:$0xff]   ;;  %v37_v6 = vld [vmem:[%s5478_s0 + $0x10] sm:$0xff]  ;;  %v4160_v14 = vld [vmem:[%s5477_s1 + $0x200] sm:$0xff]  }
  0x18   :  { %3722 = vmatpush3.bf16.msra.mxu0 %v4108_v22  ;;  %v4153_v5 = vld [vmem:[%s5477_s1 + $0x1b8] sm:$0xff]   ;;  %v3374_v7 = vcombine.low %v37_v6, %v37_v6  ;;  %v3375_v8 = vcombine.high %v37_v6, %v37_v6  ;;  %v4161_v15 = vld [vmem:[%s5477_s1 + $0x280] sm:$0xff]   ;;  %v4162_v16 = vld [vmem:[%s5477_s1 + $0x248] sm:$0xff]  }
  0x19   :  { %3744 = vmatpush3.bf16.msra.mxu1 %v4109_v23  ;;  %3723 = vmatprep.subr.bf16.mxu0 %v4110_v24  ;;  %v38_v9 = vld [vmem:[%s5478_s0 + $0x18] sm:$0xff]  ;;  %v4163_v17 = vld [vmem:[%s5477_s1 + $0x2c8] sm:$0xff]   ;;  %v4166_v20 = vld [vmem:[%s5477_s1 + $0x250] sm:$0xff]  }
  0x1a   :  { %3745 = vmatprep.subr.bf16.mxu1 %v4111_v25  ;;  %v3376_v10 = vcombine.low %v38_v9, %v38_v9  ;;  %v3377_v11 = vcombine.high %v38_v9, %v38_v9  ;;  %v4164_v18 = vld [vmem:[%s5477_s1 + $0x208] sm:$0xff]   ;;  %v4167_v21 = vld [vmem:[%s5477_s1 + $0x2d0] sm:$0xff]   ;;  %v4170_v24 = vld [vmem:[%s5477_s1 + $0x258] sm:$0xff]  }
  0x1b   :  { %v4165_v19 = vld [vmem:[%s5477_s1 + $0x288] sm:$0xff]   ;;  %v4168_v22 = vld [vmem:[%s5477_s1 + $0x210] sm:$0xff]   ;;  %v4171_v25 = vld [vmem:[%s5477_s1 + $0x2d8] sm:$0xff]  }
  0x1c   :  { %3724 = vmatpush3.bf16.msra.mxu0 %v4112_v26  ;;  %v4169_v23 = vld [vmem:[%s5477_s1 + $0x290] sm:$0xff]   ;;  %v4172_v26 = vld [vmem:[%s5477_s1 + $0x218] sm:$0xff]   ;;  %v4178_v32 = vld [vmem:[%s5477_s1 + $0x268] sm:$0xff]  }
  0x1d   :  { %3746 = vmatpush3.bf16.msra.mxu1 %v4113_v27  ;;  %3725 = vmatprep.subr.bf16.mxu0 %v4114_v28  ;;  %v4173_v27 = vld [vmem:[%s5477_s1 + $0x298] sm:$0xff]   ;;  %v4174_v28 = vld [vmem:[%s5477_s1 + $0x260] sm:$0xff]   ;;  %v4179_v33 = vld [vmem:[%s5477_s1 + $0x2e8] sm:$0xff]  }
  0x1e   :  { %3747 = vmatprep.subr.bf16.mxu1 %v4115_v29  ;;  %v4175_v29 = vld [vmem:[%s5477_s1 + $0x2e0] sm:$0xff]   ;;  %v4181_v35 = vld [vmem:[%s5477_s1 + $0x2a8] sm:$0xff]   ;;  %v4183_v37 = vld [vmem:[%s5477_s1 + $0x2f0] sm:$0xff]  }
  0x1f   :  { %v4214_v6 = vld [vmem:[%s5477_s1 + $0x368] sm:$0xff]  }
  0x20   :  { %3726 = vmatpush3.bf16.msra.mxu0 %v4116_v30  ;;  %v4176_v30 = vld [vmem:[%s5477_s1 + $0x220] sm:$0xff]   ;;  %v4217_v9 = vld [vmem:[%s5477_s1 + $0x3a8] sm:$0xff]  }
  0x21   :  { %3748 = vmatpush3.bf16.msra.mxu1 %v4117_v31  ;;  %3755 = vmatprep.subr.bf16.mxu0 %v4122_v38  ;;  %v4177_v31 = vld [vmem:[%s5477_s1 + $0x2a0] sm:$0xff]   ;;  %v4184_v38 = vld [vmem:[%s5477_s1 + $0x230] sm:$0xff]  }
  0x22   :  { %3777 = vmatprep.subr.bf16.mxu1 %v4123_v39  ;;  %v4185_v39 = vld [vmem:[%s5477_s1 + $0x2b0] sm:$0xff]  }
  0x23   :  { %2251 = vmatmul.mubr.bf16.vlgmr.msra.gmra.mrb[0].mxu0 %v3370_v34  ;;  %v4180_v34 = vld [vmem:[%s5477_s1 + $0x228] sm:$0xff]  }
  0x24   :  { %2291 = vmatmul.mubr.bf16.vlgmr.msra.gmra.mrb[0].mxu1 %v3372_v36  ;;  %3756 = vmatpush3.bf16.msra.mxu0 %v4124_v40  ;;  %v4182_v36 = vld [vmem:[%s5477_s1 + $0x270] sm:$0xff]   ;;  %v4186_v40 = vld [vmem:[%s5477_s1 + $0x278] sm:$0xff]  }
  0x25   :  { %3778 = vmatpush3.bf16.msra.mxu1 %v4125_v41  ;;  %3757 = vmatprep.subr.bf16.mxu0 %v4126_v42  ;;  %v4187_v41 = vld [vmem:[%s5477_s1 + $0x2f8] sm:$0xff]  }
  0x26   :  { %3779 = vmatprep.subr.bf16.mxu1 %v4127_v43  ;;  %2330 = vmatprep.mubr.bf16.mxu0 %v3375_v8  ;;  %v4188_v42 = vld [vmem:[%s5477_s1 + $0x238] sm:$0xff]   ;;  %v4216_v8 = vld [vmem:[%s5477_s1 + $0x328] sm:$0xff]  }
  0x27   :  { %2370 = vmatprep.mubr.bf16.mxu1 %v3377_v11  ;;  %v4189_v43 = vld [vmem:[%s5477_s1 + $0x2b8] sm:$0xff]   ;;  %v4219_v11 = vld [vmem:[%s5477_s1 + $0x3f0] sm:$0xff]  }
  0x28   :  { %3758 = vmatpush3.bf16.msra.mxu0 %v4128_v44  ;;  %v39_v44 = vld [vmem:[%s5478_s0 + $0x20] sm:$0xff] }
  0x29   :  { %3780 = vmatpush3.bf16.msra.mxu1 %v4129_v45  ;;  %3759 = vmatprep.subr.bf16.mxu0 %v4130_v46  ;;  %v40_v45 = vld [vmem:[%s5478_s0 + $0x28] sm:$0xff]  ;;  %v3378_v46 = vcombine.low %v39_v44, %v39_v44 }
  0x2a   :  { %3781 = vmatprep.subr.bf16.mxu1 %v4131_v47  ;;  %v3379_v47 = vcombine.high %v39_v44, %v39_v44  ;;  %v4250_v44 = vld [vmem:[%s5477_s1 + $0x468] sm:$0xff]  }
  0x2c   :  { %3760 = vmatpush3.bf16.msra.mxu0 %v4132_v48  ;;  %v3380_v48 = vcombine.low %v40_v45, %v40_v45 }
  0x2d   :  { %3782 = vmatpush3.bf16.msra.mxu1 %v4133_v49  ;;  %3761 = vmatprep.subr.bf16.mxu0 %v4134_v50  ;;  %v3381_v49 = vcombine.high %v40_v45, %v40_v45  ;;  %v4194_v50 = vld [vmem:[%s5477_s1 + $0x340] sm:$0xff]   ;;  %v4251_v45 = vld [vmem:[%s5477_s1 + $0x4e8] sm:$0xff]  }
  0x2e   :  { %3783 = vmatprep.subr.bf16.mxu1 %v4135_v51  ;;  %v4195_v51 = vld [vmem:[%s5477_s1 + $0x3c0] sm:$0xff]  }
  0x30   :  { %3762 = vmatpush3.bf16.msra.mxu0 %v4136_v52  ;;  %v4196_v52 = vld [vmem:[%s5477_s1 + $0x300] sm:$0xff]  }
  0x31   :  { %3784 = vmatpush3.bf16.msra.mxu1 %v4137_v53  ;;  %3763 = vmatprep.subr.bf16.mxu0 %v4138_v54  ;;  %v4197_v53 = vld [vmem:[%s5477_s1 + $0x380] sm:$0xff]   ;;  %v4198_v54 = vld [vmem:[%s5477_s1 + $0x348] sm:$0xff]  }
  0x32   :  { %3785 = vmatprep.subr.bf16.mxu1 %v4139_v55  ;;  %v4199_v55 = vld [vmem:[%s5477_s1 + $0x3c8] sm:$0xff]  }
  0x34   :  { %3764 = vmatpush3.bf16.msra.mxu0 %v4140_v56  ;;  %v4200_v56 = vld [vmem:[%s5477_s1 + $0x308] sm:$0xff]  }
  0x35   :  { %3786 = vmatpush3.bf16.msra.mxu1 %v4141_v57  ;;  %3765 = vmatprep.subr.bf16.mxu0 %v4142_v58  ;;  %v4201_v57 = vld [vmem:[%s5477_s1 + $0x388] sm:$0xff]   ;;  %v4202_v58 = vld [vmem:[%s5477_s1 + $0x350] sm:$0xff]  }
  0x36   :  { %3787 = vmatprep.subr.bf16.mxu1 %v4143_v59  ;;  %v4203_v59 = vld [vmem:[%s5477_s1 + $0x3d0] sm:$0xff]  }
  0x38   :  { %3766 = vmatpush3.bf16.msra.mxu0 %v4144_v60  ;;  %v4204_v60 = vld [vmem:[%s5477_s1 + $0x310] sm:$0xff]  }
  0x39   :  { %3788 = vmatpush3.bf16.msra.mxu1 %v4145_v61  ;;  %3767 = vmatprep.subr.bf16.mxu0 %v4146_v62  ;;  %v4205_v61 = vld [vmem:[%s5477_s1 + $0x390] sm:$0xff]   ;;  %v4206_v62 = vld [vmem:[%s5477_s1 + $0x358] sm:$0xff]  }
  0x3a   :  { %3789 = vmatprep.subr.bf16.mxu1 %v4147_v63  ;;  %v4207_v63 = vld [vmem:[%s5477_s1 + $0x3d8] sm:$0xff]  }
  0x3c   :  { %3768 = vmatpush3.bf16.msra.mxu0 %v4148_v0  ;;  %v4208_v0 = vld [vmem:[%s5477_s1 + $0x318] sm:$0xff]  }
  0x3d   :  { %3790 = vmatpush3.bf16.msra.mxu1 %v4149_v1  ;;  %3769 = vmatprep.subr.bf16.mxu0 %v4150_v2  ;;  %v4209_v1 = vld [vmem:[%s5477_s1 + $0x398] sm:$0xff]   ;;  %v4210_v2 = vld [vmem:[%s5477_s1 + $0x360] sm:$0xff]  }
  0x3e   :  { %3791 = vmatprep.subr.bf16.mxu1 %v4151_v3  ;;  %v4211_v3 = vld [vmem:[%s5477_s1 + $0x3e0] sm:$0xff]  }
  0x40   :  { %3770 = vmatpush3.bf16.msra.mxu0 %v4152_v4  ;;  %v4212_v4 = vld [vmem:[%s5477_s1 + $0x320] sm:$0xff]  }
  0x41   :  { %3792 = vmatpush3.bf16.msra.mxu1 %v4153_v5  ;;  %3799 = vmatprep.subr.bf16.mxu0 %v4158_v12  ;;  %v4213_v5 = vld [vmem:[%s5477_s1 + $0x3a0] sm:$0xff]   ;;  %v4220_v12 = vld [vmem:[%s5477_s1 + $0x330] sm:$0xff]  }
  0x42   :  { %3821 = vmatprep.subr.bf16.mxu1 %v4159_v13  ;;  %v4221_v13 = vld [vmem:[%s5477_s1 + $0x3b0] sm:$0xff]  }
  0x43   :  { %2331 = vmatmul.mubr.bf16.vlgmr.msra.gmra.mrb[4].mxu0 %v3374_v7  ;;  %v4215_v7 = vld [vmem:[%s5477_s1 + $0x3e8] sm:$0xff]  }
  0x44   :  { %2371 = vmatmul.mubr.bf16.vlgmr.msra.gmra.mrb[4].mxu1 %v3376_v10  ;;  %3800 = vmatpush3.bf16.msra.mxu0 %v4160_v14  ;;  %v4218_v10 = vld [vmem:[%s5477_s1 + $0x370] sm:$0xff]   ;;  %v4222_v14 = vld [vmem:[%s5477_s1 + $0x378] sm:$0xff]  }
  0x45   :  { %3822 = vmatpush3.bf16.msra.mxu1 %v4161_v15  ;;  %3801 = vmatprep.subr.bf16.mxu0 %v4162_v16  ;;  %v4223_v15 = vld [vmem:[%s5477_s1 + $0x3f8] sm:$0xff]  }
  0x46   :  { %3823 = vmatprep.subr.bf16.mxu1 %v4163_v17  ;;  %2410 = vmatprep.mubr.bf16.mxu0 %v3379_v47  ;;  %v4224_v16 = vld [vmem:[%s5477_s1 + $0x338] sm:$0xff]   ;;  %v4253_v47 = vld [vmem:[%s5477_s1 + $0x4a8] sm:$0xff]  }
  0x47   :  { %2450 = vmatprep.mubr.bf16.mxu1 %v3381_v49  ;;  %v4225_v17 = vld [vmem:[%s5477_s1 + $0x3b8] sm:$0xff]   ;;  %v4255_v49 = vld [vmem:[%s5477_s1 + $0x4f0] sm:$0xff]  }
  0x48   :  { %3802 = vmatpush3.bf16.msra.mxu0 %v4164_v18  ;;  %v41_v18 = vld [vmem:[%s5478_s0 + $0x30] sm:$0xff] }
  0x49   :  { %3824 = vmatpush3.bf16.msra.mxu1 %v4165_v19  ;;  %3803 = vmatprep.subr.bf16.mxu0 %v4166_v20  ;;  %v42_v19 = vld [vmem:[%s5478_s0 + $0x38] sm:$0xff]  ;;  %v3382_v20 = vcombine.low %v41_v18, %v41_v18 }
  0x4a   :  { %3825 = vmatprep.subr.bf16.mxu1 %v4167_v21  ;;  %v3383_v21 = vcombine.high %v41_v18, %v41_v18  ;;  %v4286_v18 = vld [vmem:[%s5477_s1 + $0x568] sm:$0xff]  }
  0x4c   :  { %3804 = vmatpush3.bf16.msra.mxu0 %v4168_v22  ;;  %v3384_v22 = vcombine.low %v42_v19, %v42_v19 }
  0x4d   :  { %3826 = vmatpush3.bf16.msra.mxu1 %v4169_v23  ;;  %3805 = vmatprep.subr.bf16.mxu0 %v4170_v24  ;;  %v4230_v23 = vld [vmem:[%s5477_s1 + $0x440] sm:$0xff]   ;;  %v3385_v24 = vcombine.high %v42_v19, %v42_v19  ;;  %v4287_v19 = vld [vmem:[%s5477_s1 + $0x5e8] sm:$0xff]  }
  0x4e   :  { %3827 = vmatprep.subr.bf16.mxu1 %v4171_v25  ;;  %v4231_v25 = vld [vmem:[%s5477_s1 + $0x4c0] sm:$0xff]  }
  0x50   :  { %3806 = vmatpush3.bf16.msra.mxu0 %v4172_v26  ;;  %v4232_v26 = vld [vmem:[%s5477_s1 + $0x400] sm:$0xff]  }
  0x51   :  { %3828 = vmatpush3.bf16.msra.mxu1 %v4173_v27  ;;  %3807 = vmatprep.subr.bf16.mxu0 %v4174_v28  ;;  %v4233_v27 = vld [vmem:[%s5477_s1 + $0x480] sm:$0xff]   ;;  %v4234_v28 = vld [vmem:[%s5477_s1 + $0x448] sm:$0xff]  }
  0x52   :  { %3829 = vmatprep.subr.bf16.mxu1 %v4175_v29  ;;  %v4235_v29 = vld [vmem:[%s5477_s1 + $0x4c8] sm:$0xff]  }
  0x54   :  { %3808 = vmatpush3.bf16.msra.mxu0 %v4176_v30  ;;  %v4236_v30 = vld [vmem:[%s5477_s1 + $0x408] sm:$0xff]  }
  0x55   :  { %3830 = vmatpush3.bf16.msra.mxu1 %v4177_v31  ;;  %3809 = vmatprep.subr.bf16.mxu0 %v4178_v32  ;;  %v4237_v31 = vld [vmem:[%s5477_s1 + $0x488] sm:$0xff]   ;;  %v4238_v32 = vld [vmem:[%s5477_s1 + $0x450] sm:$0xff]  }
  0x56   :  { %3831 = vmatprep.subr.bf16.mxu1 %v4179_v33  ;;  %v4239_v33 = vld [vmem:[%s5477_s1 + $0x4d0] sm:$0xff]  }
  0x58   :  { %3810 = vmatpush3.bf16.msra.mxu0 %v4180_v34  ;;  %v4240_v34 = vld [vmem:[%s5477_s1 + $0x410] sm:$0xff]  }
  0x59   :  { %3832 = vmatpush3.bf16.msra.mxu1 %v4181_v35  ;;  %3811 = vmatprep.subr.bf16.mxu0 %v4182_v36  ;;  %v4241_v35 = vld [vmem:[%s5477_s1 + $0x490] sm:$0xff]   ;;  %v4242_v36 = vld [vmem:[%s5477_s1 + $0x458] sm:$0xff]  }
  0x5a   :  { %3833 = vmatprep.subr.bf16.mxu1 %v4183_v37  ;;  %v4243_v37 = vld [vmem:[%s5477_s1 + $0x4d8] sm:$0xff]  }
  0x5c   :  { %3812 = vmatpush3.bf16.msra.mxu0 %v4184_v38  ;;  %v4244_v38 = vld [vmem:[%s5477_s1 + $0x418] sm:$0xff]  }
  0x5d   :  { %3834 = vmatpush3.bf16.msra.mxu1 %v4185_v39  ;;  %3813 = vmatprep.subr.bf16.mxu0 %v4186_v40  ;;  %v4245_v39 = vld [vmem:[%s5477_s1 + $0x498] sm:$0xff]   ;;  %v4246_v40 = vld [vmem:[%s5477_s1 + $0x460] sm:$0xff]  }
  0x5e   :  { %3835 = vmatprep.subr.bf16.mxu1 %v4187_v41  ;;  %v4247_v41 = vld [vmem:[%s5477_s1 + $0x4e0] sm:$0xff]  }
  0x60   :  { %3814 = vmatpush3.bf16.msra.mxu0 %v4188_v42  ;;  %v4248_v42 = vld [vmem:[%s5477_s1 + $0x420] sm:$0xff]  }
  0x61   :  { %3836 = vmatpush3.bf16.msra.mxu1 %v4189_v43  ;;  %3843 = vmatprep.subr.bf16.mxu0 %v4194_v50  ;;  %v4249_v43 = vld [vmem:[%s5477_s1 + $0x4a0] sm:$0xff]   ;;  %v4256_v50 = vld [vmem:[%s5477_s1 + $0x430] sm:$0xff]  }
  0x62   :  { %3865 = vmatprep.subr.bf16.mxu1 %v4195_v51  ;;  %v4257_v51 = vld [vmem:[%s5477_s1 + $0x4b0] sm:$0xff]  }
  0x63   :  { %2411 = vmatmul.mubr.bf16.vlgmr.msra.gmra.mrb[8].mxu0 %v3378_v46  ;;  %v4252_v46 = vld [vmem:[%s5477_s1 + $0x428] sm:$0xff]  }
  0x64   :  { %2451 = vmatmul.mubr.bf16.vlgmr.msra.gmra.mrb[8].mxu1 %v3380_v48  ;;  %3844 = vmatpush3.bf16.msra.mxu0 %v4196_v52  ;;  %v4254_v48 = vld [vmem:[%s5477_s1 + $0x470] sm:$0xff]   ;;  %v4258_v52 = vld [vmem:[%s5477_s1 + $0x478] sm:$0xff]  }
  0x65   :  { %3866 = vmatpush3.bf16.msra.mxu1 %v4197_v53  ;;  %3845 = vmatprep.subr.bf16.mxu0 %v4198_v54  ;;  %v4259_v53 = vld [vmem:[%s5477_s1 + $0x4f8] sm:$0xff]  }
  0x66   :  { %3867 = vmatprep.subr.bf16.mxu1 %v4199_v55  ;;  %2490 = vmatprep.mubr.bf16.mxu0 %v3383_v21  ;;  %v4260_v54 = vld [vmem:[%s5477_s1 + $0x438] sm:$0xff]   ;;  %v4289_v21 = vld [vmem:[%s5477_s1 + $0x5a8] sm:$0xff]  }
  0x67   :  { %2530 = vmatprep.mubr.bf16.mxu1 %v3385_v24  ;;  %v4261_v55 = vld [vmem:[%s5477_s1 + $0x4b8] sm:$0xff]   ;;  %v4292_v24 = vld [vmem:[%s5477_s1 + $0x530] sm:$0xff]  }
  0x68   :  { %3846 = vmatpush3.bf16.msra.mxu0 %v4200_v56  ;;  %v43_v56 = vld [vmem:[%s5478_s0 + $0x40] sm:$0xff] }
  0x69   :  { %3868 = vmatpush3.bf16.msra.mxu1 %v4201_v57  ;;  %3847 = vmatprep.subr.bf16.mxu0 %v4202_v58  ;;  %v3386_v57 = vcombine.low %v43_v56, %v43_v56  ;;  %v3387_v58 = vcombine.high %v43_v56, %v43_v56  ;;  %v4322_v56 = vld [vmem:[%s5477_s1 + $0x668] sm:$0xff]  }
  0x6a   :  { %3869 = vmatprep.subr.bf16.mxu1 %v4203_v59  ;;  %v44_v59 = vld [vmem:[%s5478_s0 + $0x48] sm:$0xff] }
  0x6c   :  { %3848 = vmatpush3.bf16.msra.mxu0 %v4204_v60  ;;  %v3388_v60 = vcombine.low %v44_v59, %v44_v59 }
  0x6d   :  { %3870 = vmatpush3.bf16.msra.mxu1 %v4205_v61  ;;  %3849 = vmatprep.subr.bf16.mxu0 %v4206_v62  ;;  %v3389_v61 = vcombine.high %v44_v59, %v44_v59  ;;  %v4266_v62 = vld [vmem:[%s5477_s1 + $0x540] sm:$0xff]   ;;  %v4325_v59 = vld [vmem:[%s5477_s1 + $0x6a8] sm:$0xff]  }
  0x6e   :  { %3871 = vmatprep.subr.bf16.mxu1 %v4207_v63  ;;  %v4267_v63 = vld [vmem:[%s5477_s1 + $0x5c0] sm:$0xff]  }
  0x70   :  { %3850 = vmatpush3.bf16.msra.mxu0 %v4208_v0  ;;  %v4268_v0 = vld [vmem:[%s5477_s1 + $0x500] sm:$0xff]  }
  0x71   :  { %3872 = vmatpush3.bf16.msra.mxu1 %v4209_v1  ;;  %3851 = vmatprep.subr.bf16.mxu0 %v4210_v2  ;;  %v4269_v1 = vld [vmem:[%s5477_s1 + $0x580] sm:$0xff]   ;;  %v4270_v2 = vld [vmem:[%s5477_s1 + $0x548] sm:$0xff]  }
  0x72   :  { %3873 = vmatprep.subr.bf16.mxu1 %v4211_v3  ;;  %v4271_v3 = vld [vmem:[%s5477_s1 + $0x5c8] sm:$0xff]  }
  0x74   :  { %3852 = vmatpush3.bf16.msra.mxu0 %v4212_v4  ;;  %v4272_v4 = vld [vmem:[%s5477_s1 + $0x508] sm:$0xff]  }
  0x75   :  { %3874 = vmatpush3.bf16.msra.mxu1 %v4213_v5  ;;  %3853 = vmatprep.subr.bf16.mxu0 %v4214_v6  ;;  %v4273_v5 = vld [vmem:[%s5477_s1 + $0x588] sm:$0xff]   ;;  %v4274_v6 = vld [vmem:[%s5477_s1 + $0x550] sm:$0xff]  }
  0x76   :  { %3875 = vmatprep.subr.bf16.mxu1 %v4215_v7  ;;  %v4275_v7 = vld [vmem:[%s5477_s1 + $0x5d0] sm:$0xff]  }
  0x78   :  { %3854 = vmatpush3.bf16.msra.mxu0 %v4216_v8  ;;  %v4276_v8 = vld [vmem:[%s5477_s1 + $0x510] sm:$0xff]  }
  0x79   :  { %3876 = vmatpush3.bf16.msra.mxu1 %v4217_v9  ;;  %3855 = vmatprep.subr.bf16.mxu0 %v4218_v10  ;;  %v4277_v9 = vld [vmem:[%s5477_s1 + $0x590] sm:$0xff]   ;;  %v4278_v10 = vld [vmem:[%s5477_s1 + $0x558] sm:$0xff]  }
  0x7a   :  { %3877 = vmatprep.subr.bf16.mxu1 %v4219_v11  ;;  %v4279_v11 = vld [vmem:[%s5477_s1 + $0x5d8] sm:$0xff]  }
  0x7c   :  { %3856 = vmatpush3.bf16.msra.mxu0 %v4220_v12  ;;  %v4280_v12 = vld [vmem:[%s5477_s1 + $0x518] sm:$0xff]  }
  0x7d   :  { %3878 = vmatpush3.bf16.msra.mxu1 %v4221_v13  ;;  %3857 = vmatprep.subr.bf16.mxu0 %v4222_v14  ;;  %v4281_v13 = vld [vmem:[%s5477_s1 + $0x598] sm:$0xff]   ;;  %v4282_v14 = vld [vmem:[%s5477_s1 + $0x560] sm:$0xff]  }
  0x7e   :  { %3879 = vmatprep.subr.bf16.mxu1 %v4223_v15  ;;  %v4283_v15 = vld [vmem:[%s5477_s1 + $0x5e0] sm:$0xff]  }
  0x80   :  { %3858 = vmatpush3.bf16.msra.mxu0 %v4224_v16  ;;  %v4284_v16 = vld [vmem:[%s5477_s1 + $0x520] sm:$0xff]  }
  0x81   :  { %3880 = vmatpush3.bf16.msra.mxu1 %v4225_v17  ;;  %3887 = vmatprep.subr.bf16.mxu0 %v4230_v23  ;;  %v4285_v17 = vld [vmem:[%s5477_s1 + $0x5a0] sm:$0xff]   ;;  %v4291_v23 = vld [vmem:[%s5477_s1 + $0x5f0] sm:$0xff]  }
  0x82   :  { %3909 = vmatprep.subr.bf16.mxu1 %v4231_v25  ;;  %v4293_v25 = vld [vmem:[%s5477_s1 + $0x5b0] sm:$0xff]  }
  0x83   :  { %2491 = vmatmul.mubr.bf16.vlgmr.msra.gmra.mrb[12].mxu0 %v3382_v20  ;;  %v4288_v20 = vld [vmem:[%s5477_s1 + $0x528] sm:$0xff]  }
  0x84   :  { %2531 = vmatmul.mubr.bf16.vlgmr.msra.gmra.mrb[12].mxu1 %v3384_v22  ;;  %3888 = vmatpush3.bf16.msra.mxu0 %v4232_v26  ;;  %v4290_v22 = vld [vmem:[%s5477_s1 + $0x570] sm:$0xff]   ;;  %v4294_v26 = vld [vmem:[%s5477_s1 + $0x578] sm:$0xff]  }
  0x85   :  { %3910 = vmatpush3.bf16.msra.mxu1 %v4233_v27  ;;  %3889 = vmatprep.subr.bf16.mxu0 %v4234_v28  ;;  %v4295_v27 = vld [vmem:[%s5477_s1 + $0x5f8] sm:$0xff]  }
  0x86   :  { %3911 = vmatprep.subr.bf16.mxu1 %v4235_v29  ;;  %2570 = vmatprep.mubr.bf16.mxu0 %v3387_v58  ;;  %v4296_v28 = vld [vmem:[%s5477_s1 + $0x538] sm:$0xff]   ;;  %v4324_v58 = vld [vmem:[%s5477_s1 + $0x628] sm:$0xff]  }
  0x87   :  { %2610 = vmatprep.mubr.bf16.mxu1 %v3389_v61  ;;  %v4297_v29 = vld [vmem:[%s5477_s1 + $0x5b8] sm:$0xff]   ;;  %v4327_v61 = vld [vmem:[%s5477_s1 + $0x6f0] sm:$0xff]  }
  0x88   :  { %3890 = vmatpush3.bf16.msra.mxu0 %v4236_v30  ;;  %v45_v30 = vld [vmem:[%s5478_s0 + $0x50] sm:$0xff] }
  0x89   :  { %3912 = vmatpush3.bf16.msra.mxu1 %v4237_v31  ;;  %3891 = vmatprep.subr.bf16.mxu0 %v4238_v32  ;;  %v46_v31 = vld [vmem:[%s5478_s0 + $0x58] sm:$0xff]  ;;  %v3390_v32 = vcombine.low %v45_v30, %v45_v30 }
  0x8a   :  { %3913 = vmatprep.subr.bf16.mxu1 %v4239_v33  ;;  %v3391_v33 = vcombine.high %v45_v30, %v45_v30  ;;  %v4357_v30 = vld [vmem:[%s5477_s1 + $0x7a0] sm:$0xff]  }
  0x8c   :  { %3892 = vmatpush3.bf16.msra.mxu0 %v4240_v34  ;;  %v3392_v34 = vcombine.low %v46_v31, %v46_v31 }
  0x8d   :  { %3914 = vmatpush3.bf16.msra.mxu1 %v4241_v35  ;;  %3893 = vmatprep.subr.bf16.mxu0 %v4242_v36  ;;  %v3393_v35 = vcombine.high %v46_v31, %v46_v31  ;;  %v4302_v36 = vld [vmem:[%s5477_s1 + $0x640] sm:$0xff]  }
  0x8e   :  { %3915 = vmatprep.subr.bf16.mxu1 %v4243_v37  ;;  %v4303_v37 = vld [vmem:[%s5477_s1 + $0x6c0] sm:$0xff]  }
  0x90   :  { %3894 = vmatpush3.bf16.msra.mxu0 %v4244_v38  ;;  %v4304_v38 = vld [vmem:[%s5477_s1 + $0x600] sm:$0xff]  }
  0x91   :  { %3916 = vmatpush3.bf16.msra.mxu1 %v4245_v39  ;;  %3895 = vmatprep.subr.bf16.mxu0 %v4246_v40  ;;  %v4305_v39 = vld [vmem:[%s5477_s1 + $0x680] sm:$0xff]   ;;  %v4306_v40 = vld [vmem:[%s5477_s1 + $0x648] sm:$0xff]  }
  0x92   :  { %3917 = vmatprep.subr.bf16.mxu1 %v4247_v41  ;;  %v4307_v41 = vld [vmem:[%s5477_s1 + $0x6c8] sm:$0xff]  }
  0x94   :  { %3896 = vmatpush3.bf16.msra.mxu0 %v4248_v42  ;;  %v4308_v42 = vld [vmem:[%s5477_s1 + $0x608] sm:$0xff]  }
  0x95   :  { %3918 = vmatpush3.bf16.msra.mxu1 %v4249_v43  ;;  %3897 = vmatprep.subr.bf16.mxu0 %v4250_v44  ;;  %v4309_v43 = vld [vmem:[%s5477_s1 + $0x688] sm:$0xff]   ;;  %v4310_v44 = vld [vmem:[%s5477_s1 + $0x650] sm:$0xff]  }
  0x96   :  { %3919 = vmatprep.subr.bf16.mxu1 %v4251_v45  ;;  %v4311_v45 = vld [vmem:[%s5477_s1 + $0x6d0] sm:$0xff]  }
  0x98   :  { %3898 = vmatpush3.bf16.msra.mxu0 %v4252_v46  ;;  %v4312_v46 = vld [vmem:[%s5477_s1 + $0x610] sm:$0xff]  }
  0x99   :  { %3920 = vmatpush3.bf16.msra.mxu1 %v4253_v47  ;;  %3899 = vmatprep.subr.bf16.mxu0 %v4254_v48  ;;  %v4313_v47 = vld [vmem:[%s5477_s1 + $0x690] sm:$0xff]   ;;  %v4314_v48 = vld [vmem:[%s5477_s1 + $0x658] sm:$0xff]  }
  0x9a   :  { %3921 = vmatprep.subr.bf16.mxu1 %v4255_v49  ;;  %v4315_v49 = vld [vmem:[%s5477_s1 + $0x6d8] sm:$0xff]  }
  0x9c   :  { %3900 = vmatpush3.bf16.msra.mxu0 %v4256_v50  ;;  %v4316_v50 = vld [vmem:[%s5477_s1 + $0x618] sm:$0xff]  }
  0x9d   :  { %3922 = vmatpush3.bf16.msra.mxu1 %v4257_v51  ;;  %3901 = vmatprep.subr.bf16.mxu0 %v4258_v52  ;;  %v4317_v51 = vld [vmem:[%s5477_s1 + $0x698] sm:$0xff]   ;;  %v4318_v52 = vld [vmem:[%s5477_s1 + $0x660] sm:$0xff]  }
  0x9e   :  { %3923 = vmatprep.subr.bf16.mxu1 %v4259_v53  ;;  %v4319_v53 = vld [vmem:[%s5477_s1 + $0x6e0] sm:$0xff]  }
  0xa0   :  { %3902 = vmatpush3.bf16.msra.mxu0 %v4260_v54  ;;  %v4320_v54 = vld [vmem:[%s5477_s1 + $0x620] sm:$0xff]  }
  0xa1   :  { %3924 = vmatpush3.bf16.msra.mxu1 %v4261_v55  ;;  %3931 = vmatprep.subr.bf16.mxu0 %v4266_v62  ;;  %v4321_v55 = vld [vmem:[%s5477_s1 + $0x6a0] sm:$0xff]   ;;  %v4328_v62 = vld [vmem:[%s5477_s1 + $0x630] sm:$0xff]  }
  0xa2   :  { %3953 = vmatprep.subr.bf16.mxu1 %v4267_v63  ;;  %v4329_v63 = vld [vmem:[%s5477_s1 + $0x6b0] sm:$0xff]  }
  0xa3   :  { %2571 = vmatmul.mubr.bf16.vlgmr.msra.gmra.mrb[16].mxu0 %v3386_v57  ;;  %v4323_v57 = vld [vmem:[%s5477_s1 + $0x6e8] sm:$0xff]  }
  0xa4   :  { %2611 = vmatmul.mubr.bf16.vlgmr.msra.gmra.mrb[16].mxu1 %v3388_v60  ;;  %3932 = vmatpush3.bf16.msra.mxu0 %v4268_v0  ;;  %v4326_v60 = vld [vmem:[%s5477_s1 + $0x670] sm:$0xff]   ;;  %v4330_v0 = vld [vmem:[%s5477_s1 + $0x678] sm:$0xff]  }
  0xa5   :  { %3954 = vmatpush3.bf16.msra.mxu1 %v4269_v1  ;;  %3933 = vmatprep.subr.bf16.mxu0 %v4270_v2  ;;  %v4331_v1 = vld [vmem:[%s5477_s1 + $0x6f8] sm:$0xff]  }
  0xa6   :  { %3955 = vmatprep.subr.bf16.mxu1 %v4271_v3  ;;  %2650 = vmatprep.mubr.bf16.mxu0 %v3391_v33  ;;  %v4332_v2 = vld [vmem:[%s5477_s1 + $0x638] sm:$0xff]  }
  0xa7   :  { %2690 = vmatprep.mubr.bf16.mxu1 %v3393_v35  ;;  %v4333_v3 = vld [vmem:[%s5477_s1 + $0x6b8] sm:$0xff]  }
  0xa8   :  { %3934 = vmatpush3.bf16.msra.mxu0 %v4272_v4  ;;  %v47_v4 = vld [vmem:[%s5478_s0 + $0x60] sm:$0xff] }
  0xa9   :  { %3956 = vmatpush3.bf16.msra.mxu1 %v4273_v5  ;;  %3935 = vmatprep.subr.bf16.mxu0 %v4274_v6  ;;  %v48_v5 = vld [vmem:[%s5478_s0 + $0x68] sm:$0xff]  ;;  %v3394_v6 = vcombine.low %v47_v4, %v47_v4 }
  0xaa   :  { %3957 = vmatprep.subr.bf16.mxu1 %v4275_v7  ;;  %v3395_v7 = vcombine.high %v47_v4, %v47_v4 }
  0xac   :  { %3936 = vmatpush3.bf16.msra.mxu0 %v4276_v8  ;;  %v3396_v8 = vcombine.low %v48_v5, %v48_v5 }
  0xad   :  { %3958 = vmatpush3.bf16.msra.mxu1 %v4277_v9  ;;  %3937 = vmatprep.subr.bf16.mxu0 %v4278_v10  ;;  %v4338_v9 = vld [vmem:[%s5477_s1 + $0x740] sm:$0xff]   ;;  %v3397_v10 = vcombine.high %v48_v5, %v48_v5 }
  0xae   :  { %3959 = vmatprep.subr.bf16.mxu1 %v4279_v11  ;;  %v4339_v11 = vld [vmem:[%s5477_s1 + $0x7c0] sm:$0xff]  }
  0xb0   :  { %3938 = vmatpush3.bf16.msra.mxu0 %v4280_v12  ;;  %v4340_v12 = vld [vmem:[%s5477_s1 + $0x700] sm:$0xff]  }
  0xb1   :  { %3960 = vmatpush3.bf16.msra.mxu1 %v4281_v13  ;;  %3939 = vmatprep.subr.bf16.mxu0 %v4282_v14  ;;  %v4341_v13 = vld [vmem:[%s5477_s1 + $0x780] sm:$0xff]   ;;  %v4342_v14 = vld [vmem:[%s5477_s1 + $0x748] sm:$0xff]  }
  0xb2   :  { %3961 = vmatprep.subr.bf16.mxu1 %v4283_v15  ;;  %v4343_v15 = vld [vmem:[%s5477_s1 + $0x7c8] sm:$0xff]  }
  0xb4   :  { %3940 = vmatpush3.bf16.msra.mxu0 %v4284_v16  ;;  %v4344_v16 = vld [vmem:[%s5477_s1 + $0x708] sm:$0xff]  }
  0xb5   :  { %3962 = vmatpush3.bf16.msra.mxu1 %v4285_v17  ;;  %3941 = vmatprep.subr.bf16.mxu0 %v4286_v18  ;;  %v4345_v17 = vld [vmem:[%s5477_s1 + $0x788] sm:$0xff]   ;;  %v4346_v18 = vld [vmem:[%s5477_s1 + $0x750] sm:$0xff]  }
  0xb6   :  { %3963 = vmatprep.subr.bf16.mxu1 %v4287_v19  ;;  %v4347_v19 = vld [vmem:[%s5477_s1 + $0x7d0] sm:$0xff]  }
  0xb8   :  { %3942 = vmatpush3.bf16.msra.mxu0 %v4288_v20  ;;  %v4348_v20 = vld [vmem:[%s5477_s1 + $0x710] sm:$0xff]  }
  0xb9   :  { %3964 = vmatpush3.bf16.msra.mxu1 %v4289_v21  ;;  %3943 = vmatprep.subr.bf16.mxu0 %v4290_v22  ;;  %v4349_v21 = vld [vmem:[%s5477_s1 + $0x790] sm:$0xff]   ;;  %v4350_v22 = vld [vmem:[%s5477_s1 + $0x758] sm:$0xff]  }
  0xba   :  { %3965 = vmatprep.subr.bf16.mxu1 %v4291_v23  ;;  %v4351_v23 = vld [vmem:[%s5477_s1 + $0x7d8] sm:$0xff]  }
  0xbc   :  { %3944 = vmatpush3.bf16.msra.mxu0 %v4292_v24  ;;  %v4352_v24 = vld [vmem:[%s5477_s1 + $0x718] sm:$0xff]  }
  0xbd   :  { %3966 = vmatpush3.bf16.msra.mxu1 %v4293_v25  ;;  %3945 = vmatprep.subr.bf16.mxu0 %v4294_v26  ;;  %v4353_v25 = vld [vmem:[%s5477_s1 + $0x798] sm:$0xff]   ;;  %v4354_v26 = vld [vmem:[%s5477_s1 + $0x760] sm:$0xff]  }
  0xbe   :  { %3967 = vmatprep.subr.bf16.mxu1 %v4295_v27  ;;  %v4355_v27 = vld [vmem:[%s5477_s1 + $0x7e0] sm:$0xff]  }
  0xc0   :  { %3946 = vmatpush3.bf16.msra.mxu0 %v4296_v28  ;;  %v4356_v28 = vld [vmem:[%s5477_s1 + $0x720] sm:$0xff]  }
  0xc1   :  { %3968 = vmatpush3.bf16.msra.mxu1 %v4297_v29  ;;  %3975 = vmatprep.subr.bf16.mxu0 %v4302_v36 }
  0xc2   :  { %3997 = vmatprep.subr.bf16.mxu1 %v4303_v37  ;;  %v4358_v37 = vld [vmem:[%s5477_s1 + $0x768] sm:$0xff]  }
  0xc3   :  { %2651 = vmatmul.mubr.bf16.vlgmr.msra.gmra.mrb[20].mxu0 %v3390_v32  ;;  %v3369_v32 = vld [vmem:[%s5479_s2] ss:$0 sm:$0xff] }
  0xc4   :  { %2691 = vmatmul.mubr.bf16.vlgmr.msra.gmra.mrb[20].mxu1 %v3392_v34  ;;  %3976 = vmatpush3.bf16.msra.mxu0 %v4304_v38 }
  0xc5   :  { %3998 = vmatpush3.bf16.msra.mxu1 %v4305_v39  ;;  %3977 = vmatprep.subr.bf16.mxu0 %v4306_v40  ;;  %v4359_v39 = vld [vmem:[%s5477_s1 + $0x7e8] sm:$0xff]  }
  0xc6   :  { %3999 = vmatprep.subr.bf16.mxu1 %v4307_v41  ;;  %2730 = vmatprep.mubr.bf16.mxu0 %v3395_v7 }
  0xc7   :  { %2770 = vmatprep.mubr.bf16.mxu1 %v3397_v10 }
  0xc8   :  { %3978 = vmatpush3.bf16.msra.mxu0 %v4308_v42  ;;  %v4360_v42 = vld [vmem:[%s5477_s1 + $0x728] sm:$0xff]  }
  0xc9   :  { %4000 = vmatpush3.bf16.msra.mxu1 %v4309_v43  ;;  %3979 = vmatprep.subr.bf16.mxu0 %v4310_v44  ;;  %v4361_v44 = vld [vmem:[%s5477_s1 + $0x7a8] sm:$0xff]  }
  0xca   :  { %4001 = vmatprep.subr.bf16.mxu1 %v4311_v45 }
  0xcc   :  { %3980 = vmatpush3.bf16.msra.mxu0 %v4312_v46 }
  0xcd   :  { %4002 = vmatpush3.bf16.msra.mxu1 %v4313_v47  ;;  %3981 = vmatprep.subr.bf16.mxu0 %v4314_v48  ;;  %v4362_v47 = vld [vmem:[%s5477_s1 + $0x770] sm:$0xff]  }
  0xce   :  { %4003 = vmatprep.subr.bf16.mxu1 %v4315_v49  ;;  %v4363_v48 = vld [vmem:[%s5477_s1 + $0x7f0] sm:$0xff]  }
  0xcf   :  { %v4364_v49 = vld [vmem:[%s5477_s1 + $0x730] sm:$0xff]  }
  0xd0   :  { %3982 = vmatpush3.bf16.msra.mxu0 %v4316_v50  ;;  %v4365_v50 = vld [vmem:[%s5477_s1 + $0x7b0] sm:$0xff]  }
  0xd1   :  { %4004 = vmatpush3.bf16.msra.mxu1 %v4317_v51  ;;  %3983 = vmatprep.subr.bf16.mxu0 %v4318_v52  ;;  %v4366_v51 = vld [vmem:[%s5477_s1 + $0x778] sm:$0xff]  }
  0xd2   :  { %4005 = vmatprep.subr.bf16.mxu1 %v4319_v53  ;;  %v4367_v52 = vld [vmem:[%s5477_s1 + $0x7f8] sm:$0xff]  }
  0xd3   :  { %v4368_v53 = vld [vmem:[%s5477_s1 + $0x738] sm:$0xff]  }
  0xd4   :  { %3984 = vmatpush3.bf16.msra.mxu0 %v4320_v54  ;;  %v4369_v54 = vld [vmem:[%s5477_s1 + $0x7b8] sm:$0xff]  }
  0xd5   :  { %4006 = vmatpush3.bf16.msra.mxu1 %v4321_v55  ;;  %3985 = vmatprep.subr.bf16.mxu0 %v4322_v56  ;;  %v49_v55 = vld [vmem:[%s5478_s0 + $0x70] sm:$0xff]  ;;  %v50_v56 = vld [vmem:[%s5478_s0 + $0x78] sm:$0xff] }
  0xd6   :  { %4007 = vmatprep.subr.bf16.mxu1 %v4323_v57  ;;  %v3398_v57 = vcombine.low %v49_v55, %v49_v55 }
  0xd8   :  { %3986 = vmatpush3.bf16.msra.mxu0 %v4324_v58  ;;  %v3399_v58 = vcombine.high %v49_v55, %v49_v55 }
  0xd9   :  { %4008 = vmatpush3.bf16.msra.mxu1 %v4325_v59  ;;  %3987 = vmatprep.subr.bf16.mxu0 %v4326_v60  ;;  %v3400_v59 = vcombine.low %v50_v56, %v50_v56  ;;  %v3401_v60 = vcombine.high %v50_v56, %v50_v56 }
  0xda   :  { %4009 = vmatprep.subr.bf16.mxu1 %v4327_v61 }
  0xdc   :  { %3988 = vmatpush3.bf16.msra.mxu0 %v4328_v62 }
  0xdd   :  { %4010 = vmatpush3.bf16.msra.mxu1 %v4329_v63  ;;  %3989 = vmatprep.subr.bf16.mxu0 %v4330_v0 }
  0xde   :  { %4011 = vmatprep.subr.bf16.mxu1 %v4331_v1 }
  0xe0   :  { %3990 = vmatpush3.bf16.msra.mxu0 %v4332_v2 }
  0xe1   :  { %4012 = vmatpush3.bf16.msra.mxu1 %v4333_v3  ;;  %4019 = vmatprep.subr.bf16.mxu0 %v4338_v9 }
  0xe2   :  { %4041 = vmatprep.subr.bf16.mxu1 %v4339_v11 }
  0xe3   :  { %2731 = vmatmul.mubr.bf16.vlgmr.msra.gmra.mrb[24].mxu0 %v3394_v6 }
  0xe4   :  { %2771 = vmatmul.mubr.bf16.vlgmr.msra.gmra.mrb[24].mxu1 %v3396_v8  ;;  %4020 = vmatpush3.bf16.msra.mxu0 %v4340_v12 }
  0xe5   :  { %4042 = vmatpush3.bf16.msra.mxu1 %v4341_v13  ;;  %4021 = vmatprep.subr.bf16.mxu0 %v4342_v14 }
  0xe6   :  { %4043 = vmatprep.subr.bf16.mxu1 %v4343_v15  ;;  %2810 = vmatprep.mubr.bf16.mxu0 %v3399_v58 }
  0xe7   :  { %2850 = vmatprep.mubr.bf16.mxu1 %v3401_v60 }
  0xe8   :  { %4022 = vmatpush3.bf16.msra.mxu0 %v4344_v16 }
  0xe9   :  { %4044 = vmatpush3.bf16.msra.mxu1 %v4345_v17  ;;  %4023 = vmatprep.subr.bf16.mxu0 %v4346_v18 }
  0xea   :  { %4045 = vmatprep.subr.bf16.mxu1 %v4347_v19 }
  0xec   :  { %4024 = vmatpush3.bf16.msra.mxu0 %v4348_v20 }
  0xed   :  { %4046 = vmatpush3.bf16.msra.mxu1 %v4349_v21  ;;  %4025 = vmatprep.subr.bf16.mxu0 %v4350_v22 }
  0xee   :  { %4047 = vmatprep.subr.bf16.mxu1 %v4351_v23 }
  0xf0   :  { %4026 = vmatpush3.bf16.msra.mxu0 %v4352_v24 }
  0xf1   :  { %4048 = vmatpush3.bf16.msra.mxu1 %v4353_v25  ;;  %4027 = vmatprep.subr.bf16.mxu0 %v4354_v26 }
  0xf2   :  { %4049 = vmatprep.subr.bf16.mxu1 %v4355_v27 }
  0xf4   :  { %4028 = vmatpush3.bf16.msra.mxu0 %v4356_v28 }
  0xf5   :  { %4050 = vmatpush3.bf16.msra.mxu1 %v4357_v30  ;;  %4029 = vmatprep.subr.bf16.mxu0 %v4358_v37  ;;  %v4440_v37 = vmov 0  }
  0xf6   :  { %v3727_v29 = vpop.f32.mrb[0].mxu0  ;;  %4051 = vmatprep.subr.bf16.mxu1 %v4359_v39  ;;  %v4378_v39 = vld [vmem:[%s5481_s5 + $0x4] ss:$8 sps:$4 sm:$0xff]  }
  0xf7   :  { %v3749_v31 = vpop.f32.mrb[0].mxu1  ;;  %v3728_v33 = vpop.f32.mrb[1].mxu0 }
  0xf8   :  { %v3750_v34 = vpop.f32.mrb[1].mxu1  ;;  %v3729_v35 = vadd.f32 %v3728_v33, %v3727_v29  ;;  %v3730_v38 = vpop.f32.mrb[2].mxu0  ;;  %4030 = vmatpush3.bf16.msra.mxu0 %v4360_v42  ;;  %v2862_v33 = vld [vmem:[%s5480_s3] sm:$0xff] }
  0xf9   :  { %v3751_v36 = vadd.f32 %v3750_v34, %v3749_v31  ;;  %v3752_v40 = vpop.f32.mrb[2].mxu1  ;;  %v3731_v43 = vpop.f32.mrb[3].mxu0  ;;  %4052 = vmatpush3.bf16.msra.mxu1 %v4361_v44  ;;  %4031 = vmatprep.subr.bf16.mxu0 %v4362_v47  ;;  %v3659_v34 = vcombine.high %v2862_v33, %v2862_v33  ;;  %v4376_v38 = vld [vmem:[%s5481_s5] ss:$8 sps:$4 sm:$0xff]   ;;  %v4384_v42 = vld [vmem:[%s5481_s5 + $0x24] ss:$8 sps:$4 sm:$0xff]  }
  0xfa   :  { %v2253_v41 = vadd.f32 %v3729_v35, %v3369_v32  ;;  %v3753_v45 = vpop.f32.mrb[3].mxu1  ;;  %4053 = vmatprep.subr.bf16.mxu1 %v4363_v48  ;;  %v3658_v35 = vcombine.low %v2862_v33, %v2862_v33  ;;  %v4381_v40 = vld [vmem:[%s5481_s5 + $0x14] ss:$8 sps:$4 sm:$0xff]   ;;  %v4382_v43 = vld [vmem:[%s5481_s5 + $0x20] ss:$8 sps:$4 sm:$0xff]  }
  0xfb   :  { %v4387_v44 = vld [vmem:[%s5481_s5 + $0x34] ss:$8 sps:$4 sm:$0xff]   ;;  %v4385_v45 = vld [vmem:[%s5481_s5 + $0x30] ss:$8 sps:$4 sm:$0xff]   ;;  %v4388_v47 = vld [vmem:[%s5481_s5 + $0x40] ss:$8 sps:$4 sm:$0xff]  }
  0xfc   :  { %v2293_v46 = vadd.f32 %v3751_v36, %v2253_v41  ;;  %4032 = vmatpush3.bf16.msra.mxu0 %v4364_v49  ;;  %v2885_v36 = vsel %vm2883_vm0, %v3658_v35, 0  ;;  %v4379_v41 = vld [vmem:[%s5481_s5 + $0x10] ss:$8 sps:$4 sm:$0xff]  }
  0xfd   :  { %4054 = vmatpush3.bf16.msra.mxu1 %v4365_v50  ;;  %4033 = vmatprep.subr.bf16.mxu0 %v4366_v51  ;;  %v4393_v50 = vld [vmem:[%s5481_s5 + $0x54] ss:$8 sps:$4 sm:$0xff]  }
  0xfe   :  { %4055 = vmatprep.subr.bf16.mxu1 %v4367_v52 }
 0x100   :  { %4034 = vmatpush3.bf16.msra.mxu0 %v4368_v53 }
 0x101   :  { %4056 = vmatpush3.bf16.msra.mxu1 %v4369_v54  ;;  %3660 = vmatprep.subr.msk.bf16.mxu0 %vm2883_vm0, %v3659_v34 }
 0x102   :  { %3139 = vmatprep.subr.bf16.mxu1 %v4378_v39 }
 0x103   :  { %2811 = vmatmul.mubr.bf16.vlgmr.msra.gmra.mrb[28].mxu0 %v3398_v57 }
 0x104   :  { %2851 = vmatmul.mubr.bf16.vlgmr.msra.gmra.mrb[28].mxu1 %v3400_v59  ;;  %2891 = vmatpush1.bf16.msra.mxu0 %v2885_v36  ;;  %v4391_v59 = vld [vmem:[%s5481_s5 + $0x50] ss:$8 sps:$4 sm:$0xff]  }
 0x105   :  { %2922 = vmatprep.mubr.bf16.mxu0 %v4440_v37  ;;  %3140 = vmatpush1.bf16.msra.mxu1 %v4376_v38 }
 0x106   :  { %3141 = vmatprep.subr.bf16.mxu1 %v4381_v40 }
 0x109   :  { %3142 = vmatpush1.bf16.msra.mxu1 %v4379_v41 }
 0x10a   :  { %3143 = vmatprep.subr.bf16.mxu1 %v4384_v42 }
 0x10d   :  { %3144 = vmatpush1.bf16.msra.mxu1 %v4382_v43 }
 0x10e   :  { %3145 = vmatprep.subr.bf16.mxu1 %v4387_v44 }
 0x111   :  { %3146 = vmatpush1.bf16.msra.mxu1 %v4385_v45 }
 0x116   :  { %v3771_v61 = vpop.f32.mrb[4].mxu0 }
 0x117   :  { %v3793_v62 = vpop.f32.mrb[4].mxu1  ;;  %v3772_v63 = vpop.f32.mrb[5].mxu0 }
 0x118   :  { %v3794_v0 = vpop.f32.mrb[5].mxu1  ;;  %v3773_v1 = vadd.f32 %v3772_v63, %v3771_v61  ;;  %v3774_v3 = vpop.f32.mrb[6].mxu0  ;;  %v4396_v61 = vld [vmem:[%s5481_s5 + $0x64] ss:$8 sps:$4 sm:$0xff]   ;;  %v4394_v63 = vld [vmem:[%s5481_s5 + $0x60] ss:$8 sps:$4 sm:$0xff]  }
 0x119   :  { %v3795_v2 = vadd.f32 %v3794_v0, %v3793_v62  ;;  %v3796_v4 = vpop.f32.mrb[6].mxu1  ;;  %v3775_v5 = vpop.f32.mrb[7].mxu0  ;;  %v4399_v0 = vld [vmem:[%s5481_s5 + $0x74] ss:$8 sps:$4 sm:$0xff]   ;;  %v4400_v3 = vld [vmem:[%s5481_s5 + $0x80] ss:$8 sps:$4 sm:$0xff]  }
 0x11a   :  { %v3797_v6 = vpop.f32.mrb[7].mxu1  ;;  %v2333_v7 = vadd.f32 %v3773_v1, %v2293_v46  ;;  %v4390_v46 = vld [vmem:[%s5481_s5 + $0x44] ss:$8 sps:$4 sm:$0xff]   ;;  %v4397_v1 = vld [vmem:[%s5481_s5 + $0x70] ss:$8 sps:$4 sm:$0xff]  }
 0x11b   :  { %3147 = vmatprep.subr.bf16.mxu1 %v4390_v46  ;;  %v4405_v4 = vld [vmem:[%s5481_s5 + $0x94] ss:$8 sps:$4 sm:$0xff]   ;;  %v4403_v5 = vld [vmem:[%s5481_s5 + $0x90] ss:$8 sps:$4 sm:$0xff]   ;;  %v4408_v6 = vld [vmem:[%s5481_s5 + $0xa4] ss:$8 sps:$4 sm:$0xff]  }
 0x11c   :  { %v2373_v8 = vadd.f32 %v3795_v2, %v2333_v7  ;;  %3148 = vmatpush1.bf16.msra.mxu1 %v4388_v47  ;;  %v4402_v2 = vld [vmem:[%s5481_s5 + $0x84] ss:$8 sps:$4 sm:$0xff]   ;;  %v4406_v7 = vld [vmem:[%s5481_s5 + $0xa0] ss:$8 sps:$4 sm:$0xff]  }
 0x11d   :  { %3149 = vmatprep.subr.bf16.mxu1 %v4393_v50 }
 0x120   :  { %3150 = vmatpush1.bf16.msra.mxu1 %v4391_v59  ;;  %v4427_v59 = vld [vmem:[%s5483_s7 + $0x8] sm:$0xff]  }
 0x121   :  { %3151 = vmatprep.subr.bf16.mxu1 %v4396_v61  ;;  %v4429_v61 = vld [vmem:[%s5483_s7 + $0x10] sm:$0xff]  }
 0x124   :  { %3152 = vmatpush1.bf16.msra.mxu1 %v4394_v63  ;;  %v4431_v63 = vld [vmem:[%s5483_s7 + $0x18] sm:$0xff]  }
 0x125   :  { %3153 = vmatprep.subr.bf16.mxu1 %v4399_v0  ;;  %v4432_v0 = vld [vmem:[%s5483_s7 + $0x60] sm:$0xff]  }
 0x128   :  { %3154 = vmatpush1.bf16.msra.mxu1 %v4397_v1  ;;  %v4433_v1 = vld [vmem:[%s5483_s7 + $0x20] sm:$0xff]  }
 0x129   :  { %3155 = vmatprep.subr.bf16.mxu1 %v4402_v2  ;;  %v4434_v2 = vld [vmem:[%s5483_s7 + $0x68] sm:$0xff]  }
 0x12c   :  { %3156 = vmatpush1.bf16.msra.mxu1 %v4400_v3  ;;  %v4435_v3 = vld [vmem:[%s5483_s7 + $0x28] sm:$0xff]  }
 0x12d   :  { %3157 = vmatprep.subr.bf16.mxu1 %v4405_v4  ;;  %v2865_v4 = vlaneseq }
 0x130   :  { %3158 = vmatpush1.bf16.msra.mxu1 %v4403_v5  ;;  %v2866_v5 = vshrl.u32 %v2865_v4, 7 }
 0x131   :  { %3159 = vmatprep.subr.bf16.mxu1 %v4408_v6 }
 0x132   :  { %v2867_v6 = vsub.s32 0, %v2866_v5 }
 0x134   :  { %3160 = vmatpush1.bf16.msra.mxu1 %v4406_v7  ;;  %v2863_v7 = vld [vmem:[%s5484_s4] sm:$0x3] }
 0x136   :  { %v3815_v9 = vpop.f32.mrb[8].mxu0 }
 0x137   :  { %v3837_v10 = vpop.f32.mrb[8].mxu1  ;;  %v3816_v11 = vpop.f32.mrb[9].mxu0 }
 0x138   :  { %v3817_v12 = vadd.f32 %v3816_v11, %v3815_v9  ;;  %v3838_v13 = vpop.f32.mrb[9].mxu1  ;;  %v3818_v14 = vpop.f32.mrb[10].mxu0  ;;  %v4409_v9 = vld [vmem:[%s5481_s5 + $0xb0] ss:$8 sps:$4 sm:$0xff]   ;;  %v4412_v11 = vld [vmem:[%s5481_s5 + $0xc0] ss:$8 sps:$4 sm:$0xff]  }
 0x139   :  { %v3839_v15 = vadd.f32 %v3838_v13, %v3837_v10  ;;  %v3840_v16 = vpop.f32.mrb[10].mxu1  ;;  %v3819_v17 = vpop.f32.mrb[11].mxu0  ;;  %v4414_v10 = vld [vmem:[%s5481_s5 + $0xc4] ss:$8 sps:$4 sm:$0xff]   ;;  %v4417_v13 = vld [vmem:[%s5481_s5 + $0xd4] ss:$8 sps:$4 sm:$0xff]  }
 0x13a   :  { %v2413_v18 = vadd.f32 %v3817_v12, %v2373_v8  ;;  %v3841_v19 = vpop.f32.mrb[11].mxu1  ;;  %v4411_v8 = vld [vmem:[%s5481_s5 + $0xb4] ss:$8 sps:$4 sm:$0xff]  }
 0x13b   :  { %3161 = vmatprep.subr.bf16.mxu1 %v4411_v8  ;;  %v2871_v8 = vsub.s32 1, %v2866_v5 }
 0x13c   :  { %v2453_v20 = vadd.f32 %v3839_v15, %v2413_v18  ;;  %3162 = vmatpush1.bf16.msra.mxu1 %v4409_v9  ;;  %v2868_v9 = vrot.slane %v2863_v7, %v2867_v6 }
 0x13d   :  { %3163 = vmatprep.subr.bf16.mxu1 %v4414_v10  ;;  %v2872_v10 = vrot.slane %v2863_v7, %v2871_v8 }
 0x140   :  { %3164 = vmatpush1.bf16.msra.mxu1 %v4412_v11 }
 0x141   :  { %3165 = vmatprep.subr.bf16.mxu1 %v4417_v13 }
 0x156   :  { %v3859_v21 = vpop.f32.mrb[12].mxu0 }
 0x157   :  { %v3881_v22 = vpop.f32.mrb[12].mxu1  ;;  %v3860_v23 = vpop.f32.mrb[13].mxu0 }
 0x158   :  { %v3861_v24 = vadd.f32 %v3860_v23, %v3859_v21  ;;  %v3882_v25 = vpop.f32.mrb[13].mxu1  ;;  %v3862_v26 = vpop.f32.mrb[14].mxu0 }
 0x159   :  { %v3883_v27 = vadd.f32 %v3882_v25, %v3881_v22  ;;  %v3884_v28 = vpop.f32.mrb[14].mxu1  ;;  %v3863_v29 = vpop.f32.mrb[15].mxu0  ;;  %v4415_v22 = vld [vmem:[%s5481_s5 + $0xd0] ss:$8 sps:$4 sm:$0xff]  }
 0x15a   :  { %v2493_v30 = vadd.f32 %v3861_v24, %v2453_v20  ;;  %v3885_v31 = vpop.f32.mrb[15].mxu1  ;;  %3166 = vmatpush1.bf16.msra.mxu1 %v4415_v22  ;;  %v4437_v22 = vld [vmem:[%s5483_s7 + $0x30] sm:$0xff]  }
 0x15c   :  { %v2533_v32 = vadd.f32 %v3883_v27, %v2493_v30 }
 0x176   :  { %v3903_v48 = vpop.f32.mrb[16].mxu0 }
 0x177   :  { %v3925_v49 = vpop.f32.mrb[16].mxu1  ;;  %v3904_v51 = vpop.f32.mrb[17].mxu0 }
 0x178   :  { %v3926_v52 = vpop.f32.mrb[17].mxu1  ;;  %v3905_v53 = vadd.f32 %v3904_v51, %v3903_v48  ;;  %v3906_v55 = vpop.f32.mrb[18].mxu0 }
 0x179   :  { %v3927_v54 = vadd.f32 %v3926_v52, %v3925_v49  ;;  %v3928_v56 = vpop.f32.mrb[18].mxu1  ;;  %v3907_v57 = vpop.f32.mrb[19].mxu0  ;;  %v4420_v52 = vld [vmem:[%s5481_s5 + $0xe4] ss:$8 sps:$4 sm:$0xff]   ;;  %v4421_v55 = vld [vmem:[%s5481_s5 + $0xf0] ss:$8 sps:$4 sm:$0xff]  }
 0x17a   :  { %v3929_v58 = vpop.f32.mrb[19].mxu1  ;;  %v2573_v60 = vadd.f32 %v3905_v53, %v2533_v32  ;;  %v4418_v53 = vld [vmem:[%s5481_s5 + $0xe0] ss:$8 sps:$4 sm:$0xff]   ;;  %3167 = vmatprep.subr.bf16.mxu1 %v4420_v52 }
 0x17b   :  { %3168 = vmatpush1.bf16.msra.mxu1 %v4418_v53  ;;  %v4424_v56 = vld [vmem:[%s5483_s7 + $0x40] sm:$0xff]   ;;  %v4426_v58 = vld [vmem:[%s5483_s7 + $0x48] sm:$0xff]  }
 0x17c   :  { %v2613_v62 = vadd.f32 %v3927_v54, %v2573_v60  ;;  %v4423_v54 = vld [vmem:[%s5481_s5 + $0xf4] ss:$8 sps:$4 sm:$0xff]   ;;  %v4425_v57 = vld [vmem:[%s5483_s7] sm:$0xff]   ;;  %4063 = vmatprep.subr.bf16.mxu0 %v4424_v56 }
 0x17d   :  { %3169 = vmatprep.subr.bf16.mxu1 %v4423_v54  ;;  %v4428_v60 = vld [vmem:[%s5483_s7 + $0x50] sm:$0xff]  }
 0x17f   :  { %3170 = vmatpush1.bf16.msra.mxu1 %v4421_v55 }
 0x196   :  { %v3947_v12 = vpop.f32.mrb[20].mxu0 }
 0x197   :  { %v3969_v14 = vpop.f32.mrb[20].mxu1  ;;  %v3948_v15 = vpop.f32.mrb[21].mxu0 }
 0x198   :  { %v3949_v16 = vadd.f32 %v3948_v15, %v3947_v12  ;;  %v3970_v17 = vpop.f32.mrb[21].mxu1  ;;  %v3950_v18 = vpop.f32.mrb[22].mxu0 }
 0x199   :  { %v3971_v19 = vadd.f32 %v3970_v17, %v3969_v14  ;;  %v3972_v20 = vpop.f32.mrb[22].mxu1  ;;  %v3951_v21 = vpop.f32.mrb[23].mxu0 }
 0x19a   :  { %v2653_v23 = vadd.f32 %v3949_v16, %v2613_v62  ;;  %v3973_v24 = vpop.f32.mrb[23].mxu1  ;;  %v4430_v62 = vld [vmem:[%s5483_s7 + $0x58] sm:$0xff]   ;;  %v4436_v21 = vld [vmem:[%s5483_s7 + $0x70] sm:$0xff]  }
 0x19b   :  { %v4439_v24 = vld [vmem:[%s5483_s7 + $0x38] sm:$0xff]  }
 0x19c   :  { %v2693_v25 = vadd.f32 %v3971_v19, %v2653_v23  ;;  %v4438_v23 = vld [vmem:[%s5483_s7 + $0x78] sm:$0xff]  }
 0x1b6   :  { %v3991_v26 = vpop.f32.mrb[24].mxu0 }
 0x1b7   :  { %v4013_v27 = vpop.f32.mrb[24].mxu1  ;;  %v3992_v28 = vpop.f32.mrb[25].mxu0 }
 0x1b8   :  { %v3993_v29 = vadd.f32 %v3992_v28, %v3991_v26  ;;  %v4014_v30 = vpop.f32.mrb[25].mxu1  ;;  %v3994_v31 = vpop.f32.mrb[26].mxu0 }
 0x1b9   :  { %v4015_v32 = vadd.f32 %v4014_v30, %v4013_v27  ;;  %v4016_v33 = vpop.f32.mrb[26].mxu1  ;;  %v3995_v34 = vpop.f32.mrb[27].mxu0 }
 0x1ba   :  { %v2733_v35 = vadd.f32 %v3993_v29, %v2693_v25  ;;  %v4017_v36 = vpop.f32.mrb[27].mxu1  ;;  %v2967_v25 = vld [vmem:[%s5485_s6] sm:$0x3] }
 0x1bb   :  { %v2972_v26 = vrot.slane %v2967_v25, %v2867_v6  ;;  %v2976_v27 = vrot.slane %v2967_v25, %v2871_v8 }
 0x1bc   :  { %v2773_v37 = vadd.f32 %v4015_v32, %v2733_v35 }
 0x1d6   :  { %v4035_v38 = vpop.f32.mrb[28].mxu0 }
 0x1d7   :  { %v4057_v39 = vpop.f32.mrb[28].mxu1  ;;  %v4036_v40 = vpop.f32.mrb[29].mxu0 }
 0x1d8   :  { %v4037_v41 = vadd.f32 %v4036_v40, %v4035_v38  ;;  %v4058_v42 = vpop.f32.mrb[29].mxu1  ;;  %v4038_v43 = vpop.f32.mrb[30].mxu0 }
 0x1d9   :  { %v4059_v44 = vadd.f32 %v4058_v42, %v4057_v39  ;;  %v4060_v45 = vpop.f32.mrb[30].mxu1  ;;  %v4039_v46 = vpop.f32.mrb[31].mxu0  ;;  %v3694_v39 = vld [vmem:[%s5486_s8] ss:$0 sm:$0xff] }
 0x1da   :  { %v2813_v47 = vadd.f32 %v4037_v41, %v2773_v37  ;;  %v4061_v48 = vpop.f32.mrb[31].mxu1 }
 0x1dc   :  { %v2853_v49 = vadd.f32 %v4059_v44, %v2813_v47 }
 0x1de   :  { %v2858_v50 = vmax.f32 %v2853_v49, 0.0 }
 0x1e0   :  { %v2861_v51 = vpack.c.bf16 %v2858_v50, %v2858_v50  ;;  %2860 = vst.msk [vmem:[%s5482_s9] sm:$0xff] %vm2859_vm1, %v2858_v50 }
 0x1e2   :  { %3661 = vmatmul.mubr.msk.bf16.vlgmr.msra.gmra.mrb[32].mxu0 %vm2859_vm1, %v2861_v51 }
 0x1e3   :  { %4064 = vmatpush3.bf16.msra.mxu0 %v4425_v57 }
 0x1e4   :  { %4065 = vmatprep.subr.bf16.mxu0 %v4426_v58 }
 0x1e7   :  { %4066 = vmatpush3.bf16.msra.mxu0 %v4427_v59 }
 0x1e8   :  { %4067 = vmatprep.subr.bf16.mxu0 %v4428_v60 }
 0x1eb   :  { %4068 = vmatpush3.bf16.msra.mxu0 %v4429_v61 }
 0x1ec   :  { %4069 = vmatprep.subr.bf16.mxu0 %v4430_v62 }
 0x1ef   :  { %4070 = vmatpush3.bf16.msra.mxu0 %v4431_v63 }
 0x1f0   :  { %4071 = vmatprep.subr.bf16.mxu0 %v4432_v0 }
 0x1f3   :  { %4072 = vmatpush3.bf16.msra.mxu0 %v4433_v1 }
 0x1f4   :  { %4073 = vmatprep.subr.bf16.mxu0 %v4434_v2 }
 0x1f7   :  { %4074 = vmatpush3.bf16.msra.mxu0 %v4435_v3 }
 0x1f8   :  { %4075 = vmatprep.subr.bf16.mxu0 %v4436_v21 }
 0x1fb   :  { %4076 = vmatpush3.bf16.msra.mxu0 %v4437_v22 }
 0x1fc   :  { %4077 = vmatprep.subr.bf16.mxu0 %v4438_v23 }
 0x1ff   :  { %4078 = vmatpush3.bf16.msra.mxu0 %v4439_v24 }
 0x2b5   :  { %v2924_v11 = vpop.f32.mrb[32].mxu0 }
 0x2b6   :  { %v2925_v12 = vadd.f32 %v2924_v11, %v2868_v9  ;;  %v2926_v13 = vpop.f32.mrb[33].mxu0 }
 0x2b7   :  { %v2927_v14 = vadd.f32 %v2926_v13, %v2872_v10  ;;  %v2928_v15 = vpop.f32.mrb[34].mxu0 }
 0x2b8   :  { %v2931_v16 = vmax.f32 %v2925_v12, 0.0  ;;  %v2929_v17 = vpop.f32.mrb[35].mxu0 }
 0x2b9   :  { %v2932_v18 = vmax.f32 %v2927_v14, 0.0 }
 0x2ba   :  { %v2933_v20 = vpack.c.bf16 %v2931_v16, %v2931_v16 }
 0x2bb   :  { %v2934_v19 = vpack.c.bf16 %v2932_v18, %v2932_v18 }
 0x2bd   :  { %3171 = vmatprep.mubr.bf16.mxu1 %v2934_v19 }
 0x2be   :  { %3172 = vmatmul.mubr.bf16.vlgmr.msra.gmra.mrb[32].mxu1 %v2933_v20 }
 0x391   :  { %v3173_v28 = vpop.f32.mrb[32].mxu1 }
 0x392   :  { %v3174_v29 = vadd.f32 %v3173_v28, %v2972_v26  ;;  %v3175_v30 = vpop.f32.mrb[33].mxu1 }
 0x393   :  { %v3176_v31 = vadd.f32 %v3175_v30, %v2976_v27  ;;  %v3177_v32 = vpop.f32.mrb[34].mxu1 }
 0x394   :  { %v3180_v33 = vmax.f32 %v3174_v29, 0.0  ;;  %v3178_v34 = vpop.f32.mrb[35].mxu1 }
 0x395   :  { %v3181_v35 = vmax.f32 %v3176_v31, 0.0 }
 0x396   :  { %v3182_v37 = vpack.c.bf16 %v3180_v33, %v3180_v33 }
 0x397   :  { %v3183_v36 = vpack.c.bf16 %v3181_v35, %v3181_v35 }
 0x399   :  { %3351 = vmatprep.mubr.bf16.mxu0 %v3183_v36 }
 0x39a   :  { %3352 = vmatmul.mubr.bf16.vlgmr.msra.gmra.mrb[36].mxu0 %v3182_v37 }
 0x46d   :  { %v4079_v38 = vpop.f32.mrb[36].mxu0 }
 0x46e   :  { %v4080_v40 = vpop.f32.mrb[37].mxu0 }
 0x46f   :  { %v4081_v41 = vadd.f32 %v4080_v40, %v4079_v38  ;;  %v4082_v42 = vpop.f32.mrb[38].mxu0 }
 0x470   :  { %v4083_v43 = vpop.f32.mrb[39].mxu0 }
 0x471   :  { %v3354_v44 = vadd.f32 %v4081_v41, %v3694_v39 }
 0x473   :  { %3360 = vst.msk [vmem:[%s5487_s10] sm:$0xff] %vm3359_vm2, %v3354_v44 }

</bundles_post_ra>
